<compile_context>
chip_gen: v7x
topology: tpu7x:2x2x1
jax: 0.10.0
libtpu: 0.0.40
codegen_flags: <defaults>
</compile_context>

<pallas_src>
import math

import jax
import jax.numpy as jnp
from jax.experimental import pallas as pl
from jax.experimental.pallas import tpu as pltpu


# ----------------------------- Pallas kernels -------------------------------

def _linear_kernel(x_ref, w_ref, b_ref, o_ref):
    o_ref[...] = jnp.dot(x_ref[...].astype(jnp.bfloat16),
                         w_ref[...].astype(jnp.bfloat16),
                         preferred_element_type=jnp.float32) + b_ref[...]


def linear(x, p):
    """y = x @ W + b with W already stored as (in, out) and b as (1, out)."""
    w, b = p["w"], p["b"]
    lead = x.shape[:-1]
    K = x.shape[-1]
    M = int(math.prod(lead)) if lead else 1
    N = w.shape[1]
    x2 = x.reshape(M, K).astype(jnp.float32)
    out = pl.pallas_call(
        _linear_kernel,
        out_shape=jax.ShapeDtypeStruct((M, N), jnp.float32),
        grid=(1,),
        in_specs=[pl.BlockSpec((M, K), lambda i: (0, 0)),
                  pl.BlockSpec((K, N), lambda i: (0, 0)),
                  pl.BlockSpec((1, N), lambda i: (0, 0))],
        out_specs=pl.BlockSpec((M, N), lambda i: (0, 0)),
        compiler_params=pltpu.CompilerParams(dimension_semantics=("arbitrary",)),
    )(x2, w, b)
    return out.reshape(lead + (N,))


def _mlp_kernel(x_ref, w1_ref, b1_ref, w2_ref, b2_ref, o_ref):
    h = jnp.dot(x_ref[...].astype(jnp.bfloat16), w1_ref[...].astype(jnp.bfloat16),
                preferred_element_type=jnp.float32) + b1_ref[...]
    h = jnp.maximum(h, 0.0)
    o_ref[...] = jnp.dot(h.astype(jnp.bfloat16), w2_ref[...].astype(jnp.bfloat16),
                         preferred_element_type=jnp.float32) + b2_ref[...]


def mlp2(x, p1, p2):
    """y = relu(x @ W1 + b1) @ W2 + b2 fused in one pallas_call."""
    lead = x.shape[:-1]
    K = x.shape[-1]
    M = int(math.prod(lead)) if lead else 1
    H = p1["w"].shape[1]
    N = p2["w"].shape[1]
    x2 = x.reshape(M, K).astype(jnp.float32)
    out = pl.pallas_call(
        _mlp_kernel,
        out_shape=jax.ShapeDtypeStruct((M, N), jnp.float32),
        grid=(1,),
        in_specs=[pl.BlockSpec((M, K), lambda i: (0, 0)),
                  pl.BlockSpec((K, H), lambda i: (0, 0)),
                  pl.BlockSpec((1, H), lambda i: (0, 0)),
                  pl.BlockSpec((H, N), lambda i: (0, 0)),
                  pl.BlockSpec((1, N), lambda i: (0, 0))],
        out_specs=pl.BlockSpec((M, N), lambda i: (0, 0)),
        compiler_params=pltpu.CompilerParams(dimension_semantics=("arbitrary",)),
    )(x2, p1["w"], p1["b"], p2["w"], p2["b"])
    return out.reshape(lead + (N,))


def stog_fused(z_stack, sp, mp, B, L, V, U):
    """CapsuleSequenceToGraph stand-in for all 3 modalities in one call (grid over
    modality), with fc_m fused: x_m accumulated in-kernel across modalities
    (bias added by the caller since the accumulator is zero-initialised)."""
    dm = z_stack.shape[-1]

    def kern(z_ref, wf_ref, bf_ref, wv_ref, bv_ref, wm_ref, o_ref, xm_ref):
        m = pl.program_id(0)
        z = z_ref[0].astype(jnp.bfloat16)                               # (B,L,dm)
        wfb = jnp.broadcast_to(wf_ref[0][None], (B, dm, U)).astype(jnp.bfloat16)
        h = jnp.einsum("bld,bdu->blu", z, wfb,
                       preferred_element_type=jnp.float32) + bf_ref[0]  # (B,L,U)
        wvb = jnp.broadcast_to(wv_ref[0][None], (B, V, L)).astype(jnp.bfloat16)
        out = jnp.einsum("bvl,blu->bvu", wvb, h.astype(jnp.bfloat16),
                         preferred_element_type=jnp.float32) + bv_ref[0]
        o_ref[0] = out

        @pl.when(m == 0)
        def _():
            xm_ref[...] = jnp.zeros_like(xm_ref)

        wmb = jnp.broadcast_to(wm_ref[0][None], (B, U, U)).astype(jnp.bfloat16)
        xm_ref[...] += jnp.einsum("bvu,buo->bvo", out.astype(jnp.bfloat16), wmb,
                                  preferred_element_type=jnp.float32)

    return pl.pallas_call(
        kern,
        out_shape=(jax.ShapeDtypeStruct((3, B, V, U), jnp.float32),
                   jax.ShapeDtypeStruct((B, V, U), jnp.float32)),
        grid=(3,),
        in_specs=[pl.BlockSpec((1, B, L, dm), lambda m: (m, 0, 0, 0)),
                  pl.BlockSpec((1, dm, U), lambda m: (m, 0, 0)),
                  pl.BlockSpec((1, 1, U), lambda m: (m, 0, 0)),
                  pl.BlockSpec((1, V, L), lambda m: (m, 0, 0)),
                  pl.BlockSpec((1, V, 1), lambda m: (m, 0, 0)),
                  pl.BlockSpec((1, U, U), lambda m: (m, 0, 0))],
        out_specs=(pl.BlockSpec((1, B, V, U), lambda m: (m, 0, 0, 0)),
                   pl.BlockSpec((B, V, U), lambda m: (0, 0, 0))),
        compiler_params=pltpu.CompilerParams(dimension_semantics=("arbitrary",)),
    )(z_stack, sp["wf"], sp["bf"], sp["wv"], sp["bv"], mp["w"])


def diffusion_fused(x, n, c1, c2, cond, temb, p, B, V, U):
    """Fused per-modality: q_sample (FMA) + time-conditioned MLP noise prediction
    + accumulation of the 3-way element-wise MSE. grid=(3,) over modality.
    cond (the shared x_m conditioning) is loaded once via a constant index_map."""
    BV = B * V

    def kern(x_ref, n_ref, c1_ref, c2_ref, cond_ref, temb_ref,
             w1x_ref, w1c_ref, w1t_ref, b1_ref, w2_ref, b2_ref,
             pred_ref, loss_ref):
        m = pl.program_id(0)
        xc = x_ref[0]                                                    # clean signal
        x_tmp = c1_ref[0] * xc + c2_ref[0] * n_ref[0]                    # q_sample
        h = (jnp.dot(x_tmp.astype(jnp.bfloat16), w1x_ref[0].astype(jnp.bfloat16),
                     preferred_element_type=jnp.float32)
             + jnp.dot(cond_ref[...].astype(jnp.bfloat16), w1c_ref[0].astype(jnp.bfloat16),
                       preferred_element_type=jnp.float32)
             + jnp.dot(temb_ref[0].astype(jnp.bfloat16), w1t_ref[0].astype(jnp.bfloat16),
                       preferred_element_type=jnp.float32)
             + b1_ref[0])
        h = jnp.maximum(h, 0.0)
        pred = jnp.dot(h.astype(jnp.bfloat16), w2_ref[0].astype(jnp.bfloat16),
                       preferred_element_type=jnp.float32) + b2_ref[0]
        pred_ref[0] = pred
        d = pred - xc

        @pl.when(m == 0)
        def _():
            loss_ref[...] = jnp.zeros_like(loss_ref)

        loss_ref[...] += d * d

    pred, loss = pl.pallas_call(
        kern,
        out_shape=(jax.ShapeDtypeStruct((3, BV, U), jnp.float32),
                   jax.ShapeDtypeStruct((BV, U), jnp.float32)),
        grid=(3,),
        in_specs=[pl.BlockSpec((1, BV, U), lambda m: (m, 0, 0)),
                  pl.BlockSpec((1, BV, U), lambda m: (m, 0, 0)),
                  pl.BlockSpec((1, BV, 1), lambda m: (m, 0, 0)),
                  pl.BlockSpec((1, BV, 1), lambda m: (m, 0, 0)),
                  pl.BlockSpec((BV, U), lambda m: (0, 0)),
                  pl.BlockSpec((1, BV, U), lambda m: (m, 0, 0)),
                  pl.BlockSpec((1, U, U), lambda m: (m, 0, 0)),
                  pl.BlockSpec((1, U, U), lambda m: (m, 0, 0)),
                  pl.BlockSpec((1, U, U), lambda m: (m, 0, 0)),
                  pl.BlockSpec((1, 1, U), lambda m: (m, 0, 0)),
                  pl.BlockSpec((1, U, U), lambda m: (m, 0, 0)),
                  pl.BlockSpec((1, 1, U), lambda m: (m, 0, 0))],
        out_specs=(pl.BlockSpec((1, BV, U), lambda m: (m, 0, 0)),
                   pl.BlockSpec((BV, U), lambda m: (0, 0))),
        compiler_params=pltpu.CompilerParams(dimension_semantics=("arbitrary",)),
    )(x, n, c1, c2, cond, temb,
      p["w1x"], p["w1c"], p["w1t"], p["b1"], p["w2"], p["b2"])
    return pred, loss


def _mha_kernel(q_ref, k_ref, v_ref, o_ref):
    q = q_ref[...]                                   # (B*H, S, Dh)
    k = k_ref[...]
    v = v_ref[...]
    scale = 1.0 / math.sqrt(q.shape[-1])
    s = jnp.einsum("nqd,nkd->nqk", q.astype(jnp.bfloat16), k.astype(jnp.bfloat16),
                   preferred_element_type=jnp.float32) * scale
    m = jnp.max(s, axis=-1, keepdims=True)
    e = jnp.exp(s - m)
    p = e * pl.reciprocal(jnp.sum(e, axis=-1, keepdims=True), approx=True)
    o_ref[...] = jnp.einsum("nqk,nkd->nqd", p.astype(jnp.bfloat16),
                            v.astype(jnp.bfloat16),
                            preferred_element_type=jnp.float32)


def mha(q, k, v):
    N, S, Dh = q.shape                               # N = B * heads
    spec = pl.BlockSpec((N, S, Dh), lambda i: (0, 0, 0))
    return pl.pallas_call(
        _mha_kernel,
        out_shape=jax.ShapeDtypeStruct((N, S, Dh), jnp.float32),
        grid=(1,),
        in_specs=[spec, spec, spec],
        out_specs=spec,
        compiler_params=pltpu.CompilerParams(dimension_semantics=("arbitrary",)),
    )(q.astype(jnp.float32), k.astype(jnp.float32), v.astype(jnp.float32))


# ------------------------------- JAX glue -----------------------------------

def jlinear(x, p):
    """Plain-JAX linear for sub-MXU-scale ops (XLA fuses these into neighbors)."""
    return x @ p["w"] + p["b"]


def layer_norm(x, gamma, beta, eps=1e-5):
    mu = jnp.mean(x, axis=-1, keepdims=True)
    var = jnp.mean((x - mu) ** 2, axis=-1, keepdims=True)
    return (x - mu) / jnp.sqrt(var + eps) * gamma + beta


def time_embedding(t, dim):
    half = dim // 2
    freqs = jnp.exp(-jnp.log(10000.0) * jnp.arange(half, dtype=jnp.float32) / half)
    args = t.astype(jnp.float32)[:, None] * freqs[None, :]
    return jnp.concatenate([jnp.sin(args), jnp.cos(args)], axis=-1)


def bilstm(x, params):
    """Bidirectional single-layer LSTM, PyTorch gate order (i,f,g,o).
    Both directions' input projections fused into one Pallas matmul; backward
    direction uses lax.scan(reverse=True) so no data reversal is materialized."""
    L, B, _ = x.shape
    H = params["W_hh_T_fw"].shape[0]

    xp = linear(x, params["in_proj"])                 # (L, B, 8H) — fw | bw halves
    xp_fw = xp[..., : 4 * H]
    xp_bw = xp[..., 4 * H:]

    def make_step(W_hh_T):
        # TODO(synk): sequential LSTM recurrence kept in lax.scan (tiny per-step
        # matmul; no clean Pallas pipelining for a time-serial dependence).
        def step(carry, xp_t):
            h, c = carry
            gates = xp_t + h @ W_hh_T
            i, f, g, o = jnp.split(gates, 4, axis=-1)
            i = jax.nn.sigmoid(i)
            f = jax.nn.sigmoid(f)
            g = jnp.tanh(g)
            o = jax.nn.sigmoid(o)
            c = f * c + i * g
            h = o * jnp.tanh(c)
            return (h, c), h
        return step

    h0 = jnp.zeros((B, H), jnp.float32)
    _, h_fw = jax.lax.scan(make_step(params["W_hh_T_fw"]), (h0, h0), xp_fw)
    _, h_bw = jax.lax.scan(make_step(params["W_hh_T_bw"]), (h0, h0), xp_bw, reverse=True)
    return jnp.concatenate([h_fw, h_bw], axis=-1)     # (L, B, 2H)


def transformer_encoder_layer(x, p, nhead):
    """nn.TransformerEncoderLayer(d_model, nhead, batch_first=True), post-norm, relu."""
    B, S, E = x.shape
    Dh = E // nhead
    qkv = linear(x, p["in_proj"])                     # (B,S,3E)
    q, k, v = jnp.split(qkv, 3, axis=-1)

    def split_heads(a):
        return jnp.transpose(a.reshape(B, S, nhead, Dh), (0, 2, 1, 3)).reshape(B * nhead, S, Dh)

    attn = mha(split_heads(q), split_heads(k), split_heads(v))   # (B*H,S,Dh)
    attn = jnp.transpose(attn.reshape(B, nhead, S, Dh), (0, 2, 1, 3)).reshape(B, S, E)
    attn = linear(attn, p["out_proj"])
    x = layer_norm(x + attn, p["ln1_g"], p["ln1_b"])
    ff = mlp2(x, p["linear1"], p["linear2"])          # fused linear1+relu+linear2
    x = layer_norm(x + ff, p["ln2_g"], p["ln2_b"])
    return x


# --------------------------- parameter creation ------------------------------

class ParamGen:
    def __init__(self, seed=0):
        self.key = jax.random.PRNGKey(seed)

    def next(self):
        self.key, sub = jax.random.split(self.key)
        return sub

    def lin(self, out_f, in_f):
        """PyTorch-style init, but stored pre-transposed: w (in,out), b (1,out)."""
        s = 1.0 / math.sqrt(in_f)
        k1, k2 = jax.random.split(self.next())
        w = jax.random.uniform(k1, (out_f, in_f), jnp.float32, -s, s)
        b = jax.random.uniform(k2, (out_f,), jnp.float32, -s, s)
        return {"w": jnp.transpose(w), "b": b.reshape(1, out_f)}

    def lin_pt(self, out_f, in_f):
        """PyTorch (out,in) layout kept as-is (for weighted reductions / heads)."""
        s = 1.0 / math.sqrt(in_f)
        k1, k2 = jax.random.split(self.next())
        return {"w": jax.random.uniform(k1, (out_f, in_f), jnp.float32, -s, s),
                "b": jax.random.uniform(k2, (out_f,), jnp.float32, -s, s)}

    def lstm(self, in_f, hid):
        s = 1.0 / math.sqrt(hid)

        def u(shape):
            return jax.random.uniform(self.next(), shape, jnp.float32, -s, s)

        W_ih_fw, W_hh_fw = u((4 * hid, in_f)), u((4 * hid, hid))
        b_ih_fw, b_hh_fw = u((4 * hid,)), u((4 * hid,))
        W_ih_bw, W_hh_bw = u((4 * hid, in_f)), u((4 * hid, hid))
        b_ih_bw, b_hh_bw = u((4 * hid,)), u((4 * hid,))
        in_proj = {"w": jnp.concatenate([W_ih_fw, W_ih_bw], axis=0).T,          # (in, 8H)
                   "b": jnp.concatenate([b_ih_fw + b_hh_fw,
                                         b_ih_bw + b_hh_bw]).reshape(1, 8 * hid)}
        return {"in_proj": in_proj,
                "W_hh_T_fw": jnp.transpose(W_hh_fw),
                "W_hh_T_bw": jnp.transpose(W_hh_bw)}

    def noise_pre(self, U):
        """Time-conditioned MLP stand-in: first layer split into x / cond / temb
        branches so the shared conditioning tensor can be loaded once."""
        temb = self.lin(U, U)
        in_x = self.lin(U, U)
        in_c = self.lin(U, U)
        out = self.lin(U, U)
        return {"w1x": in_x["w"], "w1c": in_c["w"], "w1t": temb["w"],
                "b1": in_x["b"] + in_c["b"] + temb["b"],
                "w2": out["w"], "b2": out["b"]}


def init_params(cfg, seed=0):
    g = ParamGen(seed)
    U, dm, V, L = cfg["unified_size"], cfg["d_m"], cfg["vertex_num"], cfg["seq"]
    p = {}
    p["lstm_t"] = g.lstm(cfg["t_in"], cfg["t_in_pre"])
    p["fc_pre_t_2"] = g.lin(cfg["t_in_pre"], 2 * cfg["t_in_pre"])
    p["lstm_gpt"] = g.lstm(cfg["t_in"], cfg["t_in_pre"])
    p["fc_pre_gpt_2"] = g.lin(cfg["t_in_pre"], 2 * cfg["t_in_pre"])
    p["vggish_sub"] = g.lin(cfg["a_in"], cfg["a_in"])
    p["fc_pre_a"] = g.lin(cfg["a_in_pre"], cfg["a_in"])
    p["fc_pre_v"] = g.lin(cfg["v_in_pre"], cfg["v_in"])
    p["fc_pre_com"] = g.lin(U, cfg["t_in_cfg"])
    p["fc_pre_user"] = g.lin(U, cfg["t_in_cfg"])
    p["fc_pre_c3d"] = g.lin(U, cfg["c3d_in"])
    p["mult_t"] = g.lin(3 * dm, cfg["t_in_pre"])
    p["mult_g"] = g.lin(3 * dm, cfg["t_in_pre"])
    p["mult_a"] = g.lin(3 * dm, cfg["a_in_pre"])
    p["mult_v"] = g.lin(3 * dm, U)
    p["fc_g_t"] = g.lin(dm, 6 * dm)
    p["fc_a_MTout"] = g.lin(dm, 3 * dm)
    p["fc_v_MTout"] = g.lin(dm, 3 * dm)

    # Capsule StoG stand-in: weights stacked across modalities (t, a, v).
    feats = [g.lin(U, dm) for _ in range(3)]
    verts = [g.lin_pt(V, L) for _ in range(3)]
    p["stog"] = {"wf": jnp.stack([f["w"] for f in feats]),            # (3, dm, U)
                 "bf": jnp.stack([f["b"] for f in feats]),            # (3, 1, U)
                 "wv": jnp.stack([v["w"] for v in verts]),            # (3, V, L)
                 "bv": jnp.stack([v["b"].reshape(V, 1) for v in verts])}  # (3, V, 1)

    # fc_m split per modality for fusion into the StoG kernel.
    fc_m = g.lin(U, 3 * U)                                             # w (3U,U), b (1,U)
    p["fc_m_split"] = {"w": fc_m["w"].reshape(3, U, U), "b": fc_m["b"]}

    # Noise-prediction stand-ins, weights stacked across (t, a, v).
    nps = [g.noise_pre(U) for _ in range(3)]
    p["np"] = {k: jnp.stack([d[k] for d in nps])
               for k in ("w1x", "w1c", "w1t", "b1", "w2", "b2")}

    # fc_t / fc_a / fc_v heads (vertex_num -> 1) stacked for one einsum.
    heads = [g.lin_pt(1, V) for _ in range(3)]
    p["head_w"] = jnp.stack([h["w"][0] for h in heads])               # (3, V)
    p["head_b"] = jnp.stack([h["b"][0] for h in heads])               # (3,)

    p["fc_pre"] = g.lin(cfg["label_dim"], U)
    p["trm"] = {"in_proj": g.lin(3 * U, U), "out_proj": g.lin(U, U),
                "linear1": g.lin(cfg["dim_feedforward"], U),
                "linear2": g.lin(U, cfg["dim_feedforward"]),
                "ln1_g": jnp.ones((U,), jnp.float32), "ln1_b": jnp.zeros((U,), jnp.float32),
                "ln2_g": jnp.ones((U,), jnp.float32), "ln2_b": jnp.zeros((U,), jnp.float32)}
    return p


# --------------------------------- forward -----------------------------------

def forward(params, cfg, texts, audios, videos, comments, c3d, user_intro,
            gpt_description, rng):
    B, U, V, T = cfg["batch"], cfg["unified_size"], cfg["vertex_num"], cfg["T"]
    L = cfg["seq"]

    # diffusion schedule buffers (register_buffer equivalents)
    betas = jnp.linspace(cfg["beta_1"], cfg["beta_T"], T).astype(jnp.float32)
    alphas_bar = jnp.cumprod(1.0 - betas)
    sqrt_ab = jnp.sqrt(alphas_bar)
    sqrt_1mab = jnp.sqrt(1.0 - alphas_bar)

    # --- per-modality pre-processing ---
    texts_local = bilstm(texts, params["lstm_t"])                 # (L,B,2*pre)
    texts_local = linear(texts_local, params["fc_pre_t_2"])       # (L,B,pre)
    # TODO(synk): torchvggish is an external torch.hub model; deterministic linear
    # stand-in, fused with fc_pre_a into one two-layer Pallas kernel.
    audios_local = mlp2(audios, params["vggish_sub"], params["fc_pre_a"])   # (B,L,a_pre)
    c3d_local = linear(c3d, params["fc_pre_c3d"])                 # (B,L,U)
    gpt_local = bilstm(gpt_description, params["lstm_gpt"])
    gpt_local = linear(gpt_local, params["fc_pre_gpt_2"])         # (L,B,pre)
    # TODO(synk): Dropout layers treated as identity (deterministic eval semantics);
    # tiny (B,·) global projections left to XLA fusion (sub-MXU scale).
    comments_global = jax.nn.relu(jlinear(comments, params["fc_pre_com"]))          # (B,U)
    user_intro_global = jax.nn.relu(jlinear(jnp.squeeze(user_intro),
                                            params["fc_pre_user"]))                 # (B,U)
    # fc_pre_v + mean over seq commuted (linear map): project the seq-mean once.
    videos_global = jlinear(jnp.mean(videos, axis=-2), params["fc_pre_v"])           # (B,U)

    # --- crossmodal transformer ---
    # TODO(synk): MULTModel internals unspecified; stand-in = per-modality Pallas linear proj.
    t_bf = jnp.transpose(texts_local, (1, 0, 2))
    g_bf = jnp.transpose(gpt_local, (1, 0, 2))
    z_t = linear(t_bf, params["mult_t"])
    z_g = linear(g_bf, params["mult_g"])
    z_a = linear(audios_local, params["mult_a"])
    z_v = linear(c3d_local, params["mult_v"])

    z_t = linear(jnp.concatenate([z_t, z_g], axis=2), params["fc_g_t"])
    z_a = linear(z_a, params["fc_a_MTout"])
    z_v = linear(z_v, params["fc_v_MTout"])

    # --- capsule sequence-to-graph + fc_m (all 3 modalities, one fused Pallas call) ---
    # TODO(synk): CapsuleSequenceToGraph internals unspecified; stand-in = feature
    # proj + seq->vertex linear pooling.
    z_stack = jnp.stack([z_t, z_a, z_v], axis=0)                  # (3,B,L,dm)
    x_tav, x_m = stog_fused(z_stack, params["stog"], params["fc_m_split"], B, L, V, U)
    x_m = x_m + params["fc_m_split"]["b"]                         # fc_m bias (acc init was 0)

    # --- diffusion: q-sample + noise-pre MLP + MSE fused in one Pallas call ---
    ks = jax.random.split(rng, 6)
    t_t = jax.random.randint(ks[0], (B,), 0, T)
    t_a = jax.random.randint(ks[1], (B,), 0, T)
    t_v = jax.random.randint(ks[2], (B,), 0, T)
    noise = jnp.stack([jax.random.normal(ks[3], (B, V, U), jnp.float32),
                       jax.random.normal(ks[4], (B, V, U), jnp.float32),
                       jax.random.normal(ks[5], (B, V, U), jnp.float32)], axis=0)

    t_stack = jnp.stack([t_t, t_a, t_v], axis=0)                  # (3,B)
    # schedule gather (T=16 table) done in plain JAX; coefficients fed lane-broadcast
    c1 = jnp.broadcast_to(sqrt_ab[t_stack][:, :, None, None], (3, B, V, 1)).reshape(3, B * V, 1)
    c2 = jnp.broadcast_to(sqrt_1mab[t_stack][:, :, None, None], (3, B, V, 1)).reshape(3, B * V, 1)
    temb = time_embedding(t_stack.reshape(-1), U).reshape(3, B, U)
    temb_b = jnp.broadcast_to(temb[:, :, None, :], (3, B, V, U)).reshape(3, B * V, U)
    cond = x_m.reshape(B * V, U)                                  # shared, loaded once
    x_stack = x_tav.reshape(3, B * V, U)

    pred, loss = diffusion_fused(x_stack, noise.reshape(3, B * V, U),
                                 c1, c2, cond, temb_b, params["np"], B, V, U)
    pred = pred.reshape(3, B, V, U)                               # (t, a, v) noise preds
    loss = loss.reshape(B, V, U)

    # --- per-modality output heads (N=1 matmuls -> one stacked plain-JAX einsum) ---
    heads = jnp.einsum("mbvu,mv->mbu", pred, params["head_w"]) + params["head_b"][:, None, None]
    output_t = heads[0][:, None, :]
    output_a = heads[1][:, None, :]
    output_v = heads[2][:, None, :]

    output_m = jnp.concatenate(
        [output_t, output_a, videos_global[:, None, :],
         user_intro_global[:, None, :], output_v,
         comments_global[:, None, :]], axis=1)                    # (B,6,U)

    output_m = transformer_encoder_layer(output_m, params["trm"], cfg["nhead"])
    output_m = jnp.mean(output_m, axis=-2)                        # (B,U)
    output_m = jlinear(output_m, params["fc_pre"])                # (B,label_dim)
    return loss, output_m


# ----------------------------------- main ------------------------------------

if __name__ == "__main__":
    CFG = dict(batch=2, T=16, beta_1=1e-4, beta_T=0.02,
               t_in=24, a_in=32, v_in=40, c3d_in=24,
               t_in_pre=16, a_in_pre=16, v_in_pre=32, t_in_cfg=24,
               d_m=16, unified_size=32, vertex_num=8, label_dim=2,
               seq=8, dim_feedforward=2048, nhead=2)

    params = init_params(CFG, seed=0)

    key = jax.random.PRNGKey(0)
    ks = jax.random.split(key, 8)
    B, L = CFG["batch"], CFG["seq"]
    texts = jax.random.normal(ks[0], (L, B, CFG["t_in"]), jnp.float32)
    audios = jax.random.normal(ks[1], (B, L, CFG["a_in"]), jnp.float32)
    videos = jax.random.normal(ks[2], (B, L, CFG["v_in"]), jnp.float32)
    comments = jax.random.normal(ks[3], (B, CFG["t_in_cfg"]), jnp.float32)
    c3d = jax.random.normal(ks[4], (B, L, CFG["c3d_in"]), jnp.float32)
    user_intro = jax.random.normal(ks[5], (B, 1, CFG["t_in_cfg"]), jnp.float32)
    gpt_description = jax.random.normal(ks[6], (L, B, CFG["t_in"]), jnp.float32)
    rng = ks[7]

    fwd = jax.jit(lambda p, *a: forward(p, CFG, *a))
    loss, output_m = fwd(params, texts, audios, videos, comments, c3d,
                         user_intro, gpt_description, rng)
    jax.block_until_ready((loss, output_m))
    assert loss.shape == (B, CFG["vertex_num"], CFG["unified_size"])
    assert output_m.shape == (B, CFG["label_dim"])
    print("KERNEL_OK")
</pallas_src>

<mosaic_0001>
module attributes {stable_mosaic.version = 11 : i64} {
  func.func @_linear_kernel(%arg0: i32, %arg1: memref<16x48xf32, #tpu.memory_space<vmem>>, %arg2: memref<48x16xf32, #tpu.memory_space<vmem>>, %arg3: memref<1x16xf32, #tpu.memory_space<vmem>>, %arg4: memref<16x16xf32, #tpu.memory_space<vmem>>) attributes {dimension_semantics = [#tpu.dimension_semantics<arbitrary>], iteration_bounds = array<i64: 1>, scalar_prefetch = 0 : i64, scratch_operands = 0 : i64, tpu.core_type = #tpu.core_type<tc>, window_params = [{pipeline_mode = #tpu.pipeline_mode<synchronous>, transform_indices = @transform_0, window_bounds = array<i64: 16, 48>}, {pipeline_mode = #tpu.pipeline_mode<synchronous>, transform_indices = @transform_1, window_bounds = array<i64: 48, 16>}, {pipeline_mode = #tpu.pipeline_mode<synchronous>, transform_indices = @transform_2, window_bounds = array<i64: 1, 16>}, {pipeline_mode = #tpu.pipeline_mode<synchronous>, transform_indices = @transform_3, window_bounds = array<i64: 16, 16>}]} {
    %c0 = arith.constant 0 : index
    %c0_0 = arith.constant 0 : index
    %0 = vector.load %arg1[%c0, %c0_0] : memref<16x48xf32, #tpu.memory_space<vmem>>, vector<16x48xf32>
    %1 = arith.truncf %0 : vector<16x48xf32> to vector<16x48xbf16>
    %c0_1 = arith.constant 0 : index
    %c0_2 = arith.constant 0 : index
    %2 = vector.load %arg2[%c0_1, %c0_2] : memref<48x16xf32, #tpu.memory_space<vmem>>, vector<48x16xf32>
    %3 = arith.truncf %2 : vector<48x16xf32> to vector<48x16xbf16>
    %cst = arith.constant dense<0.000000e+00> : vector<16x16xf32>
    %4 = tpu.matmul %1, %3, %cst {dimension_numbers = #tpu.dot_dimension_numbers<[1], [0], [0], [1], [0, 0, 1, 1], [], []>} : vector<16x48xbf16>, vector<48x16xbf16>, vector<16x16xf32> -> vector<16x16xf32>
    %c0_3 = arith.constant 0 : index
    %c0_4 = arith.constant 0 : index
    %5 = vector.load %arg3[%c0_3, %c0_4] : memref<1x16xf32, #tpu.memory_space<vmem>>, vector<1x16xf32>
    %6 = vector.broadcast %5 : vector<1x16xf32> to vector<16x16xf32>
    %7 = arith.addf %4, %6 : vector<16x16xf32>
    %c0_5 = arith.constant 0 : index
    %c0_6 = arith.constant 0 : index
    %8 = vector.load %arg4[%c0_5, %c0_6] : memref<16x16xf32, #tpu.memory_space<vmem>>, vector<16x16xf32>
    tpu.vector_store %arg4[%c0_5, %c0_6], %7 {strides = array<i32>} : memref<16x16xf32, #tpu.memory_space<vmem>>, vector<16x16xf32>,
    return
  }
  func.func @transform_0(%arg0: i32) -> (i32, i32) {
    %c0_i32 = arith.constant 0 : i32
    %c0_i32_0 = arith.constant 0 : i32
    %c0_i32_1 = arith.constant 0 : i32
    return %c0_i32, %c0_i32_0 : i32, i32
  }
  func.func @transform_1(%arg0: i32) -> (i32, i32) {
    %c0_i32 = arith.constant 0 : i32
    %c0_i32_0 = arith.constant 0 : i32
    %c0_i32_1 = arith.constant 0 : i32
    return %c0_i32, %c0_i32_0 : i32, i32
  }
  func.func @transform_2(%arg0: i32) -> (i32, i32) {
    %c0_i32 = arith.constant 0 : i32
    %c0_i32_0 = arith.constant 0 : i32
    %c0_i32_1 = arith.constant 0 : i32
    return %c0_i32, %c0_i32_0 : i32, i32
  }
  func.func @transform_3(%arg0: i32) -> (i32, i32) {
    %c0_i32 = arith.constant 0 : i32
    %c0_i32_0 = arith.constant 0 : i32
    %c0_i32_1 = arith.constant 0 : i32
    return %c0_i32, %c0_i32_0 : i32, i32
  }
}

module attributes {stable_mosaic.version = 11 : i64} {
  func.func @_linear_kernel(%arg0: i32, %arg1: memref<16x24xf32, #tpu.memory_space<vmem>>, %arg2: memref<24x32xf32, #tpu.memory_space<vmem>>, %arg3: memref<1x32xf32, #tpu.memory_space<vmem>>, %arg4: memref<16x32xf32, #tpu.memory_space<vmem>>) attributes {dimension_semantics = [#tpu.dimension_semantics<arbitrary>], iteration_bounds = array<i64: 1>, scalar_prefetch = 0 : i64, scratch_operands = 0 : i64, tpu.core_type = #tpu.core_type<tc>, window_params = [{pipeline_mode = #tpu.pipeline_mode<synchronous>, transform_indices = @transform_0, window_bounds = array<i64: 16, 24>}, {pipeline_mode = #tpu.pipeline_mode<synchronous>, transform_indices = @transform_1, window_bounds = array<i64: 24, 32>}, {pipeline_mode = #tpu.pipeline_mode<synchronous>, transform_indices = @transform_2, window_bounds = array<i64: 1, 32>}, {pipeline_mode = #tpu.pipeline_mode<synchronous>, transform_indices = @transform_3, window_bounds = array<i64: 16, 32>}]} {
    %c0 = arith.constant 0 : index
    %c0_0 = arith.constant 0 : index
    %0 = vector.load %arg1[%c0, %c0_0] : memref<16x24xf32, #tpu.memory_space<vmem>>, vector<16x24xf32>
    %1 = arith.truncf %0 : vector<16x24xf32> to vector<16x24xbf16>
    %c0_1 = arith.constant 0 : index
    %c0_2 = arith.constant 0 : index
    %2 = vector.load %arg2[%c0_1, %c0_2] : memref<24x32xf32, #tpu.memory_space<vmem>>, vector<24x32xf32>
    %3 = arith.truncf %2 : vector<24x32xf32> to vector<24x32xbf16>
    %cst = arith.constant dense<0.000000e+00> : vector<16x32xf32>
    %4 = tpu.matmul %1, %3, %cst {dimension_numbers = #tpu.dot_dimension_numbers<[1], [0], [0], [1], [0, 0, 1, 1], [], []>} : vector<16x24xbf16>, vector<24x32xbf16>, vector<16x32xf32> -> vector<16x32xf32>
    %c0_3 = arith.constant 0 : index
    %c0_4 = arith.constant 0 : index
    %5 = vector.load %arg3[%c0_3, %c0_4] : memref<1x32xf32, #tpu.memory_space<vmem>>, vector<1x32xf32>
    %6 = vector.broadcast %5 : vector<1x32xf32> to vector<16x32xf32>
    %7 = arith.addf %4, %6 : vector<16x32xf32>
    %c0_5 = arith.constant 0 : index
    %c0_6 = arith.constant 0 : index
    %8 = vector.load %arg4[%c0_5, %c0_6] : memref<16x32xf32, #tpu.memory_space<vmem>>, vector<16x32xf32>
    tpu.vector_store %arg4[%c0_5, %c0_6], %7 {strides = array<i32>} : memref<16x32xf32, #tpu.memory_space<vmem>>, vector<16x32xf32>,
    return
  }
  func.func @transform_0(%arg0: i32) -> (i32, i32) {
    %c0_i32 = arith.constant 0 : i32
    %c0_i32_0 = arith.constant 0 : i32
    %c0_i32_1 = arith.constant 0 : i32
    return %c0_i32, %c0_i32_0 : i32, i32
  }
  func.func @transform_1(%arg0: i32) -> (i32, i32) {
    %c0_i32 = arith.constant 0 : i32
    %c0_i32_0 = arith.constant 0 : i32
    %c0_i32_1 = arith.constant 0 : i32
    return %c0_i32, %c0_i32_0 : i32, i32
  }
  func.func @transform_2(%arg0: i32) -> (i32, i32) {
    %c0_i32 = arith.constant 0 : i32
    %c0_i32_0 = arith.constant 0 : i32
    %c0_i32_1 = arith.constant 0 : i32
    return %c0_i32, %c0_i32_0 : i32, i32
  }
  func.func @transform_3(%arg0: i32) -> (i32, i32) {
    %c0_i32 = arith.constant 0 : i32
    %c0_i32_0 = arith.constant 0 : i32
    %c0_i32_1 = arith.constant 0 : i32
    return %c0_i32, %c0_i32_0 : i32, i32
  }
}

module attributes {stable_mosaic.version = 11 : i64} {
  func.func @_linear_kernel(%arg0: i32, %arg1: memref<16x32xf32, #tpu.memory_space<vmem>>, %arg2: memref<32x48xf32, #tpu.memory_space<vmem>>, %arg3: memref<1x48xf32, #tpu.memory_space<vmem>>, %arg4: memref<16x48xf32, #tpu.memory_space<vmem>>) attributes {dimension_semantics = [#tpu.dimension_semantics<arbitrary>], iteration_bounds = array<i64: 1>, scalar_prefetch = 0 : i64, scratch_operands = 0 : i64, tpu.core_type = #tpu.core_type<tc>, window_params = [{pipeline_mode = #tpu.pipeline_mode<synchronous>, transform_indices = @transform_0, window_bounds = array<i64: 16, 32>}, {pipeline_mode = #tpu.pipeline_mode<synchronous>, transform_indices = @transform_1, window_bounds = array<i64: 32, 48>}, {pipeline_mode = #tpu.pipeline_mode<synchronous>, transform_indices = @transform_2, window_bounds = array<i64: 1, 48>}, {pipeline_mode = #tpu.pipeline_mode<synchronous>, transform_indices = @transform_3, window_bounds = array<i64: 16, 48>}]} {
    %c0 = arith.constant 0 : index
    %c0_0 = arith.constant 0 : index
    %0 = vector.load %arg1[%c0, %c0_0] : memref<16x32xf32, #tpu.memory_space<vmem>>, vector<16x32xf32>
    %1 = arith.truncf %0 : vector<16x32xf32> to vector<16x32xbf16>
    %c0_1 = arith.constant 0 : index
    %c0_2 = arith.constant 0 : index
    %2 = vector.load %arg2[%c0_1, %c0_2] : memref<32x48xf32, #tpu.memory_space<vmem>>, vector<32x48xf32>
    %3 = arith.truncf %2 : vector<32x48xf32> to vector<32x48xbf16>
    %cst = arith.constant dense<0.000000e+00> : vector<16x48xf32>
    %4 = tpu.matmul %1, %3, %cst {dimension_numbers = #tpu.dot_dimension_numbers<[1], [0], [0], [1], [0, 0, 1, 1], [], []>} : vector<16x32xbf16>, vector<32x48xbf16>, vector<16x48xf32> -> vector<16x48xf32>
    %c0_3 = arith.constant 0 : index
    %c0_4 = arith.constant 0 : index
    %5 = vector.load %arg3[%c0_3, %c0_4] : memref<1x48xf32, #tpu.memory_space<vmem>>, vector<1x48xf32>
    %6 = vector.broadcast %5 : vector<1x48xf32> to vector<16x48xf32>
    %7 = arith.addf %4, %6 : vector<16x48xf32>
    %c0_5 = arith.constant 0 : index
    %c0_6 = arith.constant 0 : index
    %8 = vector.load %arg4[%c0_5, %c0_6] : memref<16x48xf32, #tpu.memory_space<vmem>>, vector<16x48xf32>
    tpu.vector_store %arg4[%c0_5, %c0_6], %7 {strides = array<i32>} : memref<16x48xf32, #tpu.memory_space<vmem>>, vector<16x48xf32>,
    return
  }
  func.func @transform_0(%arg0: i32) -> (i32, i32) {
    %c0_i32 = arith.constant 0 : i32
    %c0_i32_0 = arith.constant 0 : i32
    %c0_i32_1 = arith.constant 0 : i32
    return %c0_i32, %c0_i32_0 : i32, i32
  }
  func.func @transform_1(%arg0: i32) -> (i32, i32) {
    %c0_i32 = arith.constant 0 : i32
    %c0_i32_0 = arith.constant 0 : i32
    %c0_i32_1 = arith.constant 0 : i32
    return %c0_i32, %c0_i32_0 : i32, i32
  }
  func.func @transform_2(%arg0: i32) -> (i32, i32) {
    %c0_i32 = arith.constant 0 : i32
    %c0_i32_0 = arith.constant 0 : i32
    %c0_i32_1 = arith.constant 0 : i32
    return %c0_i32, %c0_i32_0 : i32, i32
  }
  func.func @transform_3(%arg0: i32) -> (i32, i32) {
    %c0_i32 = arith.constant 0 : i32
    %c0_i32_0 = arith.constant 0 : i32
    %c0_i32_1 = arith.constant 0 : i32
    return %c0_i32, %c0_i32_0 : i32, i32
  }
}

module attributes {stable_mosaic.version = 11 : i64} {
  func.func @_mlp_kernel(%arg0: i32, %arg1: memref<16x32xf32, #tpu.memory_space<vmem>>, %arg2: memref<32x32xf32, #tpu.memory_space<vmem>>, %arg3: memref<1x32xf32, #tpu.memory_space<vmem>>, %arg4: memref<32x16xf32, #tpu.memory_space<vmem>>, %arg5: memref<1x16xf32, #tpu.memory_space<vmem>>, %arg6: memref<16x16xf32, #tpu.memory_space<vmem>>) attributes {dimension_semantics = [#tpu.dimension_semantics<arbitrary>], iteration_bounds = array<i64: 1>, scalar_prefetch = 0 : i64, scratch_operands = 0 : i64, tpu.core_type = #tpu.core_type<tc>, window_params = [{pipeline_mode = #tpu.pipeline_mode<synchronous>, transform_indices = @transform_0, window_bounds = array<i64: 16, 32>}, {pipeline_mode = #tpu.pipeline_mode<synchronous>, transform_indices = @transform_1, window_bounds = array<i64: 32, 32>}, {pipeline_mode = #tpu.pipeline_mode<synchronous>, transform_indices = @transform_2, window_bounds = array<i64: 1, 32>}, {pipeline_mode = #tpu.pipeline_mode<synchronous>, transform_indices = @transform_3, window_bounds = array<i64: 32, 16>}, {pipeline_mode = #tpu.pipeline_mode<synchronous>, transform_indices = @transform_4, window_bounds = array<i64: 1, 16>}, {pipeline_mode = #tpu.pipeline_mode<synchronous>, transform_indices = @transform_5, window_bounds = array<i64: 16, 16>}]} {
    %c0 = arith.constant 0 : index
    %c0_0 = arith.constant 0 : index
    %0 = vector.load %arg1[%c0, %c0_0] : memref<16x32xf32, #tpu.memory_space<vmem>>, vector<16x32xf32>
    %1 = arith.truncf %0 : vector<16x32xf32> to vector<16x32xbf16>
    %c0_1 = arith.constant 0 : index
    %c0_2 = arith.constant 0 : index
    %2 = vector.load %arg2[%c0_1, %c0_2] : memref<32x32xf32, #tpu.memory_space<vmem>>, vector<32x32xf32>
    %3 = arith.truncf %2 : vector<32x32xf32> to vector<32x32xbf16>
    %cst = arith.constant dense<0.000000e+00> : vector<16x32xf32>
    %4 = tpu.matmul %1, %3, %cst {dimension_numbers = #tpu.dot_dimension_numbers<[1], [0], [0], [1], [0, 0, 1, 1], [], []>} : vector<16x32xbf16>, vector<32x32xbf16>, vector<16x32xf32> -> vector<16x32xf32>
    %c0_3 = arith.constant 0 : index
    %c0_4 = arith.constant 0 : index
    %5 = vector.load %arg3[%c0_3, %c0_4] : memref<1x32xf32, #tpu.memory_space<vmem>>, vector<1x32xf32>
    %6 = vector.broadcast %5 : vector<1x32xf32> to vector<16x32xf32>
    %7 = arith.addf %4, %6 : vector<16x32xf32>
    %cst_5 = arith.constant 0.000000e+00 : f32
    %8 = vector.broadcast %cst_5 : f32 to vector<16x32xf32>
    %9 = arith.maximumf %7, %8 : vector<16x32xf32>
    %10 = arith.truncf %9 : vector<16x32xf32> to vector<16x32xbf16>
    %c0_6 = arith.constant 0 : index
    %c0_7 = arith.constant 0 : index
    %11 = vector.load %arg4[%c0_6, %c0_7] : memref<32x16xf32, #tpu.memory_space<vmem>>, vector<32x16xf32>
    %12 = arith.truncf %11 : vector<32x16xf32> to vector<32x16xbf16>
    %cst_8 = arith.constant dense<0.000000e+00> : vector<16x16xf32>
    %13 = tpu.matmul %10, %12, %cst_8 {dimension_numbers = #tpu.dot_dimension_numbers<[1], [0], [0], [1], [0, 0, 1, 1], [], []>} : vector<16x32xbf16>, vector<32x16xbf16>, vector<16x16xf32> -> vector<16x16xf32>
    %c0_9 = arith.constant 0 : index
    %c0_10 = arith.constant 0 : index
    %14 = vector.load %arg5[%c0_9, %c0_10] : memref<1x16xf32, #tpu.memory_space<vmem>>, vector<1x16xf32>
    %15 = vector.broadcast %14 : vector<1x16xf32> to vector<16x16xf32>
    %16 = arith.addf %13, %15 : vector<16x16xf32>
    %c0_11 = arith.constant 0 : index
    %c0_12 = arith.constant 0 : index
    %17 = vector.load %arg6[%c0_11, %c0_12] : memref<16x16xf32, #tpu.memory_space<vmem>>, vector<16x16xf32>
    tpu.vector_store %arg6[%c0_11, %c0_12], %16 {strides = array<i32>} : memref<16x16xf32, #tpu.memory_space<vmem>>, vector<16x16xf32>,
    return
  }
  func.func @transform_0(%arg0: i32) -> (i32, i32) {
    %c0_i32 = arith.constant 0 : i32
    %c0_i32_0 = arith.constant 0 : i32
    %c0_i32_1 = arith.constant 0 : i32
    return %c0_i32, %c0_i32_0 : i32, i32
  }
  func.func @transform_1(%arg0: i32) -> (i32, i32) {
    %c0_i32 = arith.constant 0 : i32
    %c0_i32_0 = arith.constant 0 : i32
    %c0_i32_1 = arith.constant 0 : i32
    return %c0_i32, %c0_i32_0 : i32, i32
  }
  func.func @transform_2(%arg0: i32) -> (i32, i32) {
    %c0_i32 = arith.constant 0 : i32
    %c0_i32_0 = arith.constant 0 : i32
    %c0_i32_1 = arith.constant 0 : i32
    return %c0_i32, %c0_i32_0 : i32, i32
  }
  func.func @transform_3(%arg0: i32) -> (i32, i32) {
    %c0_i32 = arith.constant 0 : i32
    %c0_i32_0 = arith.constant 0 : i32
    %c0_i32_1 = arith.constant 0 : i32
    return %c0_i32, %c0_i32_0 : i32, i32
  }
  func.func @transform_4(%arg0: i32) -> (i32, i32) {
    %c0_i32 = arith.constant 0 : i32
    %c0_i32_0 = arith.constant 0 : i32
    %c0_i32_1 = arith.constant 0 : i32
    return %c0_i32, %c0_i32_0 : i32, i32
  }
  func.func @transform_5(%arg0: i32) -> (i32, i32) {
    %c0_i32 = arith.constant 0 : i32
    %c0_i32_0 = arith.constant 0 : i32
    %c0_i32_1 = arith.constant 0 : i32
    return %c0_i32, %c0_i32_0 : i32, i32
  }
}

module attributes {stable_mosaic.version = 11 : i64} {
  func.func @_linear_kernel(%arg0: i32, %arg1: memref<16x16xf32, #tpu.memory_space<vmem>>, %arg2: memref<16x48xf32, #tpu.memory_space<vmem>>, %arg3: memref<1x48xf32, #tpu.memory_space<vmem>>, %arg4: memref<16x48xf32, #tpu.memory_space<vmem>>) attributes {dimension_semantics = [#tpu.dimension_semantics<arbitrary>], iteration_bounds = array<i64: 1>, scalar_prefetch = 0 : i64, scratch_operands = 0 : i64, tpu.core_type = #tpu.core_type<tc>, window_params = [{pipeline_mode = #tpu.pipeline_mode<synchronous>, transform_indices = @transform_0, window_bounds = array<i64: 16, 16>}, {pipeline_mode = #tpu.pipeline_mode<synchronous>, transform_indices = @transform_1, window_bounds = array<i64: 16, 48>}, {pipeline_mode = #tpu.pipeline_mode<synchronous>, transform_indices = @transform_2, window_bounds = array<i64: 1, 48>}, {pipeline_mode = #tpu.pipeline_mode<synchronous>, transform_indices = @transform_3, window_bounds = array<i64: 16, 48>}]} {
    %c0 = arith.constant 0 : index
    %c0_0 = arith.constant 0 : index
    %0 = vector.load %arg1[%c0, %c0_0] : memref<16x16xf32, #tpu.memory_space<vmem>>, vector<16x16xf32>
    %1 = arith.truncf %0 : vector<16x16xf32> to vector<16x16xbf16>
    %c0_1 = arith.constant 0 : index
    %c0_2 = arith.constant 0 : index
    %2 = vector.load %arg2[%c0_1, %c0_2] : memref<16x48xf32, #tpu.memory_space<vmem>>, vector<16x48xf32>
    %3 = arith.truncf %2 : vector<16x48xf32> to vector<16x48xbf16>
    %cst = arith.constant dense<0.000000e+00> : vector<16x48xf32>
    %4 = tpu.matmul %1, %3, %cst {dimension_numbers = #tpu.dot_dimension_numbers<[1], [0], [0], [1], [0, 0, 1, 1], [], []>} : vector<16x16xbf16>, vector<16x48xbf16>, vector<16x48xf32> -> vector<16x48xf32>
    %c0_3 = arith.constant 0 : index
    %c0_4 = arith.constant 0 : index
    %5 = vector.load %arg3[%c0_3, %c0_4] : memref<1x48xf32, #tpu.memory_space<vmem>>, vector<1x48xf32>
    %6 = vector.broadcast %5 : vector<1x48xf32> to vector<16x48xf32>
    %7 = arith.addf %4, %6 : vector<16x48xf32>
    %c0_5 = arith.constant 0 : index
    %c0_6 = arith.constant 0 : index
    %8 = vector.load %arg4[%c0_5, %c0_6] : memref<16x48xf32, #tpu.memory_space<vmem>>, vector<16x48xf32>
    tpu.vector_store %arg4[%c0_5, %c0_6], %7 {strides = array<i32>} : memref<16x48xf32, #tpu.memory_space<vmem>>, vector<16x48xf32>,
    return
  }
  func.func @transform_0(%arg0: i32) -> (i32, i32) {
    %c0_i32 = arith.constant 0 : i32
    %c0_i32_0 = arith.constant 0 : i32
    %c0_i32_1 = arith.constant 0 : i32
    return %c0_i32, %c0_i32_0 : i32, i32
  }
  func.func @transform_1(%arg0: i32) -> (i32, i32) {
    %c0_i32 = arith.constant 0 : i32
    %c0_i32_0 = arith.constant 0 : i32
    %c0_i32_1 = arith.constant 0 : i32
    return %c0_i32, %c0_i32_0 : i32, i32
  }
  func.func @transform_2(%arg0: i32) -> (i32, i32) {
    %c0_i32 = arith.constant 0 : i32
    %c0_i32_0 = arith.constant 0 : i32
    %c0_i32_1 = arith.constant 0 : i32
    return %c0_i32, %c0_i32_0 : i32, i32
  }
  func.func @transform_3(%arg0: i32) -> (i32, i32) {
    %c0_i32 = arith.constant 0 : i32
    %c0_i32_0 = arith.constant 0 : i32
    %c0_i32_1 = arith.constant 0 : i32
    return %c0_i32, %c0_i32_0 : i32, i32
  }
}

module attributes {stable_mosaic.version = 11 : i64} {
  func.func @_linear_kernel(%arg0: i32, %arg1: memref<16x24xf32, #tpu.memory_space<vmem>>, %arg2: memref<24x128xf32, #tpu.memory_space<vmem>>, %arg3: memref<1x128xf32, #tpu.memory_space<vmem>>, %arg4: memref<16x128xf32, #tpu.memory_space<vmem>>) attributes {dimension_semantics = [#tpu.dimension_semantics<arbitrary>], iteration_bounds = array<i64: 1>, scalar_prefetch = 0 : i64, scratch_operands = 0 : i64, tpu.core_type = #tpu.core_type<tc>, window_params = [{pipeline_mode = #tpu.pipeline_mode<synchronous>, transform_indices = @transform_0, window_bounds = array<i64: 16, 24>}, {pipeline_mode = #tpu.pipeline_mode<synchronous>, transform_indices = @transform_1, window_bounds = array<i64: 24, 128>}, {pipeline_mode = #tpu.pipeline_mode<synchronous>, transform_indices = @transform_2, window_bounds = array<i64: 1, 128>}, {pipeline_mode = #tpu.pipeline_mode<synchronous>, transform_indices = @transform_3, window_bounds = array<i64: 16, 128>}]} {
    %c0 = arith.constant 0 : index
    %c0_0 = arith.constant 0 : index
    %0 = vector.load %arg1[%c0, %c0_0] : memref<16x24xf32, #tpu.memory_space<vmem>>, vector<16x24xf32>
    %1 = arith.truncf %0 : vector<16x24xf32> to vector<16x24xbf16>
    %c0_1 = arith.constant 0 : index
    %c0_2 = arith.constant 0 : index
    %2 = vector.load %arg2[%c0_1, %c0_2] : memref<24x128xf32, #tpu.memory_space<vmem>>, vector<24x128xf32>
    %3 = arith.truncf %2 : vector<24x128xf32> to vector<24x128xbf16>
    %cst = arith.constant dense<0.000000e+00> : vector<16x128xf32>
    %4 = tpu.matmul %1, %3, %cst {dimension_numbers = #tpu.dot_dimension_numbers<[1], [0], [0], [1], [0, 0, 1, 1], [], []>} : vector<16x24xbf16>, vector<24x128xbf16>, vector<16x128xf32> -> vector<16x128xf32>
    %c0_3 = arith.constant 0 : index
    %c0_4 = arith.constant 0 : index
    %5 = vector.load %arg3[%c0_3, %c0_4] : memref<1x128xf32, #tpu.memory_space<vmem>>, vector<1x128xf32>
    %6 = vector.broadcast %5 : vector<1x128xf32> to vector<16x128xf32>
    %7 = arith.addf %4, %6 : vector<16x128xf32>
    %c0_5 = arith.constant 0 : index
    %c0_6 = arith.constant 0 : index
    %8 = vector.load %arg4[%c0_5, %c0_6] : memref<16x128xf32, #tpu.memory_space<vmem>>, vector<16x128xf32>
    tpu.vector_store %arg4[%c0_5, %c0_6], %7 {strides = array<i32>} : memref<16x128xf32, #tpu.memory_space<vmem>>, vector<16x128xf32>,
    return
  }
  func.func @transform_0(%arg0: i32) -> (i32, i32) {
    %c0_i32 = arith.constant 0 : i32
    %c0_i32_0 = arith.constant 0 : i32
    %c0_i32_1 = arith.constant 0 : i32
    return %c0_i32, %c0_i32_0 : i32, i32
  }
  func.func @transform_1(%arg0: i32) -> (i32, i32) {
    %c0_i32 = arith.constant 0 : i32
    %c0_i32_0 = arith.constant 0 : i32
    %c0_i32_1 = arith.constant 0 : i32
    return %c0_i32, %c0_i32_0 : i32, i32
  }
  func.func @transform_2(%arg0: i32) -> (i32, i32) {
    %c0_i32 = arith.constant 0 : i32
    %c0_i32_0 = arith.constant 0 : i32
    %c0_i32_1 = arith.constant 0 : i32
    return %c0_i32, %c0_i32_0 : i32, i32
  }
  func.func @transform_3(%arg0: i32) -> (i32, i32) {
    %c0_i32 = arith.constant 0 : i32
    %c0_i32_0 = arith.constant 0 : i32
    %c0_i32_1 = arith.constant 0 : i32
    return %c0_i32, %c0_i32_0 : i32, i32
  }
}

module attributes {stable_mosaic.version = 11 : i64} {
  func.func @_linear_kernel(%arg0: i32, %arg1: memref<16x32xf32, #tpu.memory_space<vmem>>, %arg2: memref<32x16xf32, #tpu.memory_space<vmem>>, %arg3: memref<1x16xf32, #tpu.memory_space<vmem>>, %arg4: memref<16x16xf32, #tpu.memory_space<vmem>>) attributes {dimension_semantics = [#tpu.dimension_semantics<arbitrary>], iteration_bounds = array<i64: 1>, scalar_prefetch = 0 : i64, scratch_operands = 0 : i64, tpu.core_type = #tpu.core_type<tc>, window_params = [{pipeline_mode = #tpu.pipeline_mode<synchronous>, transform_indices = @transform_0, window_bounds = array<i64: 16, 32>}, {pipeline_mode = #tpu.pipeline_mode<synchronous>, transform_indices = @transform_1, window_bounds = array<i64: 32, 16>}, {pipeline_mode = #tpu.pipeline_mode<synchronous>, transform_indices = @transform_2, window_bounds = array<i64: 1, 16>}, {pipeline_mode = #tpu.pipeline_mode<synchronous>, transform_indices = @transform_3, window_bounds = array<i64: 16, 16>}]} {
    %c0 = arith.constant 0 : index
    %c0_0 = arith.constant 0 : index
    %0 = vector.load %arg1[%c0, %c0_0] : memref<16x32xf32, #tpu.memory_space<vmem>>, vector<16x32xf32>
    %1 = arith.truncf %0 : vector<16x32xf32> to vector<16x32xbf16>
    %c0_1 = arith.constant 0 : index
    %c0_2 = arith.constant 0 : index
    %2 = vector.load %arg2[%c0_1, %c0_2] : memref<32x16xf32, #tpu.memory_space<vmem>>, vector<32x16xf32>
    %3 = arith.truncf %2 : vector<32x16xf32> to vector<32x16xbf16>
    %cst = arith.constant dense<0.000000e+00> : vector<16x16xf32>
    %4 = tpu.matmul %1, %3, %cst {dimension_numbers = #tpu.dot_dimension_numbers<[1], [0], [0], [1], [0, 0, 1, 1], [], []>} : vector<16x32xbf16>, vector<32x16xbf16>, vector<16x16xf32> -> vector<16x16xf32>
    %c0_3 = arith.constant 0 : index
    %c0_4 = arith.constant 0 : index
    %5 = vector.load %arg3[%c0_3, %c0_4] : memref<1x16xf32, #tpu.memory_space<vmem>>, vector<1x16xf32>
    %6 = vector.broadcast %5 : vector<1x16xf32> to vector<16x16xf32>
    %7 = arith.addf %4, %6 : vector<16x16xf32>
    %c0_5 = arith.constant 0 : index
    %c0_6 = arith.constant 0 : index
    %8 = vector.load %arg4[%c0_5, %c0_6] : memref<16x16xf32, #tpu.memory_space<vmem>>, vector<16x16xf32>
    tpu.vector_store %arg4[%c0_5, %c0_6], %7 {strides = array<i32>} : memref<16x16xf32, #tpu.memory_space<vmem>>, vector<16x16xf32>,
    return
  }
  func.func @transform_0(%arg0: i32) -> (i32, i32) {
    %c0_i32 = arith.constant 0 : i32
    %c0_i32_0 = arith.constant 0 : i32
    %c0_i32_1 = arith.constant 0 : i32
    return %c0_i32, %c0_i32_0 : i32, i32
  }
  func.func @transform_1(%arg0: i32) -> (i32, i32) {
    %c0_i32 = arith.constant 0 : i32
    %c0_i32_0 = arith.constant 0 : i32
    %c0_i32_1 = arith.constant 0 : i32
    return %c0_i32, %c0_i32_0 : i32, i32
  }
  func.func @transform_2(%arg0: i32) -> (i32, i32) {
    %c0_i32 = arith.constant 0 : i32
    %c0_i32_0 = arith.constant 0 : i32
    %c0_i32_1 = arith.constant 0 : i32
    return %c0_i32, %c0_i32_0 : i32, i32
  }
  func.func @transform_3(%arg0: i32) -> (i32, i32) {
    %c0_i32 = arith.constant 0 : i32
    %c0_i32_0 = arith.constant 0 : i32
    %c0_i32_1 = arith.constant 0 : i32
    return %c0_i32, %c0_i32_0 : i32, i32
  }
}

module attributes {stable_mosaic.version = 11 : i64} {
  func.func @_linear_kernel(%arg0: i32, %arg1: memref<16x96xf32, #tpu.memory_space<vmem>>, %arg2: memref<96x16xf32, #tpu.memory_space<vmem>>, %arg3: memref<1x16xf32, #tpu.memory_space<vmem>>, %arg4: memref<16x16xf32, #tpu.memory_space<vmem>>) attributes {dimension_semantics = [#tpu.dimension_semantics<arbitrary>], iteration_bounds = array<i64: 1>, scalar_prefetch = 0 : i64, scratch_operands = 0 : i64, tpu.core_type = #tpu.core_type<tc>, window_params = [{pipeline_mode = #tpu.pipeline_mode<synchronous>, transform_indices = @transform_0, window_bounds = array<i64: 16, 96>}, {pipeline_mode = #tpu.pipeline_mode<synchronous>, transform_indices = @transform_1, window_bounds = array<i64: 96, 16>}, {pipeline_mode = #tpu.pipeline_mode<synchronous>, transform_indices = @transform_2, window_bounds = array<i64: 1, 16>}, {pipeline_mode = #tpu.pipeline_mode<synchronous>, transform_indices = @transform_3, window_bounds = array<i64: 16, 16>}]} {
    %c0 = arith.constant 0 : index
    %c0_0 = arith.constant 0 : index
    %0 = vector.load %arg1[%c0, %c0_0] : memref<16x96xf32, #tpu.memory_space<vmem>>, vector<16x96xf32>
    %1 = arith.truncf %0 : vector<16x96xf32> to vector<16x96xbf16>
    %c0_1 = arith.constant 0 : index
    %c0_2 = arith.constant 0 : index
    %2 = vector.load %arg2[%c0_1, %c0_2] : memref<96x16xf32, #tpu.memory_space<vmem>>, vector<96x16xf32>
    %3 = arith.truncf %2 : vector<96x16xf32> to vector<96x16xbf16>
    %cst = arith.constant dense<0.000000e+00> : vector<16x16xf32>
    %4 = tpu.matmul %1, %3, %cst {dimension_numbers = #tpu.dot_dimension_numbers<[1], [0], [0], [1], [0, 0, 1, 1], [], []>} : vector<16x96xbf16>, vector<96x16xbf16>, vector<16x16xf32> -> vector<16x16xf32>
    %c0_3 = arith.constant 0 : index
    %c0_4 = arith.constant 0 : index
    %5 = vector.load %arg3[%c0_3, %c0_4] : memref<1x16xf32, #tpu.memory_space<vmem>>, vector<1x16xf32>
    %6 = vector.broadcast %5 : vector<1x16xf32> to vector<16x16xf32>
    %7 = arith.addf %4, %6 : vector<16x16xf32>
    %c0_5 = arith.constant 0 : index
    %c0_6 = arith.constant 0 : index
    %8 = vector.load %arg4[%c0_5, %c0_6] : memref<16x16xf32, #tpu.memory_space<vmem>>, vector<16x16xf32>
    tpu.vector_store %arg4[%c0_5, %c0_6], %7 {strides = array<i32>} : memref<16x16xf32, #tpu.memory_space<vmem>>, vector<16x16xf32>,
    return
  }
  func.func @transform_0(%arg0: i32) -> (i32, i32) {
    %c0_i32 = arith.constant 0 : i32
    %c0_i32_0 = arith.constant 0 : i32
    %c0_i32_1 = arith.constant 0 : i32
    return %c0_i32, %c0_i32_0 : i32, i32
  }
  func.func @transform_1(%arg0: i32) -> (i32, i32) {
    %c0_i32 = arith.constant 0 : i32
    %c0_i32_0 = arith.constant 0 : i32
    %c0_i32_1 = arith.constant 0 : i32
    return %c0_i32, %c0_i32_0 : i32, i32
  }
  func.func @transform_2(%arg0: i32) -> (i32, i32) {
    %c0_i32 = arith.constant 0 : i32
    %c0_i32_0 = arith.constant 0 : i32
    %c0_i32_1 = arith.constant 0 : i32
    return %c0_i32, %c0_i32_0 : i32, i32
  }
  func.func @transform_3(%arg0: i32) -> (i32, i32) {
    %c0_i32 = arith.constant 0 : i32
    %c0_i32_0 = arith.constant 0 : i32
    %c0_i32_1 = arith.constant 0 : i32
    return %c0_i32, %c0_i32_0 : i32, i32
  }
}

module attributes {stable_mosaic.version = 11 : i64} {
  func.func @kern(%arg0: i32, %arg1: memref<1x2x8x16xf32, #tpu.memory_space<vmem>>, %arg2: memref<1x16x32xf32, #tpu.memory_space<vmem>>, %arg3: memref<1x1x32xf32, #tpu.memory_space<vmem>>, %arg4: memref<1x8x8xf32, #tpu.memory_space<vmem>>, %arg5: memref<1x8x1xf32, #tpu.memory_space<vmem>>, %arg6: memref<1x32x32xf32, #tpu.memory_space<vmem>>, %arg7: memref<1x2x8x32xf32, #tpu.memory_space<vmem>>, %arg8: memref<2x8x32xf32, #tpu.memory_space<vmem>>) attributes {dimension_semantics = [#tpu.dimension_semantics<arbitrary>], iteration_bounds = array<i64: 3>, scalar_prefetch = 0 : i64, scratch_operands = 0 : i64, tpu.core_type = #tpu.core_type<tc>, window_params = [{transform_indices = @transform_0, window_bounds = array<i64: 1, 2, 8, 16>}, {transform_indices = @transform_1, window_bounds = array<i64: 1, 16, 32>}, {transform_indices = @transform_2, window_bounds = array<i64: 1, 1, 32>}, {transform_indices = @transform_3, window_bounds = array<i64: 1, 8, 8>}, {transform_indices = @transform_4, window_bounds = array<i64: 1, 8, 1>}, {transform_indices = @transform_5, window_bounds = array<i64: 1, 32, 32>}, {transform_indices = @transform_6, window_bounds = array<i64: 1, 2, 8, 32>}, {pipeline_mode = #tpu.pipeline_mode<synchronous>, transform_indices = @transform_7, window_bounds = array<i64: 2, 8, 32>}]} {
    %c0 = arith.constant 0 : index
    %c0_0 = arith.constant 0 : index
    %c0_1 = arith.constant 0 : index
    %c0_2 = arith.constant 0 : index
    %0 = vector.load %arg1[%c0, %c0_0, %c0_1, %c0_2] : memref<1x2x8x16xf32, #tpu.memory_space<vmem>>, vector<1x2x8x16xf32>
    %1 = vector.shape_cast %0 : vector<1x2x8x16xf32> to vector<2x8x16xf32>
    %2 = arith.truncf %1 : vector<2x8x16xf32> to vector<2x8x16xbf16>
    %c0_3 = arith.constant 0 : index
    %c0_4 = arith.constant 0 : index
    %c0_5 = arith.constant 0 : index
    %3 = vector.load %arg2[%c0_3, %c0_4, %c0_5] : memref<1x16x32xf32, #tpu.memory_space<vmem>>, vector<1x16x32xf32>
    %4 = vector.shape_cast %3 : vector<1x16x32xf32> to vector<16x32xf32>
    %5 = vector.shape_cast %4 : vector<16x32xf32> to vector<1x16x32xf32>
    %6 = vector.shape_cast %5 : vector<1x16x32xf32> to vector<1x16x32xf32>
    %7 = vector.broadcast %6 : vector<1x16x32xf32> to vector<2x16x32xf32>
    %8 = arith.truncf %7 : vector<2x16x32xf32> to vector<2x16x32xbf16>
    "tpu.trace_start"() <{level = 10 : i32, message = "bld,bdu->blu"}> : () -> ()
    %cst = arith.constant dense<0.000000e+00> : vector<2x8x32xf32>
    %9 = tpu.matmul %2, %8, %cst {dimension_numbers = #tpu.dot_dimension_numbers<[2], [1], [1], [2], [0, 0, 0, 1, 1, 2], [0], [0]>} : vector<2x8x16xbf16>, vector<2x16x32xbf16>, vector<2x8x32xf32> -> vector<2x8x32xf32>
    "tpu.trace_stop"() : () -> ()
    %c0_6 = arith.constant 0 : index
    %c0_7 = arith.constant 0 : index
    %c0_8 = arith.constant 0 : index
    %10 = vector.load %arg3[%c0_6, %c0_7, %c0_8] : memref<1x1x32xf32, #tpu.memory_space<vmem>>, vector<1x1x32xf32>
    %11 = vector.shape_cast %10 : vector<1x1x32xf32> to vector<1x32xf32>
    %12 = vector.shape_cast %11 : vector<1x32xf32> to vector<1x1x32xf32>
    %13 = vector.broadcast %12 : vector<1x1x32xf32> to vector<2x8x32xf32>
    %14 = arith.addf %9, %13 : vector<2x8x32xf32>
    %c0_9 = arith.constant 0 : index
    %c0_10 = arith.constant 0 : index
    %c0_11 = arith.constant 0 : index
    %15 = vector.load %arg4[%c0_9, %c0_10, %c0_11] : memref<1x8x8xf32, #tpu.memory_space<vmem>>, vector<1x8x8xf32>
    %16 = vector.shape_cast %15 : vector<1x8x8xf32> to vector<8x8xf32>
    %17 = vector.shape_cast %16 : vector<8x8xf32> to vector<1x8x8xf32>
    %18 = vector.shape_cast %17 : vector<1x8x8xf32> to vector<1x8x8xf32>
    %19 = vector.broadcast %18 : vector<1x8x8xf32> to vector<2x8x8xf32>
    %20 = arith.truncf %19 : vector<2x8x8xf32> to vector<2x8x8xbf16>
    %21 = arith.truncf %14 : vector<2x8x32xf32> to vector<2x8x32xbf16>
    "tpu.trace_start"() <{level = 10 : i32, message = "bvl,blu->bvu"}> : () -> ()
    %cst_12 = arith.constant dense<0.000000e+00> : vector<2x8x32xf32>
    %22 = tpu.matmul %20, %21, %cst_12 {dimension_numbers = #tpu.dot_dimension_numbers<[2], [1], [1], [2], [0, 0, 0, 1, 1, 2], [0], [0]>} : vector<2x8x8xbf16>, vector<2x8x32xbf16>, vector<2x8x32xf32> -> vector<2x8x32xf32>
    "tpu.trace_stop"() : () -> ()
    %c0_13 = arith.constant 0 : index
    %c0_14 = arith.constant 0 : index
    %c0_15 = arith.constant 0 : index
    %23 = vector.load %arg5[%c0_13, %c0_14, %c0_15] : memref<1x8x1xf32, #tpu.memory_space<vmem>>, vector<1x8x1xf32>
    %24 = vector.shape_cast %23 : vector<1x8x1xf32> to vector<8x1xf32>
    %25 = vector.shape_cast %24 : vector<8x1xf32> to vector<1x8x1xf32>
    %26 = vector.broadcast %25 : vector<1x8x1xf32> to vector<2x8x32xf32>
    %27 = arith.addf %22, %26 : vector<2x8x32xf32>
    %c0_16 = arith.constant 0 : index
    %c0_17 = arith.constant 0 : index
    %c0_18 = arith.constant 0 : index
    %c0_19 = arith.constant 0 : index
    %28 = vector.load %arg7[%c0_16, %c0_17, %c0_18, %c0_19] : memref<1x2x8x32xf32, #tpu.memory_space<vmem>>, vector<1x2x8x32xf32>
    %29 = vector.shape_cast %28 : vector<1x2x8x32xf32> to vector<2x8x32xf32>
    %30 = vector.shape_cast %27 : vector<2x8x32xf32> to vector<1x2x8x32xf32>
    tpu.vector_store %arg7[%c0_16, %c0_17, %c0_18, %c0_19], %30 {strides = array<i32>} : memref<1x2x8x32xf32, #tpu.memory_space<vmem>>, vector<1x2x8x32xf32>,
    %c0_i32 = arith.constant 0 : i32
    %31 = arith.cmpi eq, %arg0, %c0_i32 : i32
    %32 = arith.extui %31 : i1 to i32
    %c0_i32_20 = arith.constant 0 : i32
    %33 = arith.cmpi ne, %32, %c0_i32_20 : i32
    scf.if %33 {
      %cst_31 = arith.constant 0.000000e+00 : f32
      %45 = vector.broadcast %cst_31 : f32 to vector<2x8x32xf32>
      %c0_32 = arith.constant 0 : index
      %c0_33 = arith.constant 0 : index
      %c0_34 = arith.constant 0 : index
      %46 = vector.load %arg8[%c0_32, %c0_33, %c0_34] : memref<2x8x32xf32, #tpu.memory_space<vmem>>, vector<2x8x32xf32>
      tpu.vector_store %arg8[%c0_32, %c0_33, %c0_34], %45 {strides = array<i32>} : memref<2x8x32xf32, #tpu.memory_space<vmem>>, vector<2x8x32xf32>,
    } else {
    }
    %c0_21 = arith.constant 0 : index
    %c0_22 = arith.constant 0 : index
    %c0_23 = arith.constant 0 : index
    %34 = vector.load %arg6[%c0_21, %c0_22, %c0_23] : memref<1x32x32xf32, #tpu.memory_space<vmem>>, vector<1x32x32xf32>
    %35 = vector.shape_cast %34 : vector<1x32x32xf32> to vector<32x32xf32>
    %36 = vector.shape_cast %35 : vector<32x32xf32> to vector<1x32x32xf32>
    %37 = vector.shape_cast %36 : vector<1x32x32xf32> to vector<1x32x32xf32>
    %38 = vector.broadcast %37 : vector<1x32x32xf32> to vector<2x32x32xf32>
    %39 = arith.truncf %38 : vector<2x32x32xf32> to vector<2x32x32xbf16>
    %c0_24 = arith.constant 0 : index
    %c0_25 = arith.constant 0 : index
    %c0_26 = arith.constant 0 : index
    %40 = vector.load %arg8[%c0_24, %c0_25, %c0_26] : memref<2x8x32xf32, #tpu.memory_space<vmem>>, vector<2x8x32xf32>
    %41 = arith.truncf %27 : vector<2x8x32xf32> to vector<2x8x32xbf16>
    "tpu.trace_start"() <{level = 10 : i32, message = "bvu,buo->bvo"}> : () -> ()
    %cst_27 = arith.constant dense<0.000000e+00> : vector<2x8x32xf32>
    %42 = tpu.matmul %41, %39, %cst_27 {dimension_numbers = #tpu.dot_dimension_numbers<[2], [1], [1], [2], [0, 0, 0, 1, 1, 2], [0], [0]>} : vector<2x8x32xbf16>, vector<2x32x32xbf16>, vector<2x8x32xf32> -> vector<2x8x32xf32>
    "tpu.trace_stop"() : () -> ()
    %43 = arith.addf %40, %42 : vector<2x8x32xf32>
    %c0_28 = arith.constant 0 : index
    %c0_29 = arith.constant 0 : index
    %c0_30 = arith.constant 0 : index
    %44 = vector.load %arg8[%c0_28, %c0_29, %c0_30] : memref<2x8x32xf32, #tpu.memory_space<vmem>>, vector<2x8x32xf32>
    tpu.vector_store %arg8[%c0_28, %c0_29, %c0_30], %43 {strides = array<i32>} : memref<2x8x32xf32, #tpu.memory_space<vmem>>, vector<2x8x32xf32>,
    return
  }
  func.func @transform_0(%arg0: i32) -> (i32, i32, i32, i32) {
    %c0_i32 = arith.constant 0 : i32
    %c0_i32_0 = arith.constant 0 : i32
    %c0_i32_1 = arith.constant 0 : i32
    %c0_i32_2 = arith.constant 0 : i32
    return %arg0, %c0_i32, %c0_i32_0, %c0_i32_1 : i32, i32, i32, i32
  }
  func.func @transform_1(%arg0: i32) -> (i32, i32, i32) {
    %c0_i32 = arith.constant 0 : i32
    %c0_i32_0 = arith.constant 0 : i32
    %c0_i32_1 = arith.constant 0 : i32
    return %arg0, %c0_i32, %c0_i32_0 : i32, i32, i32
  }
  func.func @transform_2(%arg0: i32) -> (i32, i32, i32) {
    %c0_i32 = arith.constant 0 : i32
    %c0_i32_0 = arith.constant 0 : i32
    %c0_i32_1 = arith.constant 0 : i32
    return %arg0, %c0_i32, %c0_i32_0 : i32, i32, i32
  }
  func.func @transform_3(%arg0: i32) -> (i32, i32, i32) {
    %c0_i32 = arith.constant 0 : i32
    %c0_i32_0 = arith.constant 0 : i32
    %c0_i32_1 = arith.constant 0 : i32
    return %arg0, %c0_i32, %c0_i32_0 : i32, i32, i32
  }
  func.func @transform_4(%arg0: i32) -> (i32, i32, i32) {
    %c0_i32 = arith.constant 0 : i32
    %c0_i32_0 = arith.constant 0 : i32
    %c0_i32_1 = arith.constant 0 : i32
    return %arg0, %c0_i32, %c0_i32_0 : i32, i32, i32
  }
  func.func @transform_5(%arg0: i32) -> (i32, i32, i32) {
    %c0_i32 = arith.constant 0 : i32
    %c0_i32_0 = arith.constant 0 : i32
    %c0_i32_1 = arith.constant 0 : i32
    return %arg0, %c0_i32, %c0_i32_0 : i32, i32, i32
  }
  func.func @transform_6(%arg0: i32) -> (i32, i32, i32, i32) {
    %c0_i32 = arith.constant 0 : i32
    %c0_i32_0 = arith.constant 0 : i32
    %c0_i32_1 = arith.constant 0 : i32
    %c0_i32_2 = arith.constant 0 : i32
    return %arg0, %c0_i32, %c0_i32_0, %c0_i32_1 : i32, i32, i32, i32
  }
  func.func @transform_7(%arg0: i32) -> (i32, i32, i32) {
    %c0_i32 = arith.constant 0 : i32
    %c0_i32_0 = arith.constant 0 : i32
    %c0_i32_1 = arith.constant 0 : i32
    %c0_i32_2 = arith.constant 0 : i32
    return %c0_i32, %c0_i32_0, %c0_i32_1 : i32, i32, i32
  }
}

module attributes {stable_mosaic.version = 11 : i64} {
  func.func @kern(%arg0: i32, %arg1: memref<1x16x32xf32, #tpu.memory_space<vmem>>, %arg2: memref<1x16x32xf32, #tpu.memory_space<vmem>>, %arg3: memref<1x16x1xf32, #tpu.memory_space<vmem>>, %arg4: memref<1x16x1xf32, #tpu.memory_space<vmem>>, %arg5: memref<16x32xf32, #tpu.memory_space<vmem>>, %arg6: memref<1x16x32xf32, #tpu.memory_space<vmem>>, %arg7: memref<1x32x32xf32, #tpu.memory_space<vmem>>, %arg8: memref<1x32x32xf32, #tpu.memory_space<vmem>>, %arg9: memref<1x32x32xf32, #tpu.memory_space<vmem>>, %arg10: memref<1x1x32xf32, #tpu.memory_space<vmem>>, %arg11: memref<1x32x32xf32, #tpu.memory_space<vmem>>, %arg12: memref<1x1x32xf32, #tpu.memory_space<vmem>>, %arg13: memref<1x16x32xf32, #tpu.memory_space<vmem>>, %arg14: memref<16x32xf32, #tpu.memory_space<vmem>>) attributes {dimension_semantics = [#tpu.dimension_semantics<arbitrary>], iteration_bounds = array<i64: 3>, scalar_prefetch = 0 : i64, scratch_operands = 0 : i64, tpu.core_type = #tpu.core_type<tc>, window_params = [{transform_indices = @transform_0, window_bounds = array<i64: 1, 16, 32>}, {transform_indices = @transform_1, window_bounds = array<i64: 1, 16, 32>}, {transform_indices = @transform_2, window_bounds = array<i64: 1, 16, 1>}, {transform_indices = @transform_3, window_bounds = array<i64: 1, 16, 1>}, {pipeline_mode = #tpu.pipeline_mode<synchronous>, transform_indices = @transform_4, window_bounds = array<i64: 16, 32>}, {transform_indices = @transform_5, window_bounds = array<i64: 1, 16, 32>}, {transform_indices = @transform_6, window_bounds = array<i64: 1, 32, 32>}, {transform_indices = @transform_7, window_bounds = array<i64: 1, 32, 32>}, {transform_indices = @transform_8, window_bounds = array<i64: 1, 32, 32>}, {transform_indices = @transform_9, window_bounds = array<i64: 1, 1, 32>}, {transform_indices = @transform_10, window_bounds = array<i64: 1, 32, 32>}, {transform_indices = @transform_11, window_bounds = array<i64: 1, 1, 32>}, {transform_indices = @transform_12, window_bounds = array<i64: 1, 16, 32>}, {pipeline_mode = #tpu.pipeline_mode<synchronous>, transform_indices = @transform_13, window_bounds = array<i64: 16, 32>}]} {
    %c0 = arith.constant 0 : index
    %c0_0 = arith.constant 0 : index
    %c0_1 = arith.constant 0 : index
    %0 = vector.load %arg1[%c0, %c0_0, %c0_1] : memref<1x16x32xf32, #tpu.memory_space<vmem>>, vector<1x16x32xf32>
    %1 = vector.shape_cast %0 : vector<1x16x32xf32> to vector<16x32xf32>
    %c0_2 = arith.constant 0 : index
    %c0_3 = arith.constant 0 : index
    %c0_4 = arith.constant 0 : index
    %2 = vector.load %arg3[%c0_2, %c0_3, %c0_4] : memref<1x16x1xf32, #tpu.memory_space<vmem>>, vector<1x16x1xf32>
    %3 = vector.shape_cast %2 : vector<1x16x1xf32> to vector<16x1xf32>
    %4 = vector.broadcast %3 : vector<16x1xf32> to vector<16x32xf32>
    %5 = arith.mulf %4, %1 : vector<16x32xf32>
    %c0_5 = arith.constant 0 : index
    %c0_6 = arith.constant 0 : index
    %c0_7 = arith.constant 0 : index
    %6 = vector.load %arg4[%c0_5, %c0_6, %c0_7] : memref<1x16x1xf32, #tpu.memory_space<vmem>>, vector<1x16x1xf32>
    %7 = vector.shape_cast %6 : vector<1x16x1xf32> to vector<16x1xf32>
    %c0_8 = arith.constant 0 : index
    %c0_9 = arith.constant 0 : index
    %c0_10 = arith.constant 0 : index
    %8 = vector.load %arg2[%c0_8, %c0_9, %c0_10] : memref<1x16x32xf32, #tpu.memory_space<vmem>>, vector<1x16x32xf32>
    %9 = vector.shape_cast %8 : vector<1x16x32xf32> to vector<16x32xf32>
    %10 = vector.broadcast %7 : vector<16x1xf32> to vector<16x32xf32>
    %11 = arith.mulf %10, %9 : vector<16x32xf32>
    %12 = arith.addf %5, %11 : vector<16x32xf32>
    %13 = arith.truncf %12 : vector<16x32xf32> to vector<16x32xbf16>
    %c0_11 = arith.constant 0 : index
    %c0_12 = arith.constant 0 : index
    %c0_13 = arith.constant 0 : index
    %14 = vector.load %arg7[%c0_11, %c0_12, %c0_13] : memref<1x32x32xf32, #tpu.memory_space<vmem>>, vector<1x32x32xf32>
    %15 = vector.shape_cast %14 : vector<1x32x32xf32> to vector<32x32xf32>
    %16 = arith.truncf %15 : vector<32x32xf32> to vector<32x32xbf16>
    %cst = arith.constant dense<0.000000e+00> : vector<16x32xf32>
    %17 = tpu.matmul %13, %16, %cst {dimension_numbers = #tpu.dot_dimension_numbers<[1], [0], [0], [1], [0, 0, 1, 1], [], []>} : vector<16x32xbf16>, vector<32x32xbf16>, vector<16x32xf32> -> vector<16x32xf32>
    %c0_14 = arith.constant 0 : index
    %c0_15 = arith.constant 0 : index
    %18 = vector.load %arg5[%c0_14, %c0_15] : memref<16x32xf32, #tpu.memory_space<vmem>>, vector<16x32xf32>
    %19 = arith.truncf %18 : vector<16x32xf32> to vector<16x32xbf16>
    %c0_16 = arith.constant 0 : index
    %c0_17 = arith.constant 0 : index
    %c0_18 = arith.constant 0 : index
    %20 = vector.load %arg8[%c0_16, %c0_17, %c0_18] : memref<1x32x32xf32, #tpu.memory_space<vmem>>, vector<1x32x32xf32>
    %21 = vector.shape_cast %20 : vector<1x32x32xf32> to vector<32x32xf32>
    %22 = arith.truncf %21 : vector<32x32xf32> to vector<32x32xbf16>
    %cst_19 = arith.constant dense<0.000000e+00> : vector<16x32xf32>
    %23 = tpu.matmul %19, %22, %cst_19 {dimension_numbers = #tpu.dot_dimension_numbers<[1], [0], [0], [1], [0, 0, 1, 1], [], []>} : vector<16x32xbf16>, vector<32x32xbf16>, vector<16x32xf32> -> vector<16x32xf32>
    %24 = arith.addf %17, %23 : vector<16x32xf32>
    %c0_20 = arith.constant 0 : index
    %c0_21 = arith.constant 0 : index
    %c0_22 = arith.constant 0 : index
    %25 = vector.load %arg6[%c0_20, %c0_21, %c0_22] : memref<1x16x32xf32, #tpu.memory_space<vmem>>, vector<1x16x32xf32>
    %26 = vector.shape_cast %25 : vector<1x16x32xf32> to vector<16x32xf32>
    %27 = arith.truncf %26 : vector<16x32xf32> to vector<16x32xbf16>
    %c0_23 = arith.constant 0 : index
    %c0_24 = arith.constant 0 : index
    %c0_25 = arith.constant 0 : index
    %28 = vector.load %arg9[%c0_23, %c0_24, %c0_25] : memref<1x32x32xf32, #tpu.memory_space<vmem>>, vector<1x32x32xf32>
    %29 = vector.shape_cast %28 : vector<1x32x32xf32> to vector<32x32xf32>
    %30 = arith.truncf %29 : vector<32x32xf32> to vector<32x32xbf16>
    %cst_26 = arith.constant dense<0.000000e+00> : vector<16x32xf32>
    %31 = tpu.matmul %27, %30, %cst_26 {dimension_numbers = #tpu.dot_dimension_numbers<[1], [0], [0], [1], [0, 0, 1, 1], [], []>} : vector<16x32xbf16>, vector<32x32xbf16>, vector<16x32xf32> -> vector<16x32xf32>
    %32 = arith.addf %24, %31 : vector<16x32xf32>
    %c0_27 = arith.constant 0 : index
    %c0_28 = arith.constant 0 : index
    %c0_29 = arith.constant 0 : index
    %33 = vector.load %arg10[%c0_27, %c0_28, %c0_29] : memref<1x1x32xf32, #tpu.memory_space<vmem>>, vector<1x1x32xf32>
    %34 = vector.shape_cast %33 : vector<1x1x32xf32> to vector<1x32xf32>
    %35 = vector.broadcast %34 : vector<1x32xf32> to vector<16x32xf32>
    %36 = arith.addf %32, %35 : vector<16x32xf32>
    %cst_30 = arith.constant 0.000000e+00 : f32
    %37 = vector.broadcast %cst_30 : f32 to vector<16x32xf32>
    %38 = arith.maximumf %36, %37 : vector<16x32xf32>
    %39 = arith.truncf %38 : vector<16x32xf32> to vector<16x32xbf16>
    %c0_31 = arith.constant 0 : index
    %c0_32 = arith.constant 0 : index
    %c0_33 = arith.constant 0 : index
    %40 = vector.load %arg11[%c0_31, %c0_32, %c0_33] : memref<1x32x32xf32, #tpu.memory_space<vmem>>, vector<1x32x32xf32>
    %41 = vector.shape_cast %40 : vector<1x32x32xf32> to vector<32x32xf32>
    %42 = arith.truncf %41 : vector<32x32xf32> to vector<32x32xbf16>
    %cst_34 = arith.constant dense<0.000000e+00> : vector<16x32xf32>
    %43 = tpu.matmul %39, %42, %cst_34 {dimension_numbers = #tpu.dot_dimension_numbers<[1], [0], [0], [1], [0, 0, 1, 1], [], []>} : vector<16x32xbf16>, vector<32x32xbf16>, vector<16x32xf32> -> vector<16x32xf32>
    %c0_35 = arith.constant 0 : index
    %c0_36 = arith.constant 0 : index
    %c0_37 = arith.constant 0 : index
    %44 = vector.load %arg12[%c0_35, %c0_36, %c0_37] : memref<1x1x32xf32, #tpu.memory_space<vmem>>, vector<1x1x32xf32>
    %45 = vector.shape_cast %44 : vector<1x1x32xf32> to vector<1x32xf32>
    %46 = vector.broadcast %45 : vector<1x32xf32> to vector<16x32xf32>
    %47 = arith.addf %43, %46 : vector<16x32xf32>
    %c0_38 = arith.constant 0 : index
    %c0_39 = arith.constant 0 : index
    %c0_40 = arith.constant 0 : index
    %48 = vector.load %arg13[%c0_38, %c0_39, %c0_40] : memref<1x16x32xf32, #tpu.memory_space<vmem>>, vector<1x16x32xf32>
    %49 = vector.shape_cast %48 : vector<1x16x32xf32> to vector<16x32xf32>
    %50 = vector.shape_cast %47 : vector<16x32xf32> to vector<1x16x32xf32>
    tpu.vector_store %arg13[%c0_38, %c0_39, %c0_40], %50 {strides = array<i32>} : memref<1x16x32xf32, #tpu.memory_space<vmem>>, vector<1x16x32xf32>,
    %51 = arith.subf %47, %1 : vector<16x32xf32>
    %c0_i32 = arith.constant 0 : i32
    %52 = arith.cmpi eq, %arg0, %c0_i32 : i32
    %53 = arith.extui %52 : i1 to i32
    %c0_i32_41 = arith.constant 0 : i32
    %54 = arith.cmpi ne, %53, %c0_i32_41 : i32
    scf.if %54 {
      %cst_46 = arith.constant 0.000000e+00 : f32
      %59 = vector.broadcast %cst_46 : f32 to vector<16x32xf32>
      %c0_47 = arith.constant 0 : index
      %c0_48 = arith.constant 0 : index
      %60 = vector.load %arg14[%c0_47, %c0_48] : memref<16x32xf32, #tpu.memory_space<vmem>>, vector<16x32xf32>
      tpu.vector_store %arg14[%c0_47, %c0_48], %59 {strides = array<i32>} : memref<16x32xf32, #tpu.memory_space<vmem>>, vector<16x32xf32>,
    } else {
    }
    %c0_42 = arith.constant 0 : index
    %c0_43 = arith.constant 0 : index
    %55 = vector.load %arg14[%c0_42, %c0_43] : memref<16x32xf32, #tpu.memory_space<vmem>>, vector<16x32xf32>
    %56 = arith.mulf %51, %51 : vector<16x32xf32>
    %57 = arith.addf %55, %56 : vector<16x32xf32>
    %c0_44 = arith.constant 0 : index
    %c0_45 = arith.constant 0 : index
    %58 = vector.load %arg14[%c0_44, %c0_45] : memref<16x32xf32, #tpu.memory_space<vmem>>, vector<16x32xf32>
    tpu.vector_store %arg14[%c0_44, %c0_45], %57 {strides = array<i32>} : memref<16x32xf32, #tpu.memory_space<vmem>>, vector<16x32xf32>,
    return
  }
  func.func @transform_0(%arg0: i32) -> (i32, i32, i32) {
    %c0_i32 = arith.constant 0 : i32
    %c0_i32_0 = arith.constant 0 : i32
    %c0_i32_1 = arith.constant 0 : i32
    return %arg0, %c0_i32, %c0_i32_0 : i32, i32, i32
  }
  func.func @transform_1(%arg0: i32) -> (i32, i32, i32) {
    %c0_i32 = arith.constant 0 : i32
    %c0_i32_0 = arith.constant 0 : i32
    %c0_i32_1 = arith.constant 0 : i32
    return %arg0, %c0_i32, %c0_i32_0 : i32, i32, i32
  }
  func.func @transform_2(%arg0: i32) -> (i32, i32, i32) {
    %c0_i32 = arith.constant 0 : i32
    %c0_i32_0 = arith.constant 0 : i32
    %c0_i32_1 = arith.constant 0 : i32
    return %arg0, %c0_i32, %c0_i32_0 : i32, i32, i32
  }
  func.func @transform_3(%arg0: i32) -> (i32, i32, i32) {
    %c0_i32 = arith.constant 0 : i32
    %c0_i32_0 = arith.constant 0 : i32
    %c0_i32_1 = arith.constant 0 : i32
    return %arg0, %c0_i32, %c0_i32_0 : i32, i32, i32
  }
  func.func @transform_4(%arg0: i32) -> (i32, i32) {
    %c0_i32 = arith.constant 0 : i32
    %c0_i32_0 = arith.constant 0 : i32
    %c0_i32_1 = arith.constant 0 : i32
    return %c0_i32, %c0_i32_0 : i32, i32
  }
  func.func @transform_5(%arg0: i32) -> (i32, i32, i32) {
    %c0_i32 = arith.constant 0 : i32
    %c0_i32_0 = arith.constant 0 : i32
    %c0_i32_1 = arith.constant 0 : i32
    return %arg0, %c0_i32, %c0_i32_0 : i32, i32, i32
  }
  func.func @transform_6(%arg0: i32) -> (i32, i32, i32) {
    %c0_i32 = arith.constant 0 : i32
    %c0_i32_0 = arith.constant 0 : i32
    %c0_i32_1 = arith.constant 0 : i32
    return %arg0, %c0_i32, %c0_i32_0 : i32, i32, i32
  }
  func.func @transform_7(%arg0: i32) -> (i32, i32, i32) {
    %c0_i32 = arith.constant 0 : i32
    %c0_i32_0 = arith.constant 0 : i32
    %c0_i32_1 = arith.constant 0 : i32
    return %arg0, %c0_i32, %c0_i32_0 : i32, i32, i32
  }
  func.func @transform_8(%arg0: i32) -> (i32, i32, i32) {
    %c0_i32 = arith.constant 0 : i32
    %c0_i32_0 = arith.constant 0 : i32
    %c0_i32_1 = arith.constant 0 : i32
    return %arg0, %c0_i32, %c0_i32_0 : i32, i32, i32
  }
  func.func @transform_9(%arg0: i32) -> (i32, i32, i32) {
    %c0_i32 = arith.constant 0 : i32
    %c0_i32_0 = arith.constant 0 : i32
    %c0_i32_1 = arith.constant 0 : i32
    return %arg0, %c0_i32, %c0_i32_0 : i32, i32, i32
  }
  func.func @transform_10(%arg0: i32) -> (i32, i32, i32) {
    %c0_i32 = arith.constant 0 : i32
    %c0_i32_0 = arith.constant 0 : i32
    %c0_i32_1 = arith.constant 0 : i32
    return %arg0, %c0_i32, %c0_i32_0 : i32, i32, i32
  }
  func.func @transform_11(%arg0: i32) -> (i32, i32, i32) {
    %c0_i32 = arith.constant 0 : i32
    %c0_i32_0 = arith.constant 0 : i32
    %c0_i32_1 = arith.constant 0 : i32
    return %arg0, %c0_i32, %c0_i32_0 : i32, i32, i32
  }
  func.func @transform_12(%arg0: i32) -> (i32, i32, i32) {
    %c0_i32 = arith.constant 0 : i32
    %c0_i32_0 = arith.constant 0 : i32
    %c0_i32_1 = arith.constant 0 : i32
    return %arg0, %c0_i32, %c0_i32_0 : i32, i32, i32
  }
  func.func @transform_13(%arg0: i32) -> (i32, i32) {
    %c0_i32 = arith.constant 0 : i32
    %c0_i32_0 = arith.constant 0 : i32
    %c0_i32_1 = arith.constant 0 : i32
    return %c0_i32, %c0_i32_0 : i32, i32
  }
}

module attributes {stable_mosaic.version = 11 : i64} {
  func.func @_linear_kernel(%arg0: i32, %arg1: memref<12x32xf32, #tpu.memory_space<vmem>>, %arg2: memref<32x96xf32, #tpu.memory_space<vmem>>, %arg3: memref<1x96xf32, #tpu.memory_space<vmem>>, %arg4: memref<12x96xf32, #tpu.memory_space<vmem>>) attributes {dimension_semantics = [#tpu.dimension_semantics<arbitrary>], iteration_bounds = array<i64: 1>, scalar_prefetch = 0 : i64, scratch_operands = 0 : i64, tpu.core_type = #tpu.core_type<tc>, window_params = [{pipeline_mode = #tpu.pipeline_mode<synchronous>, transform_indices = @transform_0, window_bounds = array<i64: 12, 32>}, {pipeline_mode = #tpu.pipeline_mode<synchronous>, transform_indices = @transform_1, window_bounds = array<i64: 32, 96>}, {pipeline_mode = #tpu.pipeline_mode<synchronous>, transform_indices = @transform_2, window_bounds = array<i64: 1, 96>}, {pipeline_mode = #tpu.pipeline_mode<synchronous>, transform_indices = @transform_3, window_bounds = array<i64: 12, 96>}]} {
    %c0 = arith.constant 0 : index
    %c0_0 = arith.constant 0 : index
    %0 = vector.load %arg1[%c0, %c0_0] : memref<12x32xf32, #tpu.memory_space<vmem>>, vector<12x32xf32>
    %1 = arith.truncf %0 : vector<12x32xf32> to vector<12x32xbf16>
    %c0_1 = arith.constant 0 : index
    %c0_2 = arith.constant 0 : index
    %2 = vector.load %arg2[%c0_1, %c0_2] : memref<32x96xf32, #tpu.memory_space<vmem>>, vector<32x96xf32>
    %3 = arith.truncf %2 : vector<32x96xf32> to vector<32x96xbf16>
    %cst = arith.constant dense<0.000000e+00> : vector<12x96xf32>
    %4 = tpu.matmul %1, %3, %cst {dimension_numbers = #tpu.dot_dimension_numbers<[1], [0], [0], [1], [0, 0, 1, 1], [], []>} : vector<12x32xbf16>, vector<32x96xbf16>, vector<12x96xf32> -> vector<12x96xf32>
    %c0_3 = arith.constant 0 : index
    %c0_4 = arith.constant 0 : index
    %5 = vector.load %arg3[%c0_3, %c0_4] : memref<1x96xf32, #tpu.memory_space<vmem>>, vector<1x96xf32>
    %6 = vector.broadcast %5 : vector<1x96xf32> to vector<12x96xf32>
    %7 = arith.addf %4, %6 : vector<12x96xf32>
    %c0_5 = arith.constant 0 : index
    %c0_6 = arith.constant 0 : index
    %8 = vector.load %arg4[%c0_5, %c0_6] : memref<12x96xf32, #tpu.memory_space<vmem>>, vector<12x96xf32>
    tpu.vector_store %arg4[%c0_5, %c0_6], %7 {strides = array<i32>} : memref<12x96xf32, #tpu.memory_space<vmem>>, vector<12x96xf32>,
    return
  }
  func.func @transform_0(%arg0: i32) -> (i32, i32) {
    %c0_i32 = arith.constant 0 : i32
    %c0_i32_0 = arith.constant 0 : i32
    %c0_i32_1 = arith.constant 0 : i32
    return %c0_i32, %c0_i32_0 : i32, i32
  }
  func.func @transform_1(%arg0: i32) -> (i32, i32) {
    %c0_i32 = arith.constant 0 : i32
    %c0_i32_0 = arith.constant 0 : i32
    %c0_i32_1 = arith.constant 0 : i32
    return %c0_i32, %c0_i32_0 : i32, i32
  }
  func.func @transform_2(%arg0: i32) -> (i32, i32) {
    %c0_i32 = arith.constant 0 : i32
    %c0_i32_0 = arith.constant 0 : i32
    %c0_i32_1 = arith.constant 0 : i32
    return %c0_i32, %c0_i32_0 : i32, i32
  }
  func.func @transform_3(%arg0: i32) -> (i32, i32) {
    %c0_i32 = arith.constant 0 : i32
    %c0_i32_0 = arith.constant 0 : i32
    %c0_i32_1 = arith.constant 0 : i32
    return %c0_i32, %c0_i32_0 : i32, i32
  }
}

module attributes {stable_mosaic.version = 11 : i64} {
  func.func @_mha_kernel(%arg0: i32, %arg1: memref<4x6x16xf32, #tpu.memory_space<vmem>>, %arg2: memref<4x6x16xf32, #tpu.memory_space<vmem>>, %arg3: memref<4x6x16xf32, #tpu.memory_space<vmem>>, %arg4: memref<4x6x16xf32, #tpu.memory_space<vmem>>) attributes {dimension_semantics = [#tpu.dimension_semantics<arbitrary>], iteration_bounds = array<i64: 1>, scalar_prefetch = 0 : i64, scratch_operands = 0 : i64, tpu.core_type = #tpu.core_type<tc>, window_params = [{pipeline_mode = #tpu.pipeline_mode<synchronous>, transform_indices = @transform_0, window_bounds = array<i64: 4, 6, 16>}, {pipeline_mode = #tpu.pipeline_mode<synchronous>, transform_indices = @transform_1, window_bounds = array<i64: 4, 6, 16>}, {pipeline_mode = #tpu.pipeline_mode<synchronous>, transform_indices = @transform_2, window_bounds = array<i64: 4, 6, 16>}, {pipeline_mode = #tpu.pipeline_mode<synchronous>, transform_indices = @transform_3, window_bounds = array<i64: 4, 6, 16>}]} {
    %c0 = arith.constant 0 : index
    %c0_0 = arith.constant 0 : index
    %c0_1 = arith.constant 0 : index
    %0 = vector.load %arg1[%c0, %c0_0, %c0_1] : memref<4x6x16xf32, #tpu.memory_space<vmem>>, vector<4x6x16xf32>
    %c0_2 = arith.constant 0 : index
    %c0_3 = arith.constant 0 : index
    %c0_4 = arith.constant 0 : index
    %1 = vector.load %arg2[%c0_2, %c0_3, %c0_4] : memref<4x6x16xf32, #tpu.memory_space<vmem>>, vector<4x6x16xf32>
    %c0_5 = arith.constant 0 : index
    %c0_6 = arith.constant 0 : index
    %c0_7 = arith.constant 0 : index
    %2 = vector.load %arg3[%c0_5, %c0_6, %c0_7] : memref<4x6x16xf32, #tpu.memory_space<vmem>>, vector<4x6x16xf32>
    %3 = arith.truncf %0 : vector<4x6x16xf32> to vector<4x6x16xbf16>
    %4 = arith.truncf %1 : vector<4x6x16xf32> to vector<4x6x16xbf16>
    "tpu.trace_start"() <{level = 10 : i32, message = "nqd,nkd->nqk"}> : () -> ()
    %cst = arith.constant dense<0.000000e+00> : vector<4x6x6xf32>
    %5 = tpu.matmul %3, %4, %cst {dimension_numbers = #tpu.dot_dimension_numbers<[2], [2], [1], [1], [0, 0, 0, 1, 1, 1], [0], [0]>} : vector<4x6x16xbf16>, vector<4x6x16xbf16>, vector<4x6x6xf32> -> vector<4x6x6xf32>
    "tpu.trace_stop"() : () -> ()
    %cst_8 = arith.constant 2.500000e-01 : f32
    %6 = vector.broadcast %cst_8 : f32 to vector<4x6x6xf32>
    %7 = arith.mulf %5, %6 : vector<4x6x6xf32>
    %cst_9 = arith.constant dense<0xFF800000> : vector<4x6xf32>
    %8 = vector.multi_reduction <maximumf>, %7, %cst_9 [2] : vector<4x6x6xf32> to vector<4x6xf32>
    %9 = vector.shape_cast %8 : vector<4x6xf32> to vector<4x6x1xf32>
    %10 = vector.broadcast %9 : vector<4x6x1xf32> to vector<4x6x6xf32>
    %11 = arith.subf %7, %10 : vector<4x6x6xf32>
    %12 = math.exp %11 : vector<4x6x6xf32>
    %cst_10 = arith.constant dense<0.000000e+00> : vector<4x6xf32>
    %13 = vector.multi_reduction <add>, %12, %cst_10 [2] : vector<4x6x6xf32> to vector<4x6xf32>
    %14 = vector.shape_cast %13 : vector<4x6xf32> to vector<4x6x1xf32>
    %15 = tpu.reciprocal %14 {approx = true} : vector<4x6x1xf32> -> vector<4x6x1xf32>
    %16 = vector.broadcast %15 : vector<4x6x1xf32> to vector<4x6x6xf32>
    %17 = arith.mulf %12, %16 : vector<4x6x6xf32>
    %18 = arith.truncf %17 : vector<4x6x6xf32> to vector<4x6x6xbf16>
    %19 = arith.truncf %2 : vector<4x6x16xf32> to vector<4x6x16xbf16>
    "tpu.trace_start"() <{level = 10 : i32, message = "nqk,nkd->nqd"}> : () -> ()
    %cst_11 = arith.constant dense<0.000000e+00> : vector<4x6x16xf32>
    %20 = tpu.matmul %18, %19, %cst_11 {dimension_numbers = #tpu.dot_dimension_numbers<[2], [1], [1], [2], [0, 0, 0, 1, 1, 2], [0], [0]>} : vector<4x6x6xbf16>, vector<4x6x16xbf16>, vector<4x6x16xf32> -> vector<4x6x16xf32>
    "tpu.trace_stop"() : () -> ()
    %c0_12 = arith.constant 0 : index
    %c0_13 = arith.constant 0 : index
    %c0_14 = arith.constant 0 : index
    %21 = vector.load %arg4[%c0_12, %c0_13, %c0_14] : memref<4x6x16xf32, #tpu.memory_space<vmem>>, vector<4x6x16xf32>
    tpu.vector_store %arg4[%c0_12, %c0_13, %c0_14], %20 {strides = array<i32>} : memref<4x6x16xf32, #tpu.memory_space<vmem>>, vector<4x6x16xf32>,
    return
  }
  func.func @transform_0(%arg0: i32) -> (i32, i32, i32) {
    %c0_i32 = arith.constant 0 : i32
    %c0_i32_0 = arith.constant 0 : i32
    %c0_i32_1 = arith.constant 0 : i32
    %c0_i32_2 = arith.constant 0 : i32
    return %c0_i32, %c0_i32_0, %c0_i32_1 : i32, i32, i32
  }
  func.func @transform_1(%arg0: i32) -> (i32, i32, i32) {
    %c0_i32 = arith.constant 0 : i32
    %c0_i32_0 = arith.constant 0 : i32
    %c0_i32_1 = arith.constant 0 : i32
    %c0_i32_2 = arith.constant 0 : i32
    return %c0_i32, %c0_i32_0, %c0_i32_1 : i32, i32, i32
  }
  func.func @transform_2(%arg0: i32) -> (i32, i32, i32) {
    %c0_i32 = arith.constant 0 : i32
    %c0_i32_0 = arith.constant 0 : i32
    %c0_i32_1 = arith.constant 0 : i32
    %c0_i32_2 = arith.constant 0 : i32
    return %c0_i32, %c0_i32_0, %c0_i32_1 : i32, i32, i32
  }
  func.func @transform_3(%arg0: i32) -> (i32, i32, i32) {
    %c0_i32 = arith.constant 0 : i32
    %c0_i32_0 = arith.constant 0 : i32
    %c0_i32_1 = arith.constant 0 : i32
    %c0_i32_2 = arith.constant 0 : i32
    return %c0_i32, %c0_i32_0, %c0_i32_1 : i32, i32, i32
  }
}

module attributes {stable_mosaic.version = 11 : i64} {
  func.func @_linear_kernel(%arg0: i32, %arg1: memref<12x32xf32, #tpu.memory_space<vmem>>, %arg2: memref<32x32xf32, #tpu.memory_space<vmem>>, %arg3: memref<1x32xf32, #tpu.memory_space<vmem>>, %arg4: memref<12x32xf32, #tpu.memory_space<vmem>>) attributes {dimension_semantics = [#tpu.dimension_semantics<arbitrary>], iteration_bounds = array<i64: 1>, scalar_prefetch = 0 : i64, scratch_operands = 0 : i64, tpu.core_type = #tpu.core_type<tc>, window_params = [{pipeline_mode = #tpu.pipeline_mode<synchronous>, transform_indices = @transform_0, window_bounds = array<i64: 12, 32>}, {pipeline_mode = #tpu.pipeline_mode<synchronous>, transform_indices = @transform_1, window_bounds = array<i64: 32, 32>}, {pipeline_mode = #tpu.pipeline_mode<synchronous>, transform_indices = @transform_2, window_bounds = array<i64: 1, 32>}, {pipeline_mode = #tpu.pipeline_mode<synchronous>, transform_indices = @transform_3, window_bounds = array<i64: 12, 32>}]} {
    %c0 = arith.constant 0 : index
    %c0_0 = arith.constant 0 : index
    %0 = vector.load %arg1[%c0, %c0_0] : memref<12x32xf32, #tpu.memory_space<vmem>>, vector<12x32xf32>
    %1 = arith.truncf %0 : vector<12x32xf32> to vector<12x32xbf16>
    %c0_1 = arith.constant 0 : index
    %c0_2 = arith.constant 0 : index
    %2 = vector.load %arg2[%c0_1, %c0_2] : memref<32x32xf32, #tpu.memory_space<vmem>>, vector<32x32xf32>
    %3 = arith.truncf %2 : vector<32x32xf32> to vector<32x32xbf16>
    %cst = arith.constant dense<0.000000e+00> : vector<12x32xf32>
    %4 = tpu.matmul %1, %3, %cst {dimension_numbers = #tpu.dot_dimension_numbers<[1], [0], [0], [1], [0, 0, 1, 1], [], []>} : vector<12x32xbf16>, vector<32x32xbf16>, vector<12x32xf32> -> vector<12x32xf32>
    %c0_3 = arith.constant 0 : index
    %c0_4 = arith.constant 0 : index
    %5 = vector.load %arg3[%c0_3, %c0_4] : memref<1x32xf32, #tpu.memory_space<vmem>>, vector<1x32xf32>
    %6 = vector.broadcast %5 : vector<1x32xf32> to vector<12x32xf32>
    %7 = arith.addf %4, %6 : vector<12x32xf32>
    %c0_5 = arith.constant 0 : index
    %c0_6 = arith.constant 0 : index
    %8 = vector.load %arg4[%c0_5, %c0_6] : memref<12x32xf32, #tpu.memory_space<vmem>>, vector<12x32xf32>
    tpu.vector_store %arg4[%c0_5, %c0_6], %7 {strides = array<i32>} : memref<12x32xf32, #tpu.memory_space<vmem>>, vector<12x32xf32>,
    return
  }
  func.func @transform_0(%arg0: i32) -> (i32, i32) {
    %c0_i32 = arith.constant 0 : i32
    %c0_i32_0 = arith.constant 0 : i32
    %c0_i32_1 = arith.constant 0 : i32
    return %c0_i32, %c0_i32_0 : i32, i32
  }
  func.func @transform_1(%arg0: i32) -> (i32, i32) {
    %c0_i32 = arith.constant 0 : i32
    %c0_i32_0 = arith.constant 0 : i32
    %c0_i32_1 = arith.constant 0 : i32
    return %c0_i32, %c0_i32_0 : i32, i32
  }
  func.func @transform_2(%arg0: i32) -> (i32, i32) {
    %c0_i32 = arith.constant 0 : i32
    %c0_i32_0 = arith.constant 0 : i32
    %c0_i32_1 = arith.constant 0 : i32
    return %c0_i32, %c0_i32_0 : i32, i32
  }
  func.func @transform_3(%arg0: i32) -> (i32, i32) {
    %c0_i32 = arith.constant 0 : i32
    %c0_i32_0 = arith.constant 0 : i32
    %c0_i32_1 = arith.constant 0 : i32
    return %c0_i32, %c0_i32_0 : i32, i32
  }
}

module attributes {stable_mosaic.version = 11 : i64} {
  func.func @_mlp_kernel(%arg0: i32, %arg1: memref<12x32xf32, #tpu.memory_space<vmem>>, %arg2: memref<32x2048xf32, #tpu.memory_space<vmem>>, %arg3: memref<1x2048xf32, #tpu.memory_space<vmem>>, %arg4: memref<2048x32xf32, #tpu.memory_space<vmem>>, %arg5: memref<1x32xf32, #tpu.memory_space<vmem>>, %arg6: memref<12x32xf32, #tpu.memory_space<vmem>>) attributes {dimension_semantics = [#tpu.dimension_semantics<arbitrary>], iteration_bounds = array<i64: 1>, scalar_prefetch = 0 : i64, scratch_operands = 0 : i64, tpu.core_type = #tpu.core_type<tc>, window_params = [{pipeline_mode = #tpu.pipeline_mode<synchronous>, transform_indices = @transform_0, window_bounds = array<i64: 12, 32>}, {pipeline_mode = #tpu.pipeline_mode<synchronous>, transform_indices = @transform_1, window_bounds = array<i64: 32, 2048>}, {pipeline_mode = #tpu.pipeline_mode<synchronous>, transform_indices = @transform_2, window_bounds = array<i64: 1, 2048>}, {pipeline_mode = #tpu.pipeline_mode<synchronous>, transform_indices = @transform_3, window_bounds = array<i64: 2048, 32>}, {pipeline_mode = #tpu.pipeline_mode<synchronous>, transform_indices = @transform_4, window_bounds = array<i64: 1, 32>}, {pipeline_mode = #tpu.pipeline_mode<synchronous>, transform_indices = @transform_5, window_bounds = array<i64: 12, 32>}]} {
    %c0 = arith.constant 0 : index
    %c0_0 = arith.constant 0 : index
    %0 = vector.load %arg1[%c0, %c0_0] : memref<12x32xf32, #tpu.memory_space<vmem>>, vector<12x32xf32>
    %1 = arith.truncf %0 : vector<12x32xf32> to vector<12x32xbf16>
    %c0_1 = arith.constant 0 : index
    %c0_2 = arith.constant 0 : index
    %2 = vector.load %arg2[%c0_1, %c0_2] : memref<32x2048xf32, #tpu.memory_space<vmem>>, vector<32x2048xf32>
    %3 = arith.truncf %2 : vector<32x2048xf32> to vector<32x2048xbf16>
    %cst = arith.constant dense<0.000000e+00> : vector<12x2048xf32>
    %4 = tpu.matmul %1, %3, %cst {dimension_numbers = #tpu.dot_dimension_numbers<[1], [0], [0], [1], [0, 0, 1, 1], [], []>} : vector<12x32xbf16>, vector<32x2048xbf16>, vector<12x2048xf32> -> vector<12x2048xf32>
    %c0_3 = arith.constant 0 : index
    %c0_4 = arith.constant 0 : index
    %5 = vector.load %arg3[%c0_3, %c0_4] : memref<1x2048xf32, #tpu.memory_space<vmem>>, vector<1x2048xf32>
    %6 = vector.broadcast %5 : vector<1x2048xf32> to vector<12x2048xf32>
    %7 = arith.addf %4, %6 : vector<12x2048xf32>
    %cst_5 = arith.constant 0.000000e+00 : f32
    %8 = vector.broadcast %cst_5 : f32 to vector<12x2048xf32>
    %9 = arith.maximumf %7, %8 : vector<12x2048xf32>
    %10 = arith.truncf %9 : vector<12x2048xf32> to vector<12x2048xbf16>
    %c0_6 = arith.constant 0 : index
    %c0_7 = arith.constant 0 : index
    %11 = vector.load %arg4[%c0_6, %c0_7] : memref<2048x32xf32, #tpu.memory_space<vmem>>, vector<2048x32xf32>
    %12 = arith.truncf %11 : vector<2048x32xf32> to vector<2048x32xbf16>
    %cst_8 = arith.constant dense<0.000000e+00> : vector<12x32xf32>
    %13 = tpu.matmul %10, %12, %cst_8 {dimension_numbers = #tpu.dot_dimension_numbers<[1], [0], [0], [1], [0, 0, 1, 1], [], []>} : vector<12x2048xbf16>, vector<2048x32xbf16>, vector<12x32xf32> -> vector<12x32xf32>
    %c0_9 = arith.constant 0 : index
    %c0_10 = arith.constant 0 : index
    %14 = vector.load %arg5[%c0_9, %c0_10] : memref<1x32xf32, #tpu.memory_space<vmem>>, vector<1x32xf32>
    %15 = vector.broadcast %14 : vector<1x32xf32> to vector<12x32xf32>
    %16 = arith.addf %13, %15 : vector<12x32xf32>
    %c0_11 = arith.constant 0 : index
    %c0_12 = arith.constant 0 : index
    %17 = vector.load %arg6[%c0_11, %c0_12] : memref<12x32xf32, #tpu.memory_space<vmem>>, vector<12x32xf32>
    tpu.vector_store %arg6[%c0_11, %c0_12], %16 {strides = array<i32>} : memref<12x32xf32, #tpu.memory_space<vmem>>, vector<12x32xf32>,
    return
  }
  func.func @transform_0(%arg0: i32) -> (i32, i32) {
    %c0_i32 = arith.constant 0 : i32
    %c0_i32_0 = arith.constant 0 : i32
    %c0_i32_1 = arith.constant 0 : i32
    return %c0_i32, %c0_i32_0 : i32, i32
  }
  func.func @transform_1(%arg0: i32) -> (i32, i32) {
    %c0_i32 = arith.constant 0 : i32
    %c0_i32_0 = arith.constant 0 : i32
    %c0_i32_1 = arith.constant 0 : i32
    return %c0_i32, %c0_i32_0 : i32, i32
  }
  func.func @transform_2(%arg0: i32) -> (i32, i32) {
    %c0_i32 = arith.constant 0 : i32
    %c0_i32_0 = arith.constant 0 : i32
    %c0_i32_1 = arith.constant 0 : i32
    return %c0_i32, %c0_i32_0 : i32, i32
  }
  func.func @transform_3(%arg0: i32) -> (i32, i32) {
    %c0_i32 = arith.constant 0 : i32
    %c0_i32_0 = arith.constant 0 : i32
    %c0_i32_1 = arith.constant 0 : i32
    return %c0_i32, %c0_i32_0 : i32, i32
  }
  func.func @transform_4(%arg0: i32) -> (i32, i32) {
    %c0_i32 = arith.constant 0 : i32
    %c0_i32_0 = arith.constant 0 : i32
    %c0_i32_1 = arith.constant 0 : i32
    return %c0_i32, %c0_i32_0 : i32, i32
  }
  func.func @transform_5(%arg0: i32) -> (i32, i32) {
    %c0_i32 = arith.constant 0 : i32
    %c0_i32_0 = arith.constant 0 : i32
    %c0_i32_1 = arith.constant 0 : i32
    return %c0_i32, %c0_i32_0 : i32, i32
  }
}

</mosaic_0001>

<bundles_post_ra>
// kernel: _lambda_.30
= control target key start
LH: loop header
LB: loop body
LE: loop exit
PB: predicated region body
PF: predicated region fallthrough
CT: control target
= control target key end

     0   :  { %v98_v0 = vmov 0.0   ;;  %vm99_vm0 = vmmov 0   ;;  %vm31_vm1 = vcmask 261120   ;;  %vm76_vm2 = vcmask 392192   ;;  %s147_s1 = inlined_call_operand.vmem [shape: f32[32,48], index: 1, kind: input, shape index: {}]   ;;  %s148_s0 = inlined_call_operand.vmem [shape: f32[16,32], index: 0, kind: input, shape index: {}]   ;;  %s149_s2 = inlined_call_operand.vmem [shape: f32[1,48], index: 2, kind: input, shape index: {}]   ;;  %s150_s3 = inlined_call_operand.vmem [shape: f32[16,48], index: 3, kind: output, shape index: {}]  }
   0x1   :  { %88 = vmatprep.subr.bf16.mxu0 %v98_v0  ;;  %v18_v1 = vld [vmem:[%s147_s1] sm:$0xff]  ;;  %v19_v2 = vld [vmem:[%s147_s1 + $0x8] sm:$0xff]  ;;  %v20_v3 = vld [vmem:[%s147_s1 + $0x10] sm:$0xff]  ;;  %92 = vmatprep.mubr.msk.bf16.mxu0 %vm99_vm0, %v98_v0 }
   0x2   :  { %v22_v4 = vpack.c.bf16 %v19_v2, %v18_v1  ;;  %v21_v5 = vld [vmem:[%s147_s1 + $0x18] sm:$0xff]  ;;  %v15_v7 = vld [vmem:[%s148_s0] sm:$0xff]  ;;  %v16_v8 = vld [vmem:[%s148_s0 + $0x8] sm:$0xff] }
   0x3   :  { %v23_v6 = vpack.c.bf16 %v21_v5, %v20_v3  ;;  %v17_v9 = vpack.c.bf16 %v16_v8, %v15_v7  ;;  %v83_v10 = vld [vmem:[%s149_s2] ss:$0 sm:$0xff] }
   0x4   :  { %89 = vmatpush3.bf16.msra.mxu0 %v22_v4 }
   0x5   :  { %90 = vmatprep.subr.bf16.mxu0 %v98_v0 }
   0x8   :  { %91 = vmatpush3.bf16.msra.mxu0 %v23_v6 }
   0xb   :  { %93 = vmatmul.mubr.msk.bf16.vlgmr.msra.gmra.mrb[0].mxu0 %vm31_vm1, %v17_v9 }
  0xde   :  { %v69_v11 = vpop.f32.mrb[0].mxu0 }
  0xdf   :  { %v70_v12 = vadd.f32 %v83_v10, %v69_v11  ;;  %v94_v13 = vpop.f32.mrb[1].mxu0 }
  0xe0   :  { %v72_v14 = vpop.f32.mrb[2].mxu0 }
  0xe1   :  { %77 = vst.msk [vmem:[%s150_s3] sm:$0xff] %vm76_vm2, %v70_v12  ;;  %v73_v15 = vadd.f32 %v83_v10, %v72_v14  ;;  %v95_v16 = vpop.f32.mrb[3].mxu0 }
  0xe3   :  { %78 = vst.msk [vmem:[%s150_s3 + $0x8] sm:$0xff] %vm76_vm2, %v73_v15 }

// kernel: _lambda_.29
= control target key start
LH: loop header
LB: loop body
LE: loop exit
PB: predicated region body
PF: predicated region fallthrough
CT: control target
= control target key end

     0   :  { %v101_v0 = vmov 0.0   ;;  %vm102_vm0 = vmmov 0   ;;  %vm34_vm1 = vcmask 1043456   ;;  %vm30_vm2 = vcmask 195584   ;;  %s147_s1 = inlined_call_operand.vmem [shape: f32[24,32], index: 1, kind: input, shape index: {}]   ;;  %s148_s0 = inlined_call_operand.vmem [shape: f32[16,24], index: 0, kind: input, shape index: {}]   ;;  %s149_s2 = inlined_call_operand.vmem [shape: f32[1,32], index: 2, kind: input, shape index: {}]   ;;  %s150_s3 = inlined_call_operand.vmem [shape: f32[16,32], index: 3, kind: output, shape index: {}]  }
   0x1   :  { %91 = vmatprep.subr.bf16.mxu0 %v101_v0  ;;  %v18_v1 = vld [vmem:[%s147_s1] sm:$0xff]  ;;  %v19_v2 = vld [vmem:[%s147_s1 + $0x8] sm:$0xff]  ;;  %v20_v3 = vld [vmem:[%s147_s1 + $0x10] sm:$0xff]  ;;  %95 = vmatprep.mubr.msk.bf16.mxu0 %vm102_vm0, %v101_v0  ;;  %vm79_vm3 = vcmask 261120  }
   0x2   :  { %v21_v4 = vpack.c.bf16 %v19_v2, %v18_v1  ;;  %v22_v5 = vpack.c.bf16 %v20_v3, %v20_v3  ;;  %v15_v6 = vld [vmem:[%s148_s0] sm:$0xff]  ;;  %v16_v7 = vld [vmem:[%s148_s0 + $0x8] sm:$0xff] }
   0x3   :  { %v17_v9 = vpack.c.bf16 %v16_v7, %v15_v6  ;;  %v86_v10 = vld [vmem:[%s149_s2] ss:$0 sm:$0xff] }
   0x4   :  { %92 = vmatpush3.bf16.msra.mxu0 %v21_v4  ;;  %v36_v8 = vsel %vm34_vm1, %v22_v5, 0 }
   0x5   :  { %93 = vmatprep.subr.bf16.mxu0 %v101_v0 }
   0x8   :  { %94 = vmatpush3.bf16.msra.mxu0 %v36_v8 }
   0xb   :  { %96 = vmatmul.mubr.msk.bf16.vlgmr.msra.gmra.mrb[0].mxu0 %vm30_vm2, %v17_v9 }
  0xde   :  { %v72_v11 = vpop.f32.mrb[0].mxu0 }
  0xdf   :  { %v73_v12 = vadd.f32 %v86_v10, %v72_v11  ;;  %v97_v13 = vpop.f32.mrb[1].mxu0 }
  0xe0   :  { %v75_v14 = vpop.f32.mrb[2].mxu0 }
  0xe1   :  { %80 = vst.msk [vmem:[%s150_s3] sm:$0xff] %vm79_vm3, %v73_v12  ;;  %v76_v15 = vadd.f32 %v86_v10, %v75_v14  ;;  %v98_v16 = vpop.f32.mrb[3].mxu0 }
  0xe3   :  { %81 = vst.msk [vmem:[%s150_s3 + $0x8] sm:$0xff] %vm79_vm3, %v76_v15 }

// kernel: _lambda_.31
= control target key start
LH: loop header
LB: loop body
LE: loop exit
PB: predicated region body
PF: predicated region fallthrough
CT: control target
= control target key end

     0   :  { %v104_v0 = vmov 0.0   ;;  %vm105_vm0 = vmmov 0   ;;  %vm34_vm1 = vcmask 392192   ;;  %vm79_vm2 = vcmask 130048   ;;  %s159_s1 = inlined_call_operand.vmem [shape: f32[48,16], index: 1, kind: input, shape index: {}]   ;;  %s160_s0 = inlined_call_operand.vmem [shape: f32[16,48], index: 0, kind: input, shape index: {}]   ;;  %s161_s2 = inlined_call_operand.vmem [shape: f32[1,16], index: 2, kind: input, shape index: {}]   ;;  %s162_s3 = inlined_call_operand.vmem [shape: f32[16,16], index: 3, kind: output, shape index: {}]  }
   0x1   :  { %92 = vmatprep.subr.bf16.mxu0 %v104_v0  ;;  %v18_v1 = vld [vmem:[%s159_s1] sm:$0xff]  ;;  %v19_v2 = vld [vmem:[%s159_s1 + $0x8] sm:$0xff]  ;;  %v20_v3 = vld [vmem:[%s159_s1 + $0x10] sm:$0xff]  ;;  %98 = vmatprep.mubr.msk.bf16.mxu0 %vm105_vm0, %v104_v0 }
   0x2   :  { %v24_v4 = vpack.c.bf16 %v19_v2, %v18_v1  ;;  %v21_v5 = vld [vmem:[%s159_s1 + $0x18] sm:$0xff]  ;;  %v22_v7 = vld [vmem:[%s159_s1 + $0x20] sm:$0xff]  ;;  %v23_v8 = vld [vmem:[%s159_s1 + $0x28] sm:$0xff] }
   0x3   :  { %v25_v6 = vpack.c.bf16 %v21_v5, %v20_v3  ;;  %v26_v9 = vpack.c.bf16 %v23_v8, %v22_v7  ;;  %v15_v10 = vld [vmem:[%s160_s0] sm:$0xff]  ;;  %v16_v11 = vld [vmem:[%s160_s0 + $0x8] sm:$0xff] }
   0x4   :  { %93 = vmatpush3.bf16.msra.mxu0 %v24_v4  ;;  %v17_v12 = vpack.c.bf16 %v16_v11, %v15_v10  ;;  %v86_v13 = vld [vmem:[%s161_s2] ss:$0 sm:$0xff] }
   0x5   :  { %94 = vmatprep.subr.bf16.mxu0 %v104_v0 }
   0x8   :  { %95 = vmatpush3.bf16.msra.mxu0 %v25_v6 }
   0x9   :  { %96 = vmatprep.subr.bf16.mxu0 %v104_v0 }
   0xc   :  { %97 = vmatpush3.bf16.msra.mxu0 %v26_v9 }
   0xf   :  { %99 = vmatmul.mubr.msk.bf16.vlgmr.msra.gmra.mrb[0].mxu0 %vm34_vm1, %v17_v12 }
  0xe2   :  { %v72_v14 = vpop.f32.mrb[0].mxu0 }
  0xe3   :  { %v73_v15 = vadd.f32 %v86_v13, %v72_v14  ;;  %v100_v16 = vpop.f32.mrb[1].mxu0 }
  0xe4   :  { %v75_v17 = vpop.f32.mrb[2].mxu0 }
  0xe5   :  { %80 = vst.msk [vmem:[%s162_s3] sm:$0xff] %vm79_vm2, %v73_v15  ;;  %v76_v18 = vadd.f32 %v86_v13, %v75_v17  ;;  %v101_v19 = vpop.f32.mrb[3].mxu0 }
  0xe7   :  { %81 = vst.msk [vmem:[%s162_s3 + $0x8] sm:$0xff] %vm79_vm2, %v76_v18 }

// kernel: custom-call.6
= control target key start
LH: loop header
LB: loop body
LE: loop exit
PB: predicated region body
PF: predicated region fallthrough
CT: control target
= control target key end

     0   :  { %s6_s0 = inlined_call_operand.vmem [shape: bf16[2,16], index: 0, kind: output, shape index: {}]  }

// kernel: custom-call.7
= control target key start
LH: loop header
LB: loop body
LE: loop exit
PB: predicated region body
PF: predicated region fallthrough
CT: control target
= control target key end

     0   :  { %s6_s0 = inlined_call_operand.vmem [shape: f32[2,16], index: 0, kind: output, shape index: {}]  }

// kernel: _lambda_.26
= control target key start
LH: loop header
LB: loop body
LE: loop exit
PB: predicated region body
PF: predicated region fallthrough
CT: control target
= control target key end

     0   :  { %v177_v0 = vmov 0.0   ;;  %vm178_vm0 = vmmov 0   ;;  %vm37_vm1 = vcmask 261120   ;;  %vm142_vm2 = vcmask 130048   ;;  %s253_s1 = inlined_call_operand.vmem [shape: f32[32,32], index: 1, kind: input, shape index: {}]   ;;  %s254_s0 = inlined_call_operand.vmem [shape: f32[16,32], index: 0, kind: input, shape index: {}]   ;;  %s255_s3 = inlined_call_operand.vmem [shape: f32[32,16], index: 3, kind: input, shape index: {}]   ;;  %s256_s2 = inlined_call_operand.vmem [shape: f32[1,32], index: 2, kind: input, shape index: {}]   ;;  %s257_s4 = inlined_call_operand.vmem [shape: f32[1,16], index: 4, kind: input, shape index: {}]   ;;  %s258_s5 = inlined_call_operand.vmem [shape: f32[16,16], index: 5, kind: output, shape index: {}]  }
   0x1   :  { %159 = vmatprep.subr.bf16.mxu0 %v177_v0  ;;  %v24_v1 = vld [vmem:[%s253_s1] sm:$0xff]  ;;  %v25_v2 = vld [vmem:[%s253_s1 + $0x8] sm:$0xff]  ;;  %v26_v3 = vld [vmem:[%s253_s1 + $0x10] sm:$0xff]  ;;  %163 = vmatprep.mubr.msk.bf16.mxu0 %vm178_vm0, %v177_v0 }
   0x2   :  { %v28_v4 = vpack.c.bf16 %v25_v2, %v24_v1  ;;  %v27_v5 = vld [vmem:[%s253_s1 + $0x18] sm:$0xff]  ;;  %167 = vmatprep.subr.bf16.mxu1 %v177_v0  ;;  %171 = vmatprep.mubr.msk.bf16.mxu1 %vm178_vm0, %v177_v0  ;;  %v21_v7 = vld [vmem:[%s254_s0] sm:$0xff]  ;;  %v22_v8 = vld [vmem:[%s254_s0 + $0x8] sm:$0xff] }
   0x3   :  { %v29_v6 = vpack.c.bf16 %v27_v5, %v26_v3  ;;  %v23_v9 = vpack.c.bf16 %v22_v8, %v21_v7  ;;  %v85_v10 = vld [vmem:[%s255_s3] sm:$0xff]  ;;  %v86_v11 = vld [vmem:[%s255_s3 + $0x8] sm:$0xff]  ;;  %v87_v13 = vld [vmem:[%s255_s3 + $0x10] sm:$0xff] }
   0x4   :  { %160 = vmatpush3.bf16.msra.mxu0 %v28_v4  ;;  %v89_v12 = vpack.c.bf16 %v86_v11, %v85_v10  ;;  %v88_v14 = vld [vmem:[%s255_s3 + $0x18] sm:$0xff]  ;;  %v149_v16 = vld [vmem:[%s256_s2] ss:$0 sm:$0xff] }
   0x5   :  { %161 = vmatprep.subr.bf16.mxu0 %v177_v0  ;;  %v90_v15 = vpack.c.bf16 %v88_v14, %v87_v13  ;;  %v151_v26 = vld [vmem:[%s257_s4] ss:$0 sm:$0xff] }
   0x6   :  { %168 = vmatpush3.bf16.msra.mxu1 %v89_v12 }
   0x7   :  { %169 = vmatprep.subr.bf16.mxu1 %v177_v0 }
   0x8   :  { %162 = vmatpush3.bf16.msra.mxu0 %v29_v6 }
   0xa   :  { %170 = vmatpush3.bf16.msra.mxu1 %v90_v15 }
   0xb   :  { %164 = vmatmul.mubr.msk.bf16.vlgmr.msra.gmra.mrb[0].mxu0 %vm37_vm1, %v23_v9 }
  0xde   :  { %v75_v17 = vpop.f32.mrb[0].mxu0 }
  0xdf   :  { %v76_v18 = vadd.f32 %v149_v16, %v75_v17  ;;  %v165_v19 = vpop.f32.mrb[1].mxu0 }
  0xe0   :  { %v78_v20 = vpop.f32.mrb[2].mxu0 }
  0xe1   :  { %v79_v21 = vadd.f32 %v149_v16, %v78_v20  ;;  %v166_v22 = vpop.f32.mrb[3].mxu0  ;;  %v82_v23 = vmax.f32 %v76_v18, 0.0 }
  0xe3   :  { %v83_v24 = vmax.f32 %v79_v21, 0.0 }
  0xe5   :  { %v84_v25 = vpack.c.bf16 %v83_v24, %v82_v23 }
  0xe7   :  { %172 = vmatmul.mubr.msk.bf16.vlgmr.msra.gmra.mrb[0].mxu1 %vm37_vm1, %v84_v25 }
 0x1ba   :  { %v135_v27 = vpop.f32.mrb[0].mxu1 }
 0x1bb   :  { %v136_v28 = vadd.f32 %v151_v26, %v135_v27  ;;  %v173_v29 = vpop.f32.mrb[1].mxu1 }
 0x1bc   :  { %v138_v30 = vpop.f32.mrb[2].mxu1 }
 0x1bd   :  { %143 = vst.msk [vmem:[%s258_s5] sm:$0xff] %vm142_vm2, %v136_v28  ;;  %v139_v31 = vadd.f32 %v151_v26, %v138_v30  ;;  %v174_v32 = vpop.f32.mrb[3].mxu1 }
 0x1bf   :  { %144 = vst.msk [vmem:[%s258_s5 + $0x8] sm:$0xff] %vm142_vm2, %v139_v31 }

// kernel: _lambda_.27
= control target key start
LH: loop header
LB: loop body
LE: loop exit
PB: predicated region body
PF: predicated region fallthrough
CT: control target
= control target key end

     0   :  { %v92_v0 = vmov 0.0   ;;  %vm93_vm0 = vmmov 0   ;;  %vm28_vm1 = vcmask 130048   ;;  %vm73_vm2 = vcmask 392192   ;;  %s135_s1 = inlined_call_operand.vmem [shape: f32[16,48], index: 1, kind: input, shape index: {}]   ;;  %s136_s0 = inlined_call_operand.vmem [shape: f32[16,16], index: 0, kind: input, shape index: {}]   ;;  %s137_s2 = inlined_call_operand.vmem [shape: f32[1,48], index: 2, kind: input, shape index: {}]   ;;  %s138_s3 = inlined_call_operand.vmem [shape: f32[16,48], index: 3, kind: output, shape index: {}]  }
   0x1   :  { %84 = vmatprep.subr.bf16.mxu0 %v92_v0  ;;  %v18_v1 = vld [vmem:[%s135_s1] sm:$0xff]  ;;  %v19_v2 = vld [vmem:[%s135_s1 + $0x8] sm:$0xff]  ;;  %86 = vmatprep.mubr.msk.bf16.mxu0 %vm93_vm0, %v92_v0 }
   0x2   :  { %v15_v3 = vld [vmem:[%s136_s0] sm:$0xff]  ;;  %v20_v4 = vpack.c.bf16 %v19_v2, %v18_v1  ;;  %v16_v5 = vld [vmem:[%s136_s0 + $0x8] sm:$0xff] }
   0x3   :  { %v17_v6 = vpack.c.bf16 %v16_v5, %v15_v3  ;;  %v80_v7 = vld [vmem:[%s137_s2] ss:$0 sm:$0xff] }
   0x4   :  { %85 = vmatpush3.bf16.msra.mxu0 %v20_v4 }
   0x7   :  { %87 = vmatmul.mubr.msk.bf16.vlgmr.msra.gmra.mrb[0].mxu0 %vm28_vm1, %v17_v6 }
  0xda   :  { %v66_v8 = vpop.f32.mrb[0].mxu0 }
  0xdb   :  { %v67_v9 = vadd.f32 %v80_v7, %v66_v8  ;;  %v88_v10 = vpop.f32.mrb[1].mxu0 }
  0xdc   :  { %v69_v11 = vpop.f32.mrb[2].mxu0 }
  0xdd   :  { %74 = vst.msk [vmem:[%s138_s3] sm:$0xff] %vm73_vm2, %v67_v9  ;;  %v70_v12 = vadd.f32 %v80_v7, %v69_v11  ;;  %v89_v13 = vpop.f32.mrb[3].mxu0 }
  0xdf   :  { %75 = vst.msk [vmem:[%s138_s3 + $0x8] sm:$0xff] %vm73_vm2, %v70_v12 }

// kernel: _lambda_.22
= control target key start
LH: loop header
LB: loop body
LE: loop exit
PB: predicated region body
PF: predicated region fallthrough
CT: control target
= control target key end

     0   :  { %v100_v0 = vmov 0.0   ;;  %vm101_vm0 = vmmov 0   ;;  %vm34_vm1 = vcmask 1043456   ;;  %vm30_vm2 = vcmask 195584   ;;  %s146_s1 = inlined_call_operand.vmem [shape: f32[24,128], index: 1, kind: input, shape index: {}]   ;;  %s147_s0 = inlined_call_operand.vmem [shape: f32[16,24], index: 0, kind: input, shape index: {}]   ;;  %s148_s2 = inlined_call_operand.vmem [shape: f32[1,128], index: 2, kind: input, shape index: {}]   ;;  %s149_s3 = inlined_call_operand.vmem [shape: f32[16,128], index: 3, kind: output, shape index: {}]  }
   0x1   :  { %90 = vmatprep.subr.bf16.mxu0 %v100_v0  ;;  %v18_v1 = vld [vmem:[%s146_s1] sm:$0xff]  ;;  %v19_v2 = vld [vmem:[%s146_s1 + $0x8] sm:$0xff]  ;;  %v20_v3 = vld [vmem:[%s146_s1 + $0x10] sm:$0xff]  ;;  %94 = vmatprep.mubr.msk.bf16.mxu0 %vm101_vm0, %v100_v0 }
   0x2   :  { %v21_v4 = vpack.c.bf16 %v19_v2, %v18_v1  ;;  %v22_v5 = vpack.c.bf16 %v20_v3, %v20_v3  ;;  %v15_v6 = vld [vmem:[%s147_s0] sm:$0xff]  ;;  %v16_v7 = vld [vmem:[%s147_s0 + $0x8] sm:$0xff] }
   0x3   :  { %v17_v9 = vpack.c.bf16 %v16_v7, %v15_v6  ;;  %v85_v10 = vld [vmem:[%s148_s2] ss:$0 sm:$0xff] }
   0x4   :  { %91 = vmatpush3.bf16.msra.mxu0 %v21_v4  ;;  %v36_v8 = vsel %vm34_vm1, %v22_v5, 0 }
   0x5   :  { %92 = vmatprep.subr.bf16.mxu0 %v100_v0 }
   0x8   :  { %93 = vmatpush3.bf16.msra.mxu0 %v36_v8 }
   0xb   :  { %95 = vmatmul.mubr.msk.bf16.vlgmr.msra.gmra.mrb[0].mxu0 %vm30_vm2, %v17_v9 }
  0xde   :  { %v72_v11 = vpop.f32.mrb[0].mxu0 }
  0xdf   :  { %v73_v12 = vadd.f32 %v85_v10, %v72_v11  ;;  %v96_v13 = vpop.f32.mrb[1].mxu0 }
  0xe0   :  { %v75_v14 = vpop.f32.mrb[2].mxu0 }
  0xe1   :  { %79 = vst [vmem:[%s149_s3] sm:$0xff] %v73_v12  ;;  %v76_v15 = vadd.f32 %v85_v10, %v75_v14  ;;  %v97_v16 = vpop.f32.mrb[3].mxu0 }
  0xe3   :  { %80 = vst [vmem:[%s149_s3 + $0x8] sm:$0xff] %v76_v15 }

// kernel: _lambda_.23
= control target key start
LH: loop header
LB: loop body
LE: loop exit
PB: predicated region body
PF: predicated region fallthrough
CT: control target
= control target key end

     0   :  { %v98_v0 = vmov 0.0   ;;  %vm99_vm0 = vmmov 0   ;;  %vm31_vm1 = vcmask 261120   ;;  %vm76_vm2 = vcmask 130048   ;;  %s147_s1 = inlined_call_operand.vmem [shape: f32[32,16], index: 1, kind: input, shape index: {}]   ;;  %s148_s0 = inlined_call_operand.vmem [shape: f32[16,32], index: 0, kind: input, shape index: {}]   ;;  %s149_s2 = inlined_call_operand.vmem [shape: f32[1,16], index: 2, kind: input, shape index: {}]   ;;  %s150_s3 = inlined_call_operand.vmem [shape: f32[16,16], index: 3, kind: output, shape index: {}]  }
   0x1   :  { %88 = vmatprep.subr.bf16.mxu0 %v98_v0  ;;  %v18_v1 = vld [vmem:[%s147_s1] sm:$0xff]  ;;  %v19_v2 = vld [vmem:[%s147_s1 + $0x8] sm:$0xff]  ;;  %v20_v3 = vld [vmem:[%s147_s1 + $0x10] sm:$0xff]  ;;  %92 = vmatprep.mubr.msk.bf16.mxu0 %vm99_vm0, %v98_v0 }
   0x2   :  { %v22_v4 = vpack.c.bf16 %v19_v2, %v18_v1  ;;  %v21_v5 = vld [vmem:[%s147_s1 + $0x18] sm:$0xff]  ;;  %v15_v7 = vld [vmem:[%s148_s0] sm:$0xff]  ;;  %v16_v8 = vld [vmem:[%s148_s0 + $0x8] sm:$0xff] }
   0x3   :  { %v23_v6 = vpack.c.bf16 %v21_v5, %v20_v3  ;;  %v17_v9 = vpack.c.bf16 %v16_v8, %v15_v7  ;;  %v83_v10 = vld [vmem:[%s149_s2] ss:$0 sm:$0xff] }
   0x4   :  { %89 = vmatpush3.bf16.msra.mxu0 %v22_v4 }
   0x5   :  { %90 = vmatprep.subr.bf16.mxu0 %v98_v0 }
   0x8   :  { %91 = vmatpush3.bf16.msra.mxu0 %v23_v6 }
   0xb   :  { %93 = vmatmul.mubr.msk.bf16.vlgmr.msra.gmra.mrb[0].mxu0 %vm31_vm1, %v17_v9 }
  0xde   :  { %v69_v11 = vpop.f32.mrb[0].mxu0 }
  0xdf   :  { %v70_v12 = vadd.f32 %v83_v10, %v69_v11  ;;  %v94_v13 = vpop.f32.mrb[1].mxu0 }
  0xe0   :  { %v72_v14 = vpop.f32.mrb[2].mxu0 }
  0xe1   :  { %77 = vst.msk [vmem:[%s150_s3] sm:$0xff] %vm76_vm2, %v70_v12  ;;  %v73_v15 = vadd.f32 %v83_v10, %v72_v14  ;;  %v95_v16 = vpop.f32.mrb[3].mxu0 }
  0xe3   :  { %78 = vst.msk [vmem:[%s150_s3 + $0x8] sm:$0xff] %vm76_vm2, %v73_v15 }

// kernel: _lambda_.25
= control target key start
LH: loop header
LB: loop body
LE: loop exit
PB: predicated region body
PF: predicated region fallthrough
CT: control target
= control target key end

     0   :  { %v122_v0 = vmov 0.0   ;;  %vm123_vm0 = vmmov 0   ;;  %vm43_vm1 = vcmask 785408   ;;  %vm88_vm2 = vcmask 130048   ;;  %s195_s1 = inlined_call_operand.vmem [shape: f32[96,16], index: 1, kind: input, shape index: {}]   ;;  %s196_s0 = inlined_call_operand.vmem [shape: f32[16,96], index: 0, kind: input, shape index: {}]   ;;  %s197_s2 = inlined_call_operand.vmem [shape: f32[1,16], index: 2, kind: input, shape index: {}]   ;;  %s198_s3 = inlined_call_operand.vmem [shape: f32[16,16], index: 3, kind: output, shape index: {}]  }
   0x1   :  { %104 = vmatprep.subr.bf16.mxu0 %v122_v0  ;;  %v18_v1 = vld [vmem:[%s195_s1] sm:$0xff]  ;;  %v19_v2 = vld [vmem:[%s195_s1 + $0x8] sm:$0xff]  ;;  %v20_v3 = vld [vmem:[%s195_s1 + $0x10] sm:$0xff]  ;;  %116 = vmatprep.mubr.msk.bf16.mxu0 %vm123_vm0, %v122_v0 }
   0x2   :  { %v30_v4 = vpack.c.bf16 %v19_v2, %v18_v1  ;;  %v21_v5 = vld [vmem:[%s195_s1 + $0x18] sm:$0xff]  ;;  %v22_v7 = vld [vmem:[%s195_s1 + $0x20] sm:$0xff]  ;;  %v23_v8 = vld [vmem:[%s195_s1 + $0x28] sm:$0xff] }
   0x3   :  { %v31_v6 = vpack.c.bf16 %v21_v5, %v20_v3  ;;  %v32_v9 = vpack.c.bf16 %v23_v8, %v22_v7  ;;  %v24_v10 = vld [vmem:[%s195_s1 + $0x30] sm:$0xff]  ;;  %v25_v11 = vld [vmem:[%s195_s1 + $0x38] sm:$0xff]  ;;  %v26_v13 = vld [vmem:[%s195_s1 + $0x40] sm:$0xff] }
   0x4   :  { %105 = vmatpush3.bf16.msra.mxu0 %v30_v4  ;;  %v33_v12 = vpack.c.bf16 %v25_v11, %v24_v10  ;;  %v27_v14 = vld [vmem:[%s195_s1 + $0x48] sm:$0xff]  ;;  %v28_v16 = vld [vmem:[%s195_s1 + $0x50] sm:$0xff]  ;;  %v29_v17 = vld [vmem:[%s195_s1 + $0x58] sm:$0xff] }
   0x5   :  { %106 = vmatprep.subr.bf16.mxu0 %v122_v0  ;;  %v34_v15 = vpack.c.bf16 %v27_v14, %v26_v13  ;;  %v35_v18 = vpack.c.bf16 %v29_v17, %v28_v16  ;;  %v15_v19 = vld [vmem:[%s196_s0] sm:$0xff]  ;;  %v16_v20 = vld [vmem:[%s196_s0 + $0x8] sm:$0xff] }
   0x6   :  { %v17_v21 = vpack.c.bf16 %v16_v20, %v15_v19  ;;  %v95_v22 = vld [vmem:[%s197_s2] ss:$0 sm:$0xff] }
   0x8   :  { %107 = vmatpush3.bf16.msra.mxu0 %v31_v6 }
   0x9   :  { %108 = vmatprep.subr.bf16.mxu0 %v122_v0 }
   0xc   :  { %109 = vmatpush3.bf16.msra.mxu0 %v32_v9 }
   0xd   :  { %110 = vmatprep.subr.bf16.mxu0 %v122_v0 }
  0x10   :  { %111 = vmatpush3.bf16.msra.mxu0 %v33_v12 }
  0x11   :  { %112 = vmatprep.subr.bf16.mxu0 %v122_v0 }
  0x14   :  { %113 = vmatpush3.bf16.msra.mxu0 %v34_v15 }
  0x15   :  { %114 = vmatprep.subr.bf16.mxu0 %v122_v0 }
  0x18   :  { %115 = vmatpush3.bf16.msra.mxu0 %v35_v18 }
  0x1b   :  { %117 = vmatmul.mubr.msk.bf16.vlgmr.msra.gmra.mrb[0].mxu0 %vm43_vm1, %v17_v21 }
  0xee   :  { %v81_v23 = vpop.f32.mrb[0].mxu0 }
  0xef   :  { %v82_v24 = vadd.f32 %v95_v22, %v81_v23  ;;  %v118_v25 = vpop.f32.mrb[1].mxu0 }
  0xf0   :  { %v84_v26 = vpop.f32.mrb[2].mxu0 }
  0xf1   :  { %89 = vst.msk [vmem:[%s198_s3] sm:$0xff] %vm88_vm2, %v82_v24  ;;  %v85_v27 = vadd.f32 %v95_v22, %v84_v26  ;;  %v119_v28 = vpop.f32.mrb[3].mxu0 }
  0xf3   :  { %90 = vst.msk [vmem:[%s198_s3 + $0x8] sm:$0xff] %vm88_vm2, %v85_v27 }

// kernel: _lambda_.32
= control target key start
LH: loop header
LB: loop body
LE: loop exit
PB: predicated region body
PF: predicated region fallthrough
CT: control target
= control target key end

     0   :  { %s943_s24 = smov 0   ;;  %s1043_s0 = inlined_call_operand.vmem [shape: f32[3,2,8,16], index: 0, kind: input, shape index: {}]   ;;  %s1044_s1 = inlined_call_operand.vmem [shape: f32[3,16,32], index: 1, kind: input, shape index: {}]   ;;  %s1045_s2 = inlined_call_operand.vmem [shape: f32[3,1,32], index: 2, kind: input, shape index: {}]   ;;  %s1046_s3 = inlined_call_operand.vmem [shape: f32[3,8,8], index: 3, kind: input, shape index: {}]   ;;  %s1047_s4 = inlined_call_operand.vmem [shape: f32[3,8,1], index: 4, kind: input, shape index: {}]   ;;  %s1048_s5 = inlined_call_operand.vmem [shape: f32[3,32,32], index: 5, kind: input, shape index: {}]   ;;  %s1049_s6 = inlined_call_operand.vmem [shape: f32[3,2,8,32], index: 6, kind: output, shape index: {0}]   ;;  %s1050_s7 = inlined_call_operand.vmem [shape: f32[2,8,32], index: 7, kind: output, shape index: {1}]  }
   0x1 LB: > { %s949_s25 = sadd.s32 4294967295, %s897_s24   ;;  %p799_p0 = scmp.ge.s32.totalorder %s897_s24, 1  ;;  %s897_s24 = sphi %s943_s24, %s18_s24  }
   0x2   : > { %p281_p1 = scmp.lt.s32.totalorder %s897_s24, 4 }
   0x4   : > { %p282_p2 = pnand %p799_p0, %p281_p1 }
   0x5   : > { %p334_p3 = scmp.lt.s32.totalorder (!%p282_p2), %s949_s25, 2  ;;  %v899_v0 = vmov (!%p282_p2), 0.0   ;;  %vm900_vm0 = vmmov (!%p282_p2), 0   ;;  %vm380_vm1 = vcmask (!%p282_p2), 130048   ;;  %v901_v8 = vmov (!%p282_p2), 0   ;;  %p815_p4 = scmp.ne.s32.totalorder (!%p282_p2), %s949_s25, 0 }
   0x6   : > { %285 = sbr.rel (%p282_p2) target bundleno = 683 (0x2ab), region = 44  ;;  %838 = vmatprep.subr.bf16.mxu0 (!%p282_p2), %v899_v0  ;;  %844 = vmatprep.subr.bf16.mxu1 (!%p282_p2), %v899_v0  ;;  %vm481_vm2 = vcmask (!%p282_p2), 1043456   ;;  %vm477_vm3 = vcmask (!%p282_p2), 64512   ;;  %vm568_vm4 = vcmask (!%p282_p2), 261120  }
   0x7   : > { %840 = vmatprep.mubr.msk.bf16.mxu0 (!%p282_p2), %vm900_vm0, %v899_v0  ;;  %846 = vmatprep.mubr.msk.bf16.mxu1 (!%p282_p2), %vm900_vm0, %v899_v0 }
   0x8   : > { %890 = vset.pattern.permute.xlu0 (!%p282_p2), %v901_v8 }
   0xd   : > { %s957_s26 = scalar_select %p334_p3, %s949_s25, 2 }
   0xe   : > { %v902_v38 = vmov (!%p815_p4), 0.0  }
   0xf   : > { %s964_s27 = sshll.u32 %s957_s26, 4  ;;  %s822_s28 = sshll.u32 %s957_s26, 5  ;;  %575 = vst.msk [vmem:[%s1050_s7] sm:$0xff] (!%p815_p4), %vm568_vm4, %v902_v38  ;;  %576 = vst.msk [vmem:[%s1050_s7 + $0x8] sm:$0xff] (!%p815_p4), %vm568_vm4, %v902_v38 }
  0x10   : > { %s338_s8 = scalar_lea.vmem %s1043_s0, %s964_s27  ;;  %s343_s11 = scalar_lea.vmem %s1044_s1, %s964_s27 }
  0x11   : > { %s978_s14 = scalar_lea.vmem %s1048_s5, %s822_s28  ;;  %v370_v1 = vld [vmem:[%s343_s11] sm:$0xff]  ;;  %v371_v2 = vld [vmem:[%s343_s11 + $0x8] sm:$0xff]  ;;  %s804_s15 = sshll.u32 %s957_s26, 3 }
  0x12   : > { %v366_v3 = vld [vmem:[%s338_s8] sm:$0xff]  ;;  %v372_v4 = vpack.c.bf16 %v371_v2, %v370_v1  ;;  %v367_v5 = vld [vmem:[%s338_s8 + $0x8] sm:$0xff]  ;;  %s354_s18 = scalar_lea.vmem %s1047_s4, %s804_s15  ;;  %s346_s21 = scalar_lea.vmem %s1045_s2, %s957_s26 }
  0x13   : > { %v368_v6 = vpack.c.bf16 %v366_v3, %v366_v3  ;;  %v369_v7 = vpack.c.bf16 %v367_v5, %v367_v5  ;;  %v471_v9 = vld [vmem:[%s354_s18] sm:$0xff]  ;;  %s350_s28 = scalar_lea.vmem %s1046_s3, %s804_s15  ;;  %s364_s30 = scalar_lea.vmem %s1049_s6, %s964_s27 }
  0x14   : > { %839 = vmatpush3.bf16.msra.mxu0 %v372_v4  ;;  %845 = vmatpush3.bf16.msra.mxu1 %v372_v4  ;;  %v810_v10 = vld [vmem:[%s346_s21] ss:$0 sm:$0xff] }
  0x15   : > { %850 = vmatprep.subr.bf16.mxu0 %v899_v0  ;;  %856 = vmatprep.subr.bf16.mxu1 %v899_v0  ;;  %v467_v19 = vld [vmem:[%s350_s28] sm:$0xff] }
  0x16   : > { %474 = vperm.xlu0 %890, %v471_v9   ;;  %v468_v26 = vpack.c.bf16 %v467_v19, %v467_v19 }
  0x17   : > { %841 = vmatmul.mubr.msk.bf16.vlgmr.msra.gmra.mrb[0].mxu0 %vm380_vm1, %v368_v6  ;;  %847 = vmatmul.mubr.msk.bf16.vlgmr.msra.gmra.mrb[0].mxu1 %vm380_vm1, %v369_v7 }
  0x18   : > { %852 = vmatprep.mubr.msk.bf16.mxu0 %vm900_vm0, %v899_v0  ;;  %858 = vmatprep.mubr.msk.bf16.mxu1 %vm900_vm0, %v899_v0 }
  0x95   : > { %v475_v27 = vpop.permute.xlu0 %474 }
  0xea   : > { %v418_v11 = vpop.f32.mrb[0].mxu0  ;;  %v461_v12 = vpop.f32.mrb[0].mxu1 }
  0xeb   : > { %v419_v13 = vadd.f32 %v810_v10, %v418_v11  ;;  %v462_v14 = vadd.f32 %v810_v10, %v461_v12  ;;  %v842_v15 = vpop.f32.mrb[1].mxu0  ;;  %v848_v16 = vpop.f32.mrb[1].mxu1 }
  0xec   : > { %v421_v17 = vpop.f32.mrb[2].mxu0  ;;  %v464_v18 = vpop.f32.mrb[2].mxu1 }
  0xed   : > { %v469_v20 = vpack.c.bf16 %v419_v13, %v419_v13  ;;  %v470_v21 = vpack.c.bf16 %v462_v14, %v462_v14  ;;  %v843_v22 = vpop.f32.mrb[3].mxu0  ;;  %v849_v23 = vpop.f32.mrb[3].mxu1 }
  0xef   : > { %v483_v24 = vsel %vm481_vm2, %v469_v20, 0  ;;  %v526_v25 = vsel %vm481_vm2, %v470_v21, 0 }
  0xf0   : > { %851 = vmatpush3.bf16.msra.mxu0 %v483_v24  ;;  %857 = vmatpush3.bf16.msra.mxu1 %v526_v25 }
  0xf3   : > { %853 = vmatmul.mubr.msk.bf16.vlgmr.msra.gmra.mrb[4].mxu0 %vm477_vm3, %v468_v26  ;;  %859 = vmatmul.mubr.msk.bf16.vlgmr.msra.gmra.mrb[4].mxu1 %vm477_vm3, %v468_v26 }
 0x1c3   : > { %574 = sbr.rel (%p815_p4) target bundleno = 458 (0x1ca), region = 48 }
 0x1c6   : > { %v519_v28 = vpop.f32.mrb[4].mxu0  ;;  %v562_v29 = vpop.f32.mrb[4].mxu1 }
 0x1c7   : > { %v854_v30 = vpop.f32.mrb[5].mxu0  ;;  %v860_v31 = vpop.f32.mrb[5].mxu1  ;;  %v520_v32 = vadd.f32 %v519_v28, %v475_v27  ;;  %v563_v33 = vadd.f32 %v562_v29, %v475_v27 }
 0x1c8   : > { %v522_v34 = vpop.f32.mrb[6].mxu0  ;;  %v565_v35 = vpop.f32.mrb[6].mxu1 }
 0x1c9   : > { %569 = vst.msk [vmem:[%s364_s30] sm:$0xff] %vm568_vm4, %v520_v32  ;;  %570 = vst.msk [vmem:[%s364_s30 + $0x8] sm:$0xff] %vm568_vm4, %v563_v33  ;;  %v855_v36 = vpop.f32.mrb[7].mxu0  ;;  %v861_v37 = vpop.f32.mrb[7].mxu1 }
 0x1ca PF: > { %862 = vmatprep.subr.bf16.mxu0 %v899_v0  ;;  %870 = vmatprep.subr.bf16.mxu1 %v899_v0  ;;  %v577_v39 = vld [vmem:[%s978_s14] sm:$0xff]  ;;  %v578_v40 = vld [vmem:[%s978_s14 + $0x8] sm:$0xff]  ;;  %v579_v41 = vld [vmem:[%s978_s14 + $0x10] sm:$0xff]  ;;  %v585_v45 = vpack.c.bf16 %v520_v32, %v520_v32  ;;  %v586_v46 = vpack.c.bf16 %v563_v33, %v563_v33 }
 0x1cb   : > { %v581_v42 = vpack.c.bf16 %v578_v40, %v577_v39  ;;  %v580_v43 = vld [vmem:[%s978_s14 + $0x18] sm:$0xff]  ;;  %866 = vmatprep.mubr.msk.bf16.mxu0 %vm900_vm0, %v899_v0  ;;  %874 = vmatprep.mubr.msk.bf16.mxu1 %vm900_vm0, %v899_v0  ;;  %v583_v47 = vld [vmem:[%s1050_s7] sm:$0xff]  ;;  %v584_v48 = vld [vmem:[%s1050_s7 + $0x8] sm:$0xff] }
 0x1cc   : > { %v582_v44 = vpack.c.bf16 %v580_v43, %v579_v41 }
 0x1cd   : > { %863 = vmatpush3.bf16.msra.mxu0 %v581_v42  ;;  %871 = vmatpush3.bf16.msra.mxu1 %v581_v42 }
 0x1ce   : > { %864 = vmatprep.subr.bf16.mxu0 %v899_v0  ;;  %872 = vmatprep.subr.bf16.mxu1 %v899_v0 }
 0x1d1   : > { %865 = vmatpush3.bf16.msra.mxu0 %v582_v44  ;;  %873 = vmatpush3.bf16.msra.mxu1 %v582_v44 }
 0x1d4   : > { %867 = vmatmul.mubr.msk.bf16.vlgmr.msra.gmra.mrb[8].mxu0 %vm568_vm4, %v585_v45  ;;  %875 = vmatmul.mubr.msk.bf16.vlgmr.msra.gmra.mrb[8].mxu1 %vm568_vm4, %v586_v46 }
 0x2a7   : > { %v624_v49 = vpop.f32.mrb[8].mxu0  ;;  %v667_v50 = vpop.f32.mrb[8].mxu1 }
 0x2a8   : > { %v673_v51 = vadd.f32 %v624_v49, %v583_v47  ;;  %v674_v52 = vadd.f32 %v667_v50, %v584_v48  ;;  %v868_v53 = vpop.f32.mrb[9].mxu0  ;;  %v876_v54 = vpop.f32.mrb[9].mxu1 }
 0x2a9   : > { %v627_v55 = vpop.f32.mrb[10].mxu0  ;;  %v670_v56 = vpop.f32.mrb[10].mxu1 }
 0x2aa   : > { %675 = vst.msk [vmem:[%s1050_s7] sm:$0xff] %vm568_vm4, %v673_v51  ;;  %676 = vst.msk [vmem:[%s1050_s7 + $0x8] sm:$0xff] %vm568_vm4, %v674_v52  ;;  %v869_v57 = vpop.f32.mrb[11].mxu0  ;;  %v877_v58 = vpop.f32.mrb[11].mxu1 }
 0x2ab PF: > { %s18_s24 = sadd.s32 1, %s897_s24  }
 0x2ac   : > { %p15_p5 = scmp.ge.s32.totalorder %s18_s24, 5  }
 0x2ae   :  { %17 = sbr.rel (!%p15_p5) target bundleno = 1 (0x1), region = 101 }

// kernel: _lambda_.33
= control target key start
LH: loop header
LB: loop body
LE: loop exit
PB: predicated region body
PF: predicated region fallthrough
CT: control target
= control target key end

     0   :  { %19 = vsyncpa [#allocation3], 0  ;;  %s1333_s25 = smov 0   ;;  %s1460_s0 = inlined_call_operand.vmem [shape: f32[3,16,32], index: 0, kind: input, shape index: {}]   ;;  %s1461_s1 = inlined_call_operand.vmem [shape: f32[3,16,32], index: 1, kind: input, shape index: {}]   ;;  %s1462_s2 = inlined_call_operand.vmem [shape: f32[3,16,1], index: 2, kind: input, shape index: {}]   ;;  %s1463_s3 = inlined_call_operand.vmem [shape: f32[3,16,1], index: 3, kind: input, shape index: {}]   ;;  %s1464_s4 = inlined_call_operand.vmem [shape: f32[16,32], index: 4, kind: input, shape index: {}]   ;;  %s1465_s5 = inlined_call_operand.vmem [shape: f32[3,16,32], index: 5, kind: input, shape index: {}]   ;;  %s1466_s6 = inlined_call_operand.vmem [shape: f32[3,32,32], index: 6, kind: input, shape index: {}]   ;;  %s1467_s7 = inlined_call_operand.vmem [shape: f32[3,32,32], index: 7, kind: input, shape index: {}]   ;;  %s1468_s8 = inlined_call_operand.vmem [shape: f32[3,32,32], index: 8, kind: input, shape index: {}]   ;;  %s1469_s9 = inlined_call_operand.vmem [shape: f32[3,1,32], index: 9, kind: input, shape index: {}]   ;;  %s1470_s10 = inlined_call_operand.vmem [shape: f32[3,32,32], index: 10, kind: input, shape index: {}]   ;;  %s1471_s11 = inlined_call_operand.vmem [shape: f32[3,1,32], index: 11, kind: input, shape index: {}]   ;;  %s1472_s12 = inlined_call_operand.vmem [shape: f32[3,16,32], index: 12, kind: output, shape index: {0}]   ;;  %s1473_s13 = inlined_call_operand.hbm [shape: f32[16,32], index: 13, kind: output, shape index: {1}]  }
   0x1 LB: > { %s1339_s26 = sadd.s32 4294967295, %s1254_s25   ;;  %p1109_p0 = scmp.ge.s32.totalorder %s1254_s25, 1  ;;  %s1254_s25 = sphi %s1333_s25, %s25_s25  }
   0x2   : > { %p482_p1 = scmp.lt.s32.totalorder %s1254_s25, 4 }
   0x4   : > { %p483_p2 = pnand %p1109_p0, %p482_p1 }
   0x5   : > { %p572_p3 = scmp.lt.s32.totalorder (!%p483_p2), %s1339_s26, 2  ;;  %v1256_v0 = vmov (!%p483_p2), 0   ;;  %v1257_v1 = vmov (!%p483_p2), 0.0   ;;  %vm1258_vm0 = vmmov (!%p483_p2), 0   ;;  %v670_v11 = vld [vmem:[%s1464_s4] sm:$0xff] (!%p483_p2)  ;;  %v671_v13 = vld [vmem:[%s1464_s4 + $0x8] sm:$0xff] (!%p483_p2) }
   0x6   : > { %486 = sbr.rel (%p483_p2) target bundleno = 624 (0x270), region = 68  ;;  %1217 = vset.pattern.permute.xlu1 (!%p483_p2), %v1256_v0  ;;  %1216 = vset.pattern.permute.xlu0 (!%p483_p2), %v1256_v0  ;;  %v672_v21 = vpack.c.bf16 (!%p483_p2), %v671_v13, %v670_v11  ;;  %vm679_vm1 = vcmask (!%p483_p2), 261120   ;;  %p1136_p4 = scmp.ne.s32.totalorder (!%p483_p2), %s1339_s26, 0 }
   0x7   : > { %1163 = vmatprep.subr.bf16.mxu0 (!%p483_p2), %v1257_v1  ;;  %1171 = vmatprep.subr.bf16.mxu1 (!%p483_p2), %v1257_v1 }
   0x8   : > { %1167 = vmatprep.mubr.msk.bf16.mxu0 (!%p483_p2), %vm1258_vm0, %v1257_v1  ;;  %1175 = vmatprep.mubr.msk.bf16.mxu1 (!%p483_p2), %vm1258_vm0, %v1257_v1 }
   0xd   : > { %s1345_s27 = scalar_select %p572_p3, %s1339_s26, 2 }
   0xf   : > { %s1350_s28 = sshll.u32 %s1345_s27, 4  ;;  %s1353_s29 = sshll.u32 %s1345_s27, 5 }
  0x10   : > { %s591_s15 = scalar_lea.vmem %s1463_s3, %s1350_s28  ;;  %s586_s18 = scalar_lea.vmem %s1462_s2, %s1350_s28 }
  0x11   : > { %v645_v2 = vld [vmem:[%s591_s15] sm:$0xff]  ;;  %s606_s21 = scalar_lea.vmem %s1467_s7, %s1353_s29  ;;  %v646_v4 = vld [vmem:[%s591_s15 + $0x8] sm:$0xff]  ;;  %s611_s24 = scalar_lea.vmem %s1468_s8, %s1353_s29 }
  0x12   : > { %v631_v3 = vld [vmem:[%s586_s18] sm:$0xff]  ;;  %651 = vperm.xlu1 %1217, %v645_v2   ;;  %v674_v6 = vld [vmem:[%s606_s21 + $0x8] sm:$0xff]  ;;  %v675_v9 = vld [vmem:[%s606_s21 + $0x10] sm:$0xff]  ;;  %s601_s16 = scalar_lea.vmem %s1466_s6, %s1353_s29  ;;  %s596_s22 = scalar_lea.vmem %s1465_s5, %s1350_s28 }
  0x13   : > { %635 = vperm.xlu0 %1216, %v631_v3   ;;  %v673_v5 = vld [vmem:[%s606_s21] sm:$0xff]  ;;  %v632_v7 = vld [vmem:[%s586_s18 + $0x8] sm:$0xff]  ;;  %v676_v10 = vld [vmem:[%s606_s21 + $0x18] sm:$0xff]  ;;  %s581_s30 = scalar_lea.vmem %s1461_s1, %s1350_s28  ;;  %s576_s15 = scalar_lea.vmem %s1460_s0, %s1350_s28 }
  0x14   : > { %v677_v8 = vpack.c.bf16 %v674_v6, %v673_v5  ;;  %v678_v12 = vpack.c.bf16 %v676_v10, %v675_v9  ;;  %v664_v14 = vld [vmem:[%s601_s16] sm:$0xff]  ;;  %v665_v15 = vld [vmem:[%s601_s16 + $0x8] sm:$0xff]  ;;  %v666_v19 = vld [vmem:[%s601_s16 + $0x10] sm:$0xff]  ;;  %s619_s19 = scalar_lea.vmem %s1470_s10, %s1353_s29 }
  0x15   : > { %v771_v16 = vld [vmem:[%s611_s24] sm:$0xff]  ;;  %v772_v17 = vld [vmem:[%s611_s24 + $0x8] sm:$0xff]  ;;  %v668_v18 = vpack.c.bf16 %v665_v15, %v664_v14  ;;  %v667_v20 = vld [vmem:[%s601_s16 + $0x18] sm:$0xff]  ;;  %s627_s16 = scalar_lea.vmem %s1472_s12, %s1350_s28 }
  0x16   : > { %1164 = vmatpush3.bf16.msra.mxu0 %v677_v8  ;;  %656 = vperm.xlu1 %1217, %v646_v4   ;;  %v669_v22 = vpack.c.bf16 %v667_v20, %v666_v19  ;;  %v775_v23 = vpack.c.bf16 %v772_v17, %v771_v16  ;;  %v773_v24 = vld [vmem:[%s611_s24 + $0x10] sm:$0xff]  ;;  %v774_v25 = vld [vmem:[%s611_s24 + $0x18] sm:$0xff]  ;;  %v768_v27 = vld [vmem:[%s596_s22] sm:$0xff]  ;;  %s622_s24 = scalar_lea.vmem %s1471_s11, %s1345_s27 }
  0x17   : > { %640 = vperm.xlu0 %1216, %v632_v7   ;;  %1165 = vmatprep.subr.bf16.mxu0 %v1257_v1  ;;  %v776_v26 = vpack.c.bf16 %v774_v25, %v773_v24  ;;  %v769_v28 = vld [vmem:[%s596_s22 + $0x8] sm:$0xff]  ;;  %v647_v31 = vld [vmem:[%s581_s30] sm:$0xff]  ;;  %v837_v52 = vld [vmem:[%s619_s19 + $0x10] sm:$0xff]  ;;  %s614_s22 = scalar_lea.vmem %s1469_s9, %s1345_s27 }
  0x18   : > { %1172 = vmatpush3.bf16.msra.mxu1 %v668_v18  ;;  %v770_v29 = vpack.c.bf16 %v769_v28, %v768_v27  ;;  %v629_v33 = vld [vmem:[%s576_s15] sm:$0xff]  ;;  %v648_v34 = vld [vmem:[%s581_s30 + $0x8] sm:$0xff]  ;;  %v838_v53 = vld [vmem:[%s619_s19 + $0x18] sm:$0xff]  ;;  %v1259_v18 = vmov (!%p1136_p4), 0.0  }
  0x19   : > { %1173 = vmatprep.subr.bf16.mxu1 %v1257_v1  ;;  %v630_v35 = vld [vmem:[%s576_s15 + $0x8] sm:$0xff]  ;;  %v835_v49 = vld [vmem:[%s619_s19] sm:$0xff]  ;;  %v840_v55 = vpack.c.bf16 %v838_v53, %v837_v52  ;;  %900 = vst.msk [vmem:[#allocation2] sm:$0xff] (!%p1136_p4), %vm679_vm1, %v1259_v18  ;;  %901 = vst.msk [vmem:[#allocation2 + $0x8] sm:$0xff] (!%p1136_p4), %vm679_vm1, %v1259_v18 }
  0x1a   : > { %1166 = vmatpush3.bf16.msra.mxu0 %v678_v12  ;;  %v836_v50 = vld [vmem:[%s619_s19 + $0x8] sm:$0xff]  ;;  %v1133_v62 = vld [vmem:[%s614_s22] ss:$0 sm:$0xff] }
  0x1b   : > { %1179 = vmatprep.subr.bf16.mxu0 %v1257_v1  ;;  %v839_v51 = vpack.c.bf16 %v836_v50, %v835_v49  ;;  %v1134_v9 = vld [vmem:[%s622_s24] ss:$0 sm:$0xff] }
  0x1c   : > { %1174 = vmatpush3.bf16.msra.mxu1 %v669_v22 }
  0x1d   : > { %1168 = vmatmul.mubr.msk.bf16.vlgmr.msra.gmra.mrb[0].mxu0 %vm679_vm1, %v672_v21  ;;  %1187 = vmatprep.subr.bf16.mxu1 %v1257_v1 }
  0x1e   : > { %1180 = vmatpush3.bf16.msra.mxu0 %v775_v23  ;;  %1183 = vmatprep.mubr.msk.bf16.mxu0 %vm1258_vm0, %v1257_v1 }
  0x1f   : > { %1181 = vmatprep.subr.bf16.mxu0 %v1257_v1 }
  0x22   : > { %1182 = vmatpush3.bf16.msra.mxu0 %v776_v26 }
  0x25   : > { %1184 = vmatmul.mubr.msk.bf16.vlgmr.msra.gmra.mrb[4].mxu0 %vm679_vm1, %v770_v29 }
  0x91   : > { %v652_v30 = vpop.permute.xlu1 %651 }
  0x92   : > { %v636_v32 = vpop.permute.xlu0 %635  ;;  %v659_v36 = vmul.f32 %v652_v30, %v647_v31 }
  0x93   : > { %v643_v37 = vmul.f32 %v636_v32, %v629_v33 }
  0x95   : > { %v657_v38 = vpop.permute.xlu1 %656  ;;  %v661_v42 = vadd.f32 %v659_v36, %v643_v37 }
  0x96   : > { %v641_v39 = vpop.permute.xlu0 %640  ;;  %v660_v40 = vmul.f32 %v657_v38, %v648_v34 }
  0x97   : > { %v644_v41 = vmul.f32 %v641_v39, %v630_v35 }
  0x99   : > { %v662_v43 = vadd.f32 %v660_v40, %v644_v41 }
  0x9b   : > { %v663_v44 = vpack.c.bf16 %v662_v43, %v661_v42 }
  0x9d   : > { %1176 = vmatmul.mubr.msk.bf16.vlgmr.msra.gmra.mrb[0].mxu1 %vm679_vm1, %v663_v44 }
  0x9e   : > { %1191 = vmatprep.mubr.msk.bf16.mxu1 %vm1258_vm0, %v1257_v1  ;;  %1188 = vmatpush3.bf16.msra.mxu1 %v839_v51 }
  0x9f   : > { %1189 = vmatprep.subr.bf16.mxu1 %v1257_v1 }
  0xa2   : > { %1190 = vmatpush3.bf16.msra.mxu1 %v840_v55 }
  0xf0   : > { %v717_v45 = vpop.f32.mrb[0].mxu0 }
  0xf1   : > { %v1169_v46 = vpop.f32.mrb[1].mxu0 }
  0xf2   : > { %v720_v47 = vpop.f32.mrb[2].mxu0 }
  0xf3   : > { %v1170_v48 = vpop.f32.mrb[3].mxu0 }
  0xf8   : > { %v814_v54 = vpop.f32.mrb[4].mxu0 }
  0xf9   : > { %v1185_v56 = vpop.f32.mrb[5].mxu0 }
  0xfa   : > { %v817_v57 = vpop.f32.mrb[6].mxu0 }
  0xfb   : > { %v1186_v58 = vpop.f32.mrb[7].mxu0 }
 0x170   : > { %v761_v59 = vpop.f32.mrb[0].mxu1 }
 0x171   : > { %v762_v60 = vadd.f32 %v761_v59, %v717_v45  ;;  %v1177_v61 = vpop.f32.mrb[1].mxu1 }
 0x172   : > { %v764_v63 = vpop.f32.mrb[2].mxu1 }
 0x173   : > { %v821_v0 = vadd.f32 %v814_v54, %v762_v60  ;;  %v765_v1 = vadd.f32 %v764_v63, %v720_v47  ;;  %v1178_v2 = vpop.f32.mrb[3].mxu1 }
 0x175   : > { %v830_v3 = vadd.f32 %v1133_v62, %v821_v0  ;;  %v822_v4 = vadd.f32 %v817_v57, %v765_v1 }
 0x177   : > { %v831_v5 = vadd.f32 %v1133_v62, %v822_v4  ;;  %v832_v6 = vmax.f32 %v830_v3, 0.0 }
 0x179   : > { %v833_v7 = vmax.f32 %v831_v5, 0.0 }
 0x17b   : > { %v834_v8 = vpack.c.bf16 %v833_v7, %v832_v6 }
 0x17d   : > { %1192 = vmatmul.mubr.msk.bf16.vlgmr.msra.gmra.mrb[4].mxu1 %vm679_vm1, %v834_v8 }
 0x24f   : > { %899 = sbr.rel (%p1136_p4) target bundleno = 598 (0x256), region = 72 }
 0x250   : > { %v885_v10 = vpop.f32.mrb[4].mxu1 }
 0x251   : > { %v886_v11 = vadd.f32 %v1134_v9, %v885_v10  ;;  %v1193_v12 = vpop.f32.mrb[5].mxu1 }
 0x252   : > { %v888_v13 = vpop.f32.mrb[6].mxu1 }
 0x253   : > { %892 = vst.msk [vmem:[%s627_s16] sm:$0xff] %vm679_vm1, %v886_v11  ;;  %v894_v14 = vsub.f32 %v886_v11, %v629_v33  ;;  %v889_v15 = vadd.f32 %v1134_v9, %v888_v13  ;;  %v1194_v16 = vpop.f32.mrb[7].mxu1 }
 0x255   : > { %893 = vst.msk [vmem:[%s627_s16 + $0x8] sm:$0xff] %vm679_vm1, %v889_v15  ;;  %v895_v17 = vsub.f32 %v889_v15, %v630_v35 }
 0x256 PF: > { %v902_v19 = vld [vmem:[#allocation2] sm:$0xff]  ;;  %v904_v20 = vmul.f32 %v894_v14, %v894_v14  ;;  %v903_v21 = vld [vmem:[#allocation2 + $0x8] sm:$0xff]  ;;  %p1199_p5 = scmp.eq.s32.totalorder %s1339_s26, 2  ;;  %s1260_s27 = smov [#allocation2]  }
 0x257   : > { %v905_v22 = vmul.f32 %v895_v17, %v895_v17  ;;  %s924_s28 = sshll.u32 %s1260_s27, 4  ;;  %s925_s28 = int_to_ptr.vmem [resolvable:$true] %s924_s28 }
 0x258   : > { %v906_v23 = vadd.f32 %v904_v20, %v902_v19  ;;  %s1218_s15 = scalar_lea.vmem %s925_s28, 256  ;;  %p1225_p9 = scmp.lt.s32.totalorder %s925_s28, %s925_s28 }
 0x259   : > { %v907_v24 = vadd.f32 %v905_v22, %v903_v21  ;;  %p1219_p6 = scmp.ne.s32.totalorder %s925_s28, %s1218_s15  ;;  %p1226_p10 = scmp.lt.s32.totalorder %s1218_s15, %s1218_s15 }
 0x25a   : > { %908 = vst.msk [vmem:[#allocation2] sm:$0xff] %vm679_vm1, %v906_v23 }
 0x25b   : > { %909 = vst.msk [vmem:[#allocation2 + $0x8] sm:$0xff] %vm679_vm1, %v907_v24  ;;  %p1220_p7 = pnand %p1219_p6, %p1199_p5  ;;  %p1227_p11 = por %p1226_p10, %p1225_p9 }
 0x25d   : > { %p1221_p8 = pneg %p1220_p7 }
 0x25f   : > { %p1228_p12 = pnand %p1227_p11, %p1221_p8 }
 0x261   : > { %1231 = shalt.err (!%p1228_p12)
}
 0x262   : > { %s1232_s19 = scalar_lea.hbm %s1473_s13, 256 }
 0x263   : > { %p1233_p13 = scmp.ne.s32.totalorder %s1473_s13, %s1232_s19  ;;  %p1238_p2 = scmp.lt.u32.totalorder %s1232_s19, %s1473_s13 }
 0x265   : > { %p1234_p0 = pnand %p1233_p13, %p1199_p5 }
 0x267   : > { %p1235_p1 = pneg %p1234_p0 }
 0x269   : > { %p1240_p3 = pnand %p1238_p2, %p1235_p1 }
 0x26b   : > { %1243 = shalt.err (!%p1240_p3)
}
 0x26c   : > { %s1261_s23 = smov 128   ;;  %s1262_s24 = smov 8  }
 0x26d   : > { %1196 = dma.vmem_to_hbm [thread:$0]  (%p1199_p5), %s925_s28, 256, %s1473_s13, [#allocation3], %s1261_s23, %s1261_s23, %s1262_s24  }
 0x26e   : > { %1249 = dma.done.wait (%p1199_p5), [#allocation3], 256  }
 0x26f   : > { %1251 = vsyncadd (%p1199_p5), [#allocation3], 4294967040 }
 0x270 PF: > { %s25_s25 = sadd.s32 1, %s1254_s25  }
 0x271   : > { %p22_p4 = scmp.ge.s32.totalorder %s25_s25, 5  }
 0x273   :  { %24 = sbr.rel (!%p22_p4) target bundleno = 1 (0x1), region = 141 }
 0x27a   :  { %948 = vsyncpa [#allocation3], 1 }
 0x27b   :  { %950 = vsyncpa [#allocation3 + $0x1], 1 }

// kernel: _lambda_.34
= control target key start
LH: loop header
LB: loop body
LE: loop exit
PB: predicated region body
PF: predicated region fallthrough
CT: control target
= control target key end

     0   :  { %v99_v0 = vmov 0.0   ;;  %vm100_vm0 = vmmov 0   ;;  %vm31_vm1 = vcmask 261120   ;;  %vm76_vm2 = vcmask 785408   ;;  %s148_s1 = inlined_call_operand.vmem [shape: f32[32,96], index: 1, kind: input, shape index: {}]   ;;  %s149_s0 = inlined_call_operand.vmem [shape: f32[12,32], index: 0, kind: input, shape index: {}]   ;;  %s150_s2 = inlined_call_operand.vmem [shape: f32[1,96], index: 2, kind: input, shape index: {}]   ;;  %s151_s3 = inlined_call_operand.vmem [shape: f32[12,96], index: 3, kind: output, shape index: {}]  }
   0x1   :  { %89 = vmatprep.subr.bf16.mxu0 %v99_v0  ;;  %v18_v1 = vld [vmem:[%s148_s1] sm:$0xff]  ;;  %v19_v2 = vld [vmem:[%s148_s1 + $0x8] sm:$0xff]  ;;  %v20_v3 = vld [vmem:[%s148_s1 + $0x10] sm:$0xff]  ;;  %93 = vmatprep.mubr.msk.bf16.mxu0 %vm100_vm0, %v99_v0  ;;  %vm78_vm3 = vcmask 781312  }
   0x2   :  { %v22_v4 = vpack.c.bf16 %v19_v2, %v18_v1  ;;  %v21_v5 = vld [vmem:[%s148_s1 + $0x18] sm:$0xff]  ;;  %v15_v7 = vld [vmem:[%s149_s0] sm:$0xff]  ;;  %v16_v8 = vld [vmem:[%s149_s0 + $0x8] sm:$0xf] }
   0x3   :  { %v23_v6 = vpack.c.bf16 %v21_v5, %v20_v3  ;;  %v17_v9 = vpack.c.bf16 %v16_v8, %v15_v7  ;;  %v84_v10 = vld [vmem:[%s150_s2] ss:$0 sm:$0xff] }
   0x4   :  { %90 = vmatpush3.bf16.msra.mxu0 %v22_v4 }
   0x5   :  { %91 = vmatprep.subr.bf16.mxu0 %v99_v0 }
   0x8   :  { %92 = vmatpush3.bf16.msra.mxu0 %v23_v6 }
   0xb   :  { %94 = vmatmul.mubr.msk.bf16.vlgmr.msra.gmra.mrb[0].mxu0 %vm31_vm1, %v17_v9 }
  0xde   :  { %v69_v11 = vpop.f32.mrb[0].mxu0 }
  0xdf   :  { %v70_v12 = vadd.f32 %v84_v10, %v69_v11  ;;  %v95_v13 = vpop.f32.mrb[1].mxu0 }
  0xe0   :  { %v72_v14 = vpop.f32.mrb[2].mxu0 }
  0xe1   :  { %77 = vst.msk [vmem:[%s151_s3] sm:$0xff] %vm76_vm2, %v70_v12  ;;  %v73_v15 = vadd.f32 %v84_v10, %v72_v14  ;;  %v96_v16 = vpop.f32.mrb[3].mxu0 }
  0xe3   :  { %79 = vst.msk [vmem:[%s151_s3 + $0x8] sm:$0xf] %vm78_vm3, %v73_v15 }

// kernel: _lambda_.35
= control target key start
LH: loop header
LB: loop body
LE: loop exit
PB: predicated region body
PF: predicated region fallthrough
CT: control target
= control target key end

     0   :  { %v562_v0 = vmov 0.0   ;;  %vm35_vm0 = vcmask 130048   ;;  %vm563_vm1 = vmmov 0   ;;  %vm224_vm2 = vcmask 46080   ;;  %s680_s1 = inlined_call_operand.vmem [shape: f32[4,6,16], index: 1, kind: input, shape index: {}]   ;;  %s681_s0 = inlined_call_operand.vmem [shape: f32[4,6,16], index: 0, kind: input, shape index: {}]   ;;  %s682_s2 = inlined_call_operand.vmem [shape: f32[4,6,16], index: 2, kind: input, shape index: {}]   ;;  %s683_s3 = inlined_call_operand.vmem [shape: f32[4,6,16], index: 3, kind: output, shape index: {}]  }
   0x1   :  { %496 = vmatprep.subr.bf16.mxu0 %v562_v0  ;;  %v19_v1 = vld [vmem:[%s680_s1] sm:$0x3f]  ;;  %502 = vmatprep.subr.bf16.mxu1 %v562_v0  ;;  %v20_v2 = vld [vmem:[%s680_s1 + $0x8] sm:$0x3f]  ;;  %v21_v5 = vld [vmem:[%s680_s1 + $0x10] sm:$0x3f] }
   0x2   :  { %v31_v3 = vpack.c.bf16 %v19_v1, %v19_v1  ;;  %v32_v4 = vpack.c.bf16 %v20_v2, %v20_v2  ;;  %498 = vmatprep.mubr.msk.bf16.mxu0 %vm563_vm1, %v562_v0  ;;  %504 = vmatprep.mubr.msk.bf16.mxu1 %vm563_vm1, %v562_v0  ;;  %v22_v6 = vld [vmem:[%s680_s1 + $0x18] sm:$0x3f]  ;;  %v15_v9 = vld [vmem:[%s681_s0] sm:$0x3f]  ;;  %v16_v10 = vld [vmem:[%s681_s0 + $0x8] sm:$0x3f]  ;;  %v33_v11 = vpack.c.bf16 %v21_v5, %v21_v5 }
   0x3   :  { %v34_v12 = vpack.c.bf16 %v22_v6, %v22_v6  ;;  %v27_v13 = vpack.c.bf16 %v15_v9, %v15_v9  ;;  %v28_v14 = vpack.c.bf16 %v16_v10, %v16_v10  ;;  %v17_v17 = vld [vmem:[%s681_s0 + $0x10] sm:$0x3f]  ;;  %v18_v18 = vld [vmem:[%s681_s0 + $0x18] sm:$0x3f]  ;;  %v23_v2 = vld [vmem:[%s682_s2] sm:$0x3f] }
   0x4   :  { %v40_v7 = vsel %vm35_vm0, %v31_v3, 0  ;;  %v86_v8 = vsel %vm35_vm0, %v32_v4, 0  ;;  %v132_v15 = vsel %vm35_vm0, %v33_v11, 0  ;;  %v29_v19 = vpack.c.bf16 %v17_v17, %v17_v17  ;;  %v24_v5 = vld [vmem:[%s682_s2 + $0x8] sm:$0x3f] }
   0x5   :  { %497 = vmatpush3.bf16.xpose.msra.mxu0 %v40_v7  ;;  %503 = vmatpush3.bf16.xpose.msra.mxu1 %v86_v8  ;;  %v178_v16 = vsel %vm35_vm0, %v34_v12, 0  ;;  %v30_v20 = vpack.c.bf16 %v18_v18, %v18_v18  ;;  %v273_v3 = vpack.c.bf16 %v23_v2, %v23_v2  ;;  %vm281_vm3 = vcmask 1042432   ;;  %v25_v8 = vld [vmem:[%s682_s2 + $0x10] sm:$0x3f]  ;;  %v26_v11 = vld [vmem:[%s682_s2 + $0x18] sm:$0x3f] }
   0x6   :  { %508 = vmatprep.subr.bf16.mxu0 %v562_v0  ;;  %514 = vmatprep.subr.bf16.mxu1 %v562_v0  ;;  %v274_v6 = vpack.c.bf16 %v24_v5, %v24_v5  ;;  %v275_v9 = vpack.c.bf16 %v25_v8, %v25_v8  ;;  %v276_v12 = vpack.c.bf16 %v26_v11, %v26_v11  ;;  %vm277_vm4 = vcmask 48128  }
   0x7   :  { %v283_v4 = vsel %vm281_vm3, %v273_v3, 0  ;;  %vm463_vm5 = vcmask 128000  }
   0x8   :  { %v329_v7 = vsel %vm281_vm3, %v274_v6, 0  ;;  %v375_v10 = vsel %vm281_vm3, %v275_v9, 0 }
   0xc   :  { %499 = vmatmul.mubr.msk.bf16.vlgmr.msra.gmra.mrb[0].mxu0 %vm35_vm0, %v27_v13  ;;  %505 = vmatmul.mubr.msk.bf16.vlgmr.msra.gmra.mrb[0].mxu1 %vm35_vm0, %v28_v14  ;;  %v421_v13 = vsel %vm281_vm3, %v276_v12, 0 }
   0xd   :  { %509 = vmatpush3.bf16.xpose.msra.mxu0 %v132_v15  ;;  %515 = vmatpush3.bf16.xpose.msra.mxu1 %v178_v16 }
   0xe   :  { %510 = vmatprep.mubr.msk.bf16.mxu0 %vm563_vm1, %v562_v0  ;;  %516 = vmatprep.mubr.msk.bf16.mxu1 %vm563_vm1, %v562_v0 }
   0xf   :  { %520 = vmatprep.subr.bf16.mxu0 %v562_v0  ;;  %526 = vmatprep.subr.bf16.mxu1 %v562_v0 }
  0x14   :  { %511 = vmatmul.mubr.msk.bf16.vlgmr.msra.gmra.mrb[4].mxu0 %vm35_vm0, %v29_v19  ;;  %517 = vmatmul.mubr.msk.bf16.vlgmr.msra.gmra.mrb[4].mxu1 %vm35_vm0, %v30_v20 }
  0x15   :  { %522 = vmatprep.mubr.msk.bf16.mxu0 %vm563_vm1, %v562_v0  ;;  %528 = vmatprep.mubr.msk.bf16.mxu1 %vm563_vm1, %v562_v0 }
  0x16   :  { %521 = vmatpush3.bf16.msra.mxu0 %v283_v4  ;;  %527 = vmatpush3.bf16.msra.mxu1 %v329_v7 }
  0x17   :  { %532 = vmatprep.subr.bf16.mxu0 %v562_v0  ;;  %538 = vmatprep.subr.bf16.mxu1 %v562_v0 }
  0xdf   :  { %v76_v21 = vpop.f32.mrb[0].mxu0  ;;  %v122_v22 = vpop.f32.mrb[0].mxu1 }
  0xe0   :  { %v220_v23 = vmul.f32 0.25, %v76_v21  ;;  %v500_v24 = vpop.f32.mrb[1].mxu0  ;;  %v221_v25 = vmul.f32 0.25, %v122_v22  ;;  %v506_v26 = vpop.f32.mrb[1].mxu1 }
  0xe1   :  { %v79_v27 = vpop.f32.mrb[2].mxu0  ;;  %v125_v28 = vpop.f32.mrb[2].mxu1 }
  0xe2   :  { %v501_v29 = vpop.f32.mrb[3].mxu0  ;;  %v225_v30 = vsel %vm224_vm2, %v220_v23, -inf  ;;  %v507_v31 = vpop.f32.mrb[3].mxu1  ;;  %v228_v32 = vsel %vm224_vm2, %v221_v25, -inf }
  0xe3   :  { %226 = vmax.xlane.f32.xlu0 %v225_v30 }
  0xe7   :  { %229 = vmax.xlane.f32.xlu0 %v228_v32  ;;  %v168_v33 = vpop.f32.mrb[4].mxu0  ;;  %v214_v34 = vpop.f32.mrb[4].mxu1 }
  0xe8   :  { %v222_v35 = vmul.f32 0.25, %v168_v33  ;;  %v512_v36 = vpop.f32.mrb[5].mxu0  ;;  %v223_v37 = vmul.f32 0.25, %v214_v34  ;;  %v518_v38 = vpop.f32.mrb[5].mxu1 }
  0xe9   :  { %v171_v39 = vpop.f32.mrb[6].mxu0  ;;  %v217_v40 = vpop.f32.mrb[6].mxu1 }
  0xea   :  { %v513_v41 = vpop.f32.mrb[7].mxu0  ;;  %v231_v42 = vsel %vm224_vm2, %v222_v35, -inf  ;;  %v519_v43 = vpop.f32.mrb[7].mxu1  ;;  %v234_v44 = vsel %vm224_vm2, %v223_v37, -inf }
  0xeb   :  { %232 = vmax.xlane.f32.xlu1 %v231_v42 }
  0xef   :  { %235 = vmax.xlane.f32.xlu1 %v234_v44 }
 0x170   :  { %v227_v45 = vpop.xlane.xlu0 %226 }
 0x171   :  { %v237_v46 = vsub.f32 %v220_v23, %v227_v45 }
 0x173   :  { %v241_v47 = vmul.f32 1.442695, %v237_v46 }
 0x174   :  { %v230_v48 = vpop.xlane.xlu0 %229 }
 0x175   :  { %546 = vpow2.f32 %v241_v47  ;;  %v238_v49 = vsub.f32 %v221_v25, %v230_v48 }
 0x177   :  { %v243_v50 = vmul.f32 1.442695, %v238_v49 }
 0x178   :  { %v233_v51 = vpop.xlane.xlu1 %232 }
 0x179   :  { %548 = vpow2.f32 %v243_v50  ;;  %v239_v52 = vsub.f32 %v222_v35, %v233_v51 }
 0x17b   :  { %v245_v53 = vmul.f32 1.442695, %v239_v52 }
 0x17c   :  { %v236_v54 = vpop.xlane.xlu1 %235 }
 0x17d   :  { %550 = vpow2.f32 %v245_v53  ;;  %v240_v55 = vsub.f32 %v223_v37, %v236_v54 }
 0x17f   :  { %v547_v56 = vpop.eup %546  ;;  %v247_v57 = vmul.f32 1.442695, %v240_v55 }
 0x180   :  { %v249_v58 = vsel %vm224_vm2, %v547_v56, 0.0 }
 0x181   :  { %552 = vpow2.f32 %v247_v57  ;;  %250 = vadd.xlane.f32.xlu0 %v249_v58 }
 0x183   :  { %v549_v59 = vpop.eup %548 }
 0x184   :  { %v252_v60 = vsel %vm224_vm2, %v549_v59, 0.0 }
 0x185   :  { %253 = vadd.xlane.f32.xlu1 %v252_v60 }
 0x187   :  { %v551_v61 = vpop.eup %550 }
 0x188   :  { %v255_v62 = vsel %vm224_vm2, %v551_v61, 0.0 }
 0x189   :  { %256 = vadd.xlane.f32.xlu0 %v255_v62 }
 0x18b   :  { %v553_v63 = vpop.eup %552 }
 0x18c   :  { %v258_v1 = vsel %vm224_vm2, %v553_v63, 0.0 }
 0x18d   :  { %259 = vadd.xlane.f32.xlu1 %v258_v1 }
 0x20e   :  { %v251_v14 = vpop.xlane.xlu0 %250 }
 0x20f   :  { %554 = vrcp.f32 %v251_v14 }
 0x212   :  { %v254_v15 = vpop.xlane.xlu1 %253 }
 0x213   :  { %556 = vrcp.f32 %v254_v15 }
 0x216   :  { %v257_v16 = vpop.xlane.xlu0 %256 }
 0x217   :  { %558 = vrcp.f32 %v257_v16 }
 0x219   :  { %v555_v17 = vpop.eup %554 }
 0x21a   :  { %v265_v18 = vmul.f32 %v555_v17, %v547_v56  ;;  %v260_v19 = vpop.xlane.xlu1 %259 }
 0x21b   :  { %560 = vrcp.f32 %v260_v19 }
 0x21c   :  { %v269_v20 = vpack.c.bf16 %v265_v18, %v265_v18 }
 0x21d   :  { %v557_v21 = vpop.eup %556 }
 0x21e   :  { %v266_v22 = vmul.f32 %v557_v21, %v549_v59  ;;  %523 = vmatmul.mubr.msk.bf16.vlgmr.msra.gmra.mrb[8].mxu0 %vm277_vm4, %v269_v20 }
 0x21f   :  { %533 = vmatpush3.bf16.msra.mxu0 %v375_v10  ;;  %534 = vmatprep.mubr.msk.bf16.mxu0 %vm563_vm1, %v562_v0 }
 0x220   :  { %v270_v23 = vpack.c.bf16 %v266_v22, %v266_v22 }
 0x221   :  { %v559_v24 = vpop.eup %558 }
 0x222   :  { %v267_v25 = vmul.f32 %v559_v24, %v551_v61  ;;  %529 = vmatmul.mubr.msk.bf16.vlgmr.msra.gmra.mrb[8].mxu1 %vm277_vm4, %v270_v23 }
 0x223   :  { %539 = vmatpush3.bf16.msra.mxu1 %v421_v13  ;;  %540 = vmatprep.mubr.msk.bf16.mxu1 %vm563_vm1, %v562_v0 }
 0x224   :  { %v271_v26 = vpack.c.bf16 %v267_v25, %v267_v25 }
 0x225   :  { %v561_v27 = vpop.eup %560 }
 0x226   :  { %v268_v28 = vmul.f32 %v561_v27, %v553_v63  ;;  %535 = vmatmul.mubr.msk.bf16.vlgmr.msra.gmra.mrb[12].mxu0 %vm277_vm4, %v271_v26 }
 0x228   :  { %v272_v29 = vpack.c.bf16 %v268_v28, %v268_v28 }
 0x22a   :  { %541 = vmatmul.mubr.msk.bf16.vlgmr.msra.gmra.mrb[12].mxu1 %vm277_vm4, %v272_v29 }
 0x2f1   :  { %v319_v30 = vpop.f32.mrb[8].mxu0 }
 0x2f2   :  { %464 = vst.msk [vmem:[%s683_s3] sm:$0x3f] %vm463_vm5, %v319_v30  ;;  %v524_v31 = vpop.f32.mrb[9].mxu0 }
 0x2f3   :  { %v322_v32 = vpop.f32.mrb[10].mxu0 }
 0x2f4   :  { %v525_v33 = vpop.f32.mrb[11].mxu0 }
 0x2f5   :  { %v365_v34 = vpop.f32.mrb[8].mxu1 }
 0x2f6   :  { %465 = vst.msk [vmem:[%s683_s3 + $0x8] sm:$0x3f] %vm463_vm5, %v365_v34  ;;  %v530_v0 = vpop.f32.mrb[9].mxu1 }
 0x2f7   :  { %v368_v35 = vpop.f32.mrb[10].mxu1 }
 0x2f8   :  { %v531_v36 = vpop.f32.mrb[11].mxu1 }
 0x2f9   :  { %v411_v37 = vpop.f32.mrb[12].mxu0 }
 0x2fa   :  { %466 = vst.msk [vmem:[%s683_s3 + $0x10] sm:$0x3f] %vm463_vm5, %v411_v37  ;;  %v536_v38 = vpop.f32.mrb[13].mxu0 }
 0x2fb   :  { %v414_v39 = vpop.f32.mrb[14].mxu0 }
 0x2fc   :  { %v537_v40 = vpop.f32.mrb[15].mxu0 }
 0x2fd   :  { %v457_v41 = vpop.f32.mrb[12].mxu1 }
 0x2fe   :  { %467 = vst.msk [vmem:[%s683_s3 + $0x18] sm:$0x3f] %vm463_vm5, %v457_v41  ;;  %v542_v42 = vpop.f32.mrb[13].mxu1 }
 0x2ff   :  { %v460_v43 = vpop.f32.mrb[14].mxu1 }
 0x300   :  { %v543_v44 = vpop.f32.mrb[15].mxu1 }

// kernel: _lambda_.36
= control target key start
LH: loop header
LB: loop body
LE: loop exit
PB: predicated region body
PF: predicated region fallthrough
CT: control target
= control target key end

     0   :  { %v98_v0 = vmov 0.0   ;;  %vm99_vm0 = vmmov 0   ;;  %vm31_vm1 = vcmask 261120   ;;  %vm77_vm2 = vcmask 257024   ;;  %s147_s1 = inlined_call_operand.vmem [shape: f32[32,32], index: 1, kind: input, shape index: {}]   ;;  %s148_s0 = inlined_call_operand.vmem [shape: f32[12,32], index: 0, kind: input, shape index: {}]   ;;  %s149_s2 = inlined_call_operand.vmem [shape: f32[1,32], index: 2, kind: input, shape index: {}]   ;;  %s150_s3 = inlined_call_operand.vmem [shape: f32[12,32], index: 3, kind: output, shape index: {}]  }
   0x1   :  { %88 = vmatprep.subr.bf16.mxu0 %v98_v0  ;;  %v18_v1 = vld [vmem:[%s147_s1] sm:$0xff]  ;;  %v19_v2 = vld [vmem:[%s147_s1 + $0x8] sm:$0xff]  ;;  %v20_v3 = vld [vmem:[%s147_s1 + $0x10] sm:$0xff]  ;;  %92 = vmatprep.mubr.msk.bf16.mxu0 %vm99_vm0, %v98_v0 }
   0x2   :  { %v22_v4 = vpack.c.bf16 %v19_v2, %v18_v1  ;;  %v21_v5 = vld [vmem:[%s147_s1 + $0x18] sm:$0xff]  ;;  %v15_v7 = vld [vmem:[%s148_s0] sm:$0xff]  ;;  %v16_v8 = vld [vmem:[%s148_s0 + $0x8] sm:$0xf] }
   0x3   :  { %v23_v6 = vpack.c.bf16 %v21_v5, %v20_v3  ;;  %v17_v9 = vpack.c.bf16 %v16_v8, %v15_v7  ;;  %v83_v10 = vld [vmem:[%s149_s2] ss:$0 sm:$0xff] }
   0x4   :  { %89 = vmatpush3.bf16.msra.mxu0 %v22_v4 }
   0x5   :  { %90 = vmatprep.subr.bf16.mxu0 %v98_v0 }
   0x8   :  { %91 = vmatpush3.bf16.msra.mxu0 %v23_v6 }
   0xb   :  { %93 = vmatmul.mubr.msk.bf16.vlgmr.msra.gmra.mrb[0].mxu0 %vm31_vm1, %v17_v9 }
  0xde   :  { %v69_v11 = vpop.f32.mrb[0].mxu0 }
  0xdf   :  { %v70_v12 = vadd.f32 %v83_v10, %v69_v11  ;;  %v94_v13 = vpop.f32.mrb[1].mxu0 }
  0xe0   :  { %v72_v14 = vpop.f32.mrb[2].mxu0 }
  0xe1   :  { %76 = vst.msk [vmem:[%s150_s3] sm:$0xff] %vm31_vm1, %v70_v12  ;;  %v73_v15 = vadd.f32 %v83_v10, %v72_v14  ;;  %v95_v16 = vpop.f32.mrb[3].mxu0 }
  0xe3   :  { %78 = vst.msk [vmem:[%s150_s3 + $0x8] sm:$0xf] %vm77_vm2, %v73_v15 }

// kernel: _lambda_.37
= control target key start
LH: loop header
LB: loop body
LE: loop exit
PB: predicated region body
PF: predicated region fallthrough
CT: control target
= control target key end

     0   :  { %v1512_v3 = vmov 0   ;;  %vm204_vm0 = vcmask 261120   ;;  %vm1320_vm1 = vcmask 257024   ;;  %s2744_s1 = inlined_call_operand.vmem [shape: f32[32,2048], index: 1, kind: input, shape index: {}]   ;;  %s2745_s0 = inlined_call_operand.vmem [shape: f32[12,32], index: 0, kind: input, shape index: {}]   ;;  %s2746_s3 = inlined_call_operand.vmem [shape: f32[2048,32], index: 3, kind: input, shape index: {}]   ;;  %s2747_s2 = inlined_call_operand.vmem [shape: f32[1,2048], index: 2, kind: input, shape index: {}]   ;;  %s2748_s4 = inlined_call_operand.vmem [shape: f32[1,32], index: 4, kind: input, shape index: {}]   ;;  %s2749_s5 = inlined_call_operand.vmem [shape: f32[12,32], index: 5, kind: output, shape index: {}]  }
   0x1   :  { %v25_v0 = vld [vmem:[%s2744_s1 + $0x8] sm:$0xff]  ;;  %v27_v2 = vld [vmem:[%s2744_s1 + $0x18] sm:$0xff]  ;;  %240 = vmatprep.mubr.bf16.mxu0 %v1512_v3  ;;  %283 = vmatprep.mubr.bf16.mxu1 %v1512_v3  ;;  %v24_v6 = vld [vmem:[%s2744_s1] sm:$0xff] }
   0x2   :  { %v41_v1 = vld [vmem:[%s2744_s1 + $0x88] sm:$0xff]  ;;  %v43_v5 = vld [vmem:[%s2744_s1 + $0x98] sm:$0xff]  ;;  %v40_v7 = vld [vmem:[%s2744_s1 + $0x80] sm:$0xff] }
   0x3   :  { %v89_v4 = vpack.c.bf16 %v41_v1, %v25_v0  ;;  %v91_v8 = vpack.c.bf16 %v43_v5, %v27_v2  ;;  %v88_v9 = vpack.c.bf16 %v40_v7, %v24_v6  ;;  %v26_v10 = vld [vmem:[%s2744_s1 + $0x10] sm:$0xff]  ;;  %v57_v12 = vld [vmem:[%s2744_s1 + $0x108] sm:$0xff]  ;;  %v59_v15 = vld [vmem:[%s2744_s1 + $0x118] sm:$0xff] }
   0x4   :  { %v42_v11 = vld [vmem:[%s2744_s1 + $0x90] sm:$0xff]  ;;  %v73_v14 = vld [vmem:[%s2744_s1 + $0x188] sm:$0xff]  ;;  %v75_v16 = vld [vmem:[%s2744_s1 + $0x198] sm:$0xff] }
   0x5   :  { %208 = vmatprep.subr.bf16.mxu0 %v89_v4  ;;  %v90_v13 = vpack.c.bf16 %v42_v11, %v26_v10  ;;  %251 = vmatprep.subr.bf16.mxu1 %v91_v8  ;;  %v105_v17 = vpack.c.bf16 %v73_v14, %v57_v12  ;;  %v107_v18 = vpack.c.bf16 %v75_v16, %v59_v15  ;;  %v56_v19 = vld [vmem:[%s2744_s1 + $0x100] sm:$0xff]  ;;  %v58_v21 = vld [vmem:[%s2744_s1 + $0x110] sm:$0xff]  ;;  %v22_v25 = vld [vmem:[%s2745_s0 + $0x8] sm:$0xf] }
   0x6   :  { %209 = vmatpush1.bf16.msra.mxu0 %v88_v9  ;;  %v72_v20 = vld [vmem:[%s2744_s1 + $0x180] sm:$0xff]  ;;  %v74_v23 = vld [vmem:[%s2744_s1 + $0x190] sm:$0xff]  ;;  %v29_v27 = vld [vmem:[%s2744_s1 + $0x28] sm:$0xff] }
   0x7   :  { %252 = vmatpush1.bf16.msra.mxu1 %v90_v13  ;;  %v104_v22 = vpack.c.bf16 %v72_v20, %v56_v19  ;;  %v21_v24 = vld [vmem:[%s2745_s0] sm:$0xff]  ;;  %210 = vmatprep.subr.bf16.mxu0 %v105_v17  ;;  %v106_v26 = vpack.c.bf16 %v74_v23, %v58_v21  ;;  %v45_v28 = vld [vmem:[%s2744_s1 + $0xa8] sm:$0xff]  ;;  %v31_v33 = vld [vmem:[%s2744_s1 + $0x38] sm:$0xff] }
   0x8   :  { %253 = vmatprep.subr.bf16.mxu1 %v107_v18  ;;  %v28_v29 = vld [vmem:[%s2744_s1 + $0x20] sm:$0xff]  ;;  %v1608_v30 = vpack.c.bf16 %v22_v25, %v21_v24  ;;  %v93_v31 = vpack.c.bf16 %v45_v28, %v29_v27  ;;  %v47_v34 = vld [vmem:[%s2744_s1 + $0xb8] sm:$0xff]  ;;  %v30_v37 = vld [vmem:[%s2744_s1 + $0x30] sm:$0xff] }
   0x9   :  { %v44_v32 = vld [vmem:[%s2744_s1 + $0xa0] sm:$0xff]  ;;  %v95_v36 = vpack.c.bf16 %v47_v34, %v31_v33  ;;  %v46_v38 = vld [vmem:[%s2744_s1 + $0xb0] sm:$0xff]  ;;  %v61_v39 = vld [vmem:[%s2744_s1 + $0x128] sm:$0xff] }
   0xa   :  { %211 = vmatpush1.bf16.msra.mxu0 %v104_v22  ;;  %v92_v35 = vpack.c.bf16 %v44_v32, %v28_v29  ;;  %v94_v40 = vpack.c.bf16 %v46_v38, %v30_v37  ;;  %v77_v41 = vld [vmem:[%s2744_s1 + $0x1a8] sm:$0xff]  ;;  %v60_v42 = vld [vmem:[%s2744_s1 + $0x120] sm:$0xff]  ;;  %v63_v45 = vld [vmem:[%s2744_s1 + $0x138] sm:$0xff] }
   0xb   :  { %254 = vmatpush1.bf16.msra.mxu1 %v106_v26  ;;  %294 = vmatprep.subr.bf16.mxu0 %v93_v31  ;;  %v76_v43 = vld [vmem:[%s2744_s1 + $0x1a0] sm:$0xff]  ;;  %v109_v44 = vpack.c.bf16 %v77_v41, %v61_v39  ;;  %v79_v46 = vld [vmem:[%s2744_s1 + $0x1b8] sm:$0xff]  ;;  %v62_v47 = vld [vmem:[%s2744_s1 + $0x130] sm:$0xff] }
   0xc   :  { %337 = vmatprep.subr.bf16.mxu1 %v95_v36  ;;  %v111_v48 = vpack.c.bf16 %v79_v46, %v63_v45  ;;  %v78_v49 = vld [vmem:[%s2744_s1 + $0x1b0] sm:$0xff]  ;;  %v33_v50 = vld [vmem:[%s2744_s1 + $0x48] sm:$0xff]  ;;  %v108_v52 = vpack.c.bf16 %v76_v43, %v60_v42  ;;  %v32_v53 = vld [vmem:[%s2744_s1 + $0x40] sm:$0xff] }
   0xd   :  { %1326 = vmatmul.mubr.msk.bf16.vlgmr.msra.gmra.mrb[0].mxu0 %vm204_vm0, %v1608_v30  ;;  %v49_v51 = vld [vmem:[%s2744_s1 + $0xc8] sm:$0xff]  ;;  %v35_v54 = vld [vmem:[%s2744_s1 + $0x58] sm:$0xff]  ;;  %v110_v55 = vpack.c.bf16 %v78_v49, %v62_v47  ;;  %v48_v57 = vld [vmem:[%s2744_s1 + $0xc0] sm:$0xff] }
   0xe   :  { %1327 = vmatmul.mubr.msk.bf16.vlgmr.msra.gmra.mrb[0].mxu1 %vm204_vm0, %v1608_v30  ;;  %295 = vmatpush1.bf16.msra.mxu0 %v92_v35  ;;  %v97_v56 = vpack.c.bf16 %v49_v51, %v33_v50  ;;  %v51_v58 = vld [vmem:[%s2744_s1 + $0xd8] sm:$0xff]  ;;  %v34_v59 = vld [vmem:[%s2744_s1 + $0x50] sm:$0xff]  ;;  %v65_v62 = vld [vmem:[%s2744_s1 + $0x148] sm:$0xff]  ;;  %v96_v2 = vpack.c.bf16 %v48_v57, %v32_v53 }
   0xf   :  { %338 = vmatpush1.bf16.msra.mxu1 %v94_v40  ;;  %296 = vmatprep.subr.bf16.mxu0 %v109_v44  ;;  %v99_v60 = vpack.c.bf16 %v51_v58, %v35_v54  ;;  %v50_v61 = vld [vmem:[%s2744_s1 + $0xd0] sm:$0xff]  ;;  %v81_v63 = vld [vmem:[%s2744_s1 + $0x1c8] sm:$0xff]  ;;  %v67_v0 = vld [vmem:[%s2744_s1 + $0x158] sm:$0xff] }
  0x10   :  { %339 = vmatprep.subr.bf16.mxu1 %v111_v48  ;;  %326 = vmatprep.mubr.bf16.mxu0 %v1512_v3  ;;  %v83_v1 = vld [vmem:[%s2744_s1 + $0x1d8] sm:$0xff]  ;;  %v98_v4 = vpack.c.bf16 %v50_v61, %v34_v59  ;;  %v113_v5 = vpack.c.bf16 %v81_v63, %v65_v62  ;;  %v64_v6 = vld [vmem:[%s2744_s1 + $0x140] sm:$0xff]  ;;  %v66_v8 = vld [vmem:[%s2744_s1 + $0x150] sm:$0xff] }
  0x11   :  { %369 = vmatprep.mubr.bf16.mxu1 %v1512_v3  ;;  %v80_v7 = vld [vmem:[%s2744_s1 + $0x1c0] sm:$0xff]  ;;  %v115_v9 = vpack.c.bf16 %v83_v1, %v67_v0  ;;  %v82_v10 = vld [vmem:[%s2744_s1 + $0x1d0] sm:$0xff]  ;;  %v37_v11 = vld [vmem:[%s2744_s1 + $0x68] sm:$0xff] }
  0x12   :  { %297 = vmatpush1.bf16.msra.mxu0 %v108_v52  ;;  %v53_v12 = vld [vmem:[%s2744_s1 + $0xe8] sm:$0xff]  ;;  %v39_v13 = vld [vmem:[%s2744_s1 + $0x78] sm:$0xff]  ;;  %v112_v15 = vpack.c.bf16 %v80_v7, %v64_v6  ;;  %v114_v16 = vpack.c.bf16 %v82_v10, %v66_v8  ;;  %v36_v18 = vld [vmem:[%s2744_s1 + $0x60] sm:$0xff] }
  0x13   :  { %340 = vmatpush1.bf16.msra.mxu1 %v110_v55  ;;  %380 = vmatprep.subr.bf16.mxu0 %v97_v56  ;;  %v55_v14 = vld [vmem:[%s2744_s1 + $0xf8] sm:$0xff]  ;;  %v101_v17 = vpack.c.bf16 %v53_v12, %v37_v11  ;;  %v52_v19 = vld [vmem:[%s2744_s1 + $0xe0] sm:$0xff]  ;;  %v38_v20 = vld [vmem:[%s2744_s1 + $0x70] sm:$0xff] }
  0x14   :  { %423 = vmatprep.subr.bf16.mxu1 %v99_v60  ;;  %v103_v21 = vpack.c.bf16 %v55_v14, %v39_v13  ;;  %v54_v22 = vld [vmem:[%s2744_s1 + $0xf0] sm:$0xff]  ;;  %v69_v23 = vld [vmem:[%s2744_s1 + $0x168] sm:$0xff]  ;;  %v71_v25 = vld [vmem:[%s2744_s1 + $0x178] sm:$0xff]  ;;  %v100_v27 = vpack.c.bf16 %v52_v19, %v36_v18 }
  0x15   :  { %1328 = vmatmul.mubr.msk.bf16.vlgmr.msra.gmra.mrb[4].mxu0 %vm204_vm0, %v1608_v30  ;;  %v85_v24 = vld [vmem:[%s2744_s1 + $0x1e8] sm:$0xff]  ;;  %v87_v26 = vld [vmem:[%s2744_s1 + $0x1f8] sm:$0xff]  ;;  %v102_v28 = vpack.c.bf16 %v54_v22, %v38_v20  ;;  %v68_v31 = vld [vmem:[%s2744_s1 + $0x160] sm:$0xff] }
  0x16   :  { %1329 = vmatmul.mubr.msk.bf16.vlgmr.msra.gmra.mrb[4].mxu1 %vm204_vm0, %v1608_v30  ;;  %381 = vmatpush1.bf16.msra.mxu0 %v96_v2  ;;  %v117_v29 = vpack.c.bf16 %v85_v24, %v69_v23  ;;  %v84_v32 = vld [vmem:[%s2744_s1 + $0x1e0] sm:$0xff]  ;;  %v70_v33 = vld [vmem:[%s2744_s1 + $0x170] sm:$0xff]  ;;  %v119_v34 = vpack.c.bf16 %v87_v26, %v71_v25  ;;  %v617_v37 = vld [vmem:[%s2746_s3 + $0x88] sm:$0xff] }
  0x17   :  { %424 = vmatpush1.bf16.msra.mxu1 %v98_v4  ;;  %382 = vmatprep.subr.bf16.mxu0 %v113_v5  ;;  %v86_v35 = vld [vmem:[%s2744_s1 + $0x1f0] sm:$0xff]  ;;  %v616_v36 = vld [vmem:[%s2746_s3 + $0x80] sm:$0xff]  ;;  %v649_v39 = vld [vmem:[%s2746_s3 + $0x188] sm:$0xff]  ;;  %v116_v40 = vpack.c.bf16 %v84_v32, %v68_v31 }
  0x18   :  { %425 = vmatprep.subr.bf16.mxu1 %v115_v9  ;;  %412 = vmatprep.mubr.bf16.mxu0 %v1512_v3  ;;  %v648_v38 = vld [vmem:[%s2746_s3 + $0x180] sm:$0xff]  ;;  %v118_v41 = vpack.c.bf16 %v86_v35, %v70_v33  ;;  %v864_v42 = vpack.c.bf16 %v617_v37, %v616_v36  ;;  %v601_v44 = vld [vmem:[%s2746_s3 + $0x8] sm:$0xff]  ;;  %v618_v48 = vld [vmem:[%s2746_s3 + $0x90] sm:$0xff] }
  0x19   :  { %455 = vmatprep.mubr.bf16.mxu1 %v1512_v3  ;;  %v600_v43 = vld [vmem:[%s2746_s3] sm:$0xff]  ;;  %v880_v46 = vpack.c.bf16 %v649_v39, %v648_v38  ;;  %v633_v47 = vld [vmem:[%s2746_s3 + $0x108] sm:$0xff]  ;;  %v619_v49 = vld [vmem:[%s2746_s3 + $0x98] sm:$0xff] }
  0x1a   :  { %383 = vmatpush1.bf16.msra.mxu0 %v112_v15  ;;  %v632_v45 = vld [vmem:[%s2746_s3 + $0x100] sm:$0xff]  ;;  %v650_v50 = vld [vmem:[%s2746_s3 + $0x190] sm:$0xff]  ;;  %v651_v51 = vld [vmem:[%s2746_s3 + $0x198] sm:$0xff]  ;;  %v856_v52 = vpack.c.bf16 %v601_v44, %v600_v43  ;;  %v865_v54 = vpack.c.bf16 %v619_v49, %v618_v48 }
  0x1b   :  { %426 = vmatpush1.bf16.msra.mxu1 %v114_v16  ;;  %466 = vmatprep.subr.bf16.mxu0 %v101_v17  ;;  %v872_v53 = vpack.c.bf16 %v633_v47, %v632_v45  ;;  %v602_v55 = vld [vmem:[%s2746_s3 + $0x10] sm:$0xff]  ;;  %v881_v57 = vpack.c.bf16 %v651_v51, %v650_v50  ;;  %v635_v58 = vld [vmem:[%s2746_s3 + $0x118] sm:$0xff]  ;;  %v620_v59 = vld [vmem:[%s2746_s3 + $0xa0] sm:$0xff] }
  0x1c   :  { %509 = vmatprep.subr.bf16.mxu1 %v103_v21  ;;  %v634_v56 = vld [vmem:[%s2746_s3 + $0x110] sm:$0xff]  ;;  %v621_v60 = vld [vmem:[%s2746_s3 + $0xa8] sm:$0xff]  ;;  %v652_v61 = vld [vmem:[%s2746_s3 + $0x1a0] sm:$0xff] }
  0x1d   :  { %1330 = vmatmul.mubr.msk.bf16.vlgmr.msra.gmra.mrb[8].mxu0 %vm204_vm0, %v1608_v30  ;;  %v653_v62 = vld [vmem:[%s2746_s3 + $0x1a8] sm:$0xff]  ;;  %v873_v0 = vpack.c.bf16 %v635_v58, %v634_v56  ;;  %v866_v1 = vpack.c.bf16 %v621_v60, %v620_v59  ;;  %v604_v2 = vld [vmem:[%s2746_s3 + $0x20] sm:$0xff]  ;;  %v622_v7 = vld [vmem:[%s2746_s3 + $0xb0] sm:$0xff] }
  0x1e   :  { %1331 = vmatmul.mubr.msk.bf16.vlgmr.msra.gmra.mrb[8].mxu1 %vm204_vm0, %v1608_v30  ;;  %467 = vmatpush1.bf16.msra.mxu0 %v100_v27  ;;  %v605_v4 = vld [vmem:[%s2746_s3 + $0x28] sm:$0xff]  ;;  %v636_v5 = vld [vmem:[%s2746_s3 + $0x120] sm:$0xff]  ;;  %v623_v8 = vld [vmem:[%s2746_s3 + $0xb8] sm:$0xff] }
  0x1f   :  { %510 = vmatpush1.bf16.msra.mxu1 %v102_v28  ;;  %468 = vmatprep.subr.bf16.mxu0 %v117_v29  ;;  %v637_v6 = vld [vmem:[%s2746_s3 + $0x128] sm:$0xff]  ;;  %v654_v9 = vld [vmem:[%s2746_s3 + $0x1b0] sm:$0xff]  ;;  %v655_v10 = vld [vmem:[%s2746_s3 + $0x1b8] sm:$0xff]  ;;  %v858_v11 = vpack.c.bf16 %v605_v4, %v604_v2  ;;  %v867_v13 = vpack.c.bf16 %v623_v8, %v622_v7 }
  0x20   :  { %511 = vmatprep.subr.bf16.mxu1 %v119_v34  ;;  %498 = vmatprep.mubr.bf16.mxu0 %v1512_v3  ;;  %v874_v12 = vpack.c.bf16 %v637_v6, %v636_v5  ;;  %v606_v14 = vld [vmem:[%s2746_s3 + $0x30] sm:$0xff]  ;;  %v607_v15 = vld [vmem:[%s2746_s3 + $0x38] sm:$0xff]  ;;  %v883_v17 = vpack.c.bf16 %v655_v10, %v654_v9  ;;  %v624_v19 = vld [vmem:[%s2746_s3 + $0xc0] sm:$0xff] }
  0x21   :  { %541 = vmatprep.mubr.bf16.mxu1 %v1512_v3  ;;  %v603_v3 = vld [vmem:[%s2746_s3 + $0x18] sm:$0xff]  ;;  %v638_v16 = vld [vmem:[%s2746_s3 + $0x130] sm:$0xff]  ;;  %v625_v20 = vld [vmem:[%s2746_s3 + $0xc8] sm:$0xff]  ;;  %v859_v23 = vpack.c.bf16 %v607_v15, %v606_v14 }
  0x22   :  { %469 = vmatpush1.bf16.msra.mxu0 %v116_v40  ;;  %v857_v63 = vpack.c.bf16 %v603_v3, %v602_v55  ;;  %v639_v18 = vld [vmem:[%s2746_s3 + $0x138] sm:$0xff]  ;;  %v656_v21 = vld [vmem:[%s2746_s3 + $0x1c0] sm:$0xff]  ;;  %v657_v22 = vld [vmem:[%s2746_s3 + $0x1c8] sm:$0xff]  ;;  %v868_v25 = vpack.c.bf16 %v625_v20, %v624_v19 }
  0x23   :  { %512 = vmatpush1.bf16.msra.mxu1 %v118_v41  ;;  %1335 = vmatprep.subr.bf16.mxu0 %v864_v42  ;;  %v875_v24 = vpack.c.bf16 %v639_v18, %v638_v16  ;;  %v608_v26 = vld [vmem:[%s2746_s3 + $0x40] sm:$0xff]  ;;  %v609_v27 = vld [vmem:[%s2746_s3 + $0x48] sm:$0xff]  ;;  %v884_v29 = vpack.c.bf16 %v657_v22, %v656_v21  ;;  %v626_v32 = vld [vmem:[%s2746_s3 + $0xd0] sm:$0xff] }
  0x24   :  { %1357 = vmatprep.subr.bf16.mxu1 %v880_v46  ;;  %v640_v28 = vld [vmem:[%s2746_s3 + $0x140] sm:$0xff]  ;;  %v641_v31 = vld [vmem:[%s2746_s3 + $0x148] sm:$0xff]  ;;  %v627_v33 = vld [vmem:[%s2746_s3 + $0xd8] sm:$0xff]  ;;  %v860_v36 = vpack.c.bf16 %v609_v27, %v608_v26 }
  0x25   :  { %1332 = vmatmul.mubr.msk.bf16.vlgmr.msra.gmra.mrb[12].mxu0 %vm204_vm0, %v1608_v30  ;;  %v658_v34 = vld [vmem:[%s2746_s3 + $0x1d0] sm:$0xff]  ;;  %v659_v35 = vld [vmem:[%s2746_s3 + $0x1d8] sm:$0xff]  ;;  %v876_v37 = vpack.c.bf16 %v641_v31, %v640_v28  ;;  %v869_v38 = vpack.c.bf16 %v627_v33, %v626_v32  ;;  %v628_v46 = vld [vmem:[%s2746_s3 + $0xe0] sm:$0xff] }
  0x26   :  { %1333 = vmatmul.mubr.msk.bf16.vlgmr.msra.gmra.mrb[12].mxu1 %vm204_vm0, %v1608_v30  ;;  %1336 = vmatpush3.bf16.msra.mxu0 %v856_v52  ;;  %v882_v30 = vpack.c.bf16 %v653_v62, %v652_v61  ;;  %v610_v39 = vld [vmem:[%s2746_s3 + $0x50] sm:$0xff]  ;;  %v611_v40 = vld [vmem:[%s2746_s3 + $0x58] sm:$0xff]  ;;  %v885_v41 = vpack.c.bf16 %v659_v35, %v658_v34  ;;  %v629_v47 = vld [vmem:[%s2746_s3 + $0xe8] sm:$0xff] }
  0x27   :  { %1358 = vmatpush3.bf16.msra.mxu1 %v872_v53  ;;  %1337 = vmatprep.subr.bf16.mxu0 %v865_v54  ;;  %v642_v42 = vld [vmem:[%s2746_s3 + $0x150] sm:$0xff]  ;;  %v643_v43 = vld [vmem:[%s2746_s3 + $0x158] sm:$0xff]  ;;  %v861_v44 = vpack.c.bf16 %v611_v40, %v610_v39  ;;  %v660_v48 = vld [vmem:[%s2746_s3 + $0x1e0] sm:$0xff]  ;;  %v870_v49 = vpack.c.bf16 %v629_v47, %v628_v46 }
  0x28   :  { %1359 = vmatprep.subr.bf16.mxu1 %v881_v57  ;;  %v877_v45 = vpack.c.bf16 %v643_v43, %v642_v42  ;;  %v661_v50 = vld [vmem:[%s2746_s3 + $0x1e8] sm:$0xff]  ;;  %v612_v51 = vld [vmem:[%s2746_s3 + $0x60] sm:$0xff]  ;;  %v630_v57 = vld [vmem:[%s2746_s3 + $0xf0] sm:$0xff] }
  0x29   :  { %v613_v52 = vld [vmem:[%s2746_s3 + $0x68] sm:$0xff]  ;;  %v886_v53 = vpack.c.bf16 %v661_v50, %v660_v48  ;;  %v644_v55 = vld [vmem:[%s2746_s3 + $0x160] sm:$0xff]  ;;  %v631_v58 = vld [vmem:[%s2746_s3 + $0xf8] sm:$0xff] }
  0x2a   :  { %1338 = vmatpush3.bf16.msra.mxu0 %v857_v63  ;;  %v862_v54 = vpack.c.bf16 %v613_v52, %v612_v51  ;;  %v645_v3 = vld [vmem:[%s2746_s3 + $0x168] sm:$0xff]  ;;  %v662_v59 = vld [vmem:[%s2746_s3 + $0x1f0] sm:$0xff]  ;;  %v871_v60 = vpack.c.bf16 %v631_v58, %v630_v57  ;;  %v663_v61 = vld [vmem:[%s2746_s3 + $0x1f8] sm:$0xff] }
  0x2b   :  { %1360 = vmatpush3.bf16.msra.mxu1 %v873_v0  ;;  %1339 = vmatprep.subr.bf16.mxu0 %v866_v1  ;;  %v878_v56 = vpack.c.bf16 %v645_v3, %v644_v55  ;;  %v614_v62 = vld [vmem:[%s2746_s3 + $0x70] sm:$0xff]  ;;  %v615_v63 = vld [vmem:[%s2746_s3 + $0x78] sm:$0xff]  ;;  %v887_v0 = vpack.c.bf16 %v663_v61, %v662_v59  ;;  %v681_v6 = vld [vmem:[%s2746_s3 + $0x288] sm:$0xff] }
  0x2c   :  { %1361 = vmatprep.subr.bf16.mxu1 %v882_v30  ;;  %v863_v1 = vpack.c.bf16 %v615_v63, %v614_v62  ;;  %v646_v2 = vld [vmem:[%s2746_s3 + $0x170] sm:$0xff]  ;;  %v647_v4 = vld [vmem:[%s2746_s3 + $0x178] sm:$0xff]  ;;  %v680_v30 = vld [vmem:[%s2746_s3 + $0x280] sm:$0xff] }
  0x2d   :  { %v879_v5 = vpack.c.bf16 %v647_v4, %v646_v2  ;;  %v712_v7 = vld [vmem:[%s2746_s3 + $0x380] sm:$0xff]  ;;  %v896_v8 = vpack.c.bf16 %v681_v6, %v680_v30  ;;  %v713_v9 = vld [vmem:[%s2746_s3 + $0x388] sm:$0xff]  ;;  %v2031_v52 = vld [vmem:[%s2746_s3 + $0x390] sm:$0xff] }
  0x2e   :  { %1340 = vmatpush3.bf16.msra.mxu0 %v858_v11  ;;  %v912_v10 = vpack.c.bf16 %v713_v9, %v712_v7  ;;  %v124_v11 = vlaneseq  ;;  %v120_v14 = vld [vmem:[%s2747_s2] sm:$0xff]  ;;  %v1994_v22 = vld [vmem:[%s2746_s3 + $0x208] sm:$0xff]  ;;  %v2048_v59 = vld [vmem:[%s2746_s3 + $0x218] sm:$0xff] }
  0x2f   :  { %1362 = vmatpush3.bf16.msra.mxu1 %v874_v12  ;;  %1341 = vmatprep.subr.bf16.mxu0 %v867_v13  ;;  %v1989_v21 = vld [vmem:[%s2746_s3 + $0x200] sm:$0xff]  ;;  %v2058_v61 = vld [vmem:[%s2746_s3 + $0x318] sm:$0xff]  ;;  %v2068_v2 = vld [vmem:[%s2746_s3 + $0x2a8] sm:$0xff] }
  0x30   :  { %1363 = vmatprep.subr.bf16.mxu1 %v883_v17  ;;  %v1971_v12 = vshrl.u32 %v124_v11, 7  ;;  %v888_v33 = vpack.c.bf16 %v1994_v22, %v1989_v21  ;;  %v2073_v4 = vld [vmem:[%s2746_s3 + $0x3a0] sm:$0xff] }
  0x31   :  { %v2087_v9 = vld [vmem:[%s2746_s3 + $0x220] sm:$0xff] }
  0x32   :  { %1342 = vmatpush3.bf16.msra.mxu0 %v859_v23  ;;  %v126_v13 = vsub.s32 0, %v1971_v12  ;;  %v134_v15 = vsub.s32 2, %v1971_v12  ;;  %v130_v16 = vsub.s32 1, %v1971_v12  ;;  %v138_v17 = vsub.s32 3, %v1971_v12 }
  0x33   :  { %1364 = vmatpush3.bf16.msra.mxu1 %v875_v24  ;;  %1343 = vmatprep.subr.bf16.mxu0 %v868_v25  ;;  %v2001_v24 = vld [vmem:[%s2746_s3 + $0x300] sm:$0xff]  ;;  %v2006_v25 = vld [vmem:[%s2746_s3 + $0x308] sm:$0xff]  ;;  %v142_v26 = vsub.s32 4, %v1971_v12  ;;  %v146_v28 = vsub.s32 5, %v1971_v12  ;;  %v150_v39 = vsub.s32 6, %v1971_v12  ;;  %v154_v47 = vsub.s32 7, %v1971_v12 }
  0x34   :  { %1365 = vmatprep.subr.bf16.mxu1 %v884_v29  ;;  %v127_v18 = vrot.slane %v120_v14, %v126_v13  ;;  %v135_v19 = vrot.slane %v120_v14, %v134_v15  ;;  %v131_v20 = vrot.slane %v120_v14, %v130_v16  ;;  %v139_v23 = vrot.slane %v120_v14, %v138_v17 }
  0x35   :  { %v143_v46 = vrot.slane %v120_v14, %v142_v26  ;;  %v147_v55 = vrot.slane %v120_v14, %v146_v28  ;;  %v155_v11 = vrot.slane %v120_v14, %v154_v47 }
  0x36   :  { %1344 = vmatpush3.bf16.msra.mxu0 %v860_v36 }
  0x37   :  { %1366 = vmatpush3.bf16.msra.mxu1 %v876_v37  ;;  %1345 = vmatprep.subr.bf16.mxu0 %v869_v38  ;;  %v904_v38 = vpack.c.bf16 %v2006_v25, %v2001_v24 }
  0x38   :  { %1367 = vmatprep.subr.bf16.mxu1 %v885_v41 }
  0x3a   :  { %1346 = vmatpush3.bf16.msra.mxu0 %v861_v44  ;;  %v2018_v44 = vld [vmem:[%s2746_s3 + $0x290] sm:$0xff] }
  0x3b   :  { %1368 = vmatpush3.bf16.msra.mxu1 %v877_v45  ;;  %1347 = vmatprep.subr.bf16.mxu0 %v870_v49  ;;  %v2023_v45 = vld [vmem:[%s2746_s3 + $0x298] sm:$0xff] }
  0x3c   :  { %1369 = vmatprep.subr.bf16.mxu1 %v886_v53  ;;  %v2036_v53 = vld [vmem:[%s2746_s3 + $0x398] sm:$0xff]  ;;  %v897_v7 = vpack.c.bf16 %v2023_v45, %v2018_v44 }
  0x3e   :  { %1348 = vmatpush3.bf16.msra.mxu0 %v862_v54  ;;  %v2041_v54 = vld [vmem:[%s2746_s3 + $0x210] sm:$0xff] }
  0x3f   :  { %1370 = vmatpush3.bf16.msra.mxu1 %v878_v56  ;;  %1349 = vmatprep.subr.bf16.mxu0 %v871_v60  ;;  %v2053_v60 = vld [vmem:[%s2746_s3 + $0x310] sm:$0xff] }
  0x40   :  { %1371 = vmatprep.subr.bf16.mxu1 %v887_v0 }
  0x42   :  { %1350 = vmatpush3.bf16.msra.mxu0 %v863_v1  ;;  %v2063_v1 = vld [vmem:[%s2746_s3 + $0x2a0] sm:$0xff] }
  0x43   :  { %1372 = vmatpush3.bf16.msra.mxu1 %v879_v5  ;;  %1379 = vmatprep.subr.bf16.mxu0 %v896_v8  ;;  %v151_v5 = vrot.slane %v120_v14, %v150_v39  ;;  %v2082_v8 = vld [vmem:[%s2746_s3 + $0x3a8] sm:$0xff] }
  0x44   :  { %1401 = vmatprep.subr.bf16.mxu1 %v912_v10  ;;  %v2092_v10 = vld [vmem:[%s2746_s3 + $0x228] sm:$0xff] }
  0xe0   :  { %v242_v27 = vpop.f32.mrb[0].mxu0 }
  0xe1   :  { %v243_v29 = vadd.f32 %v242_v27, %v127_v18  ;;  %v285_v31 = vpop.f32.mrb[0].mxu1  ;;  %v244_v32 = vpop.f32.mrb[1].mxu0  ;;  %v2103_v27 = vld [vmem:[%s2746_s3 + $0x320] sm:$0xff] }
  0xe2   :  { %v286_v34 = vadd.f32 %v285_v31, %v135_v19  ;;  %v245_v35 = vadd.f32 %v244_v32, %v131_v20  ;;  %v287_v36 = vpop.f32.mrb[1].mxu1  ;;  %v246_v37 = vpop.f32.mrb[2].mxu0  ;;  %v905_v32 = vpack.c.bf16 %v2058_v61, %v2053_v60  ;;  %v2154_v60 = vld [vmem:[%s2746_s3 + $0x230] sm:$0xff] }
  0xe3   :  { %v288_v40 = vadd.f32 %v287_v36, %v139_v23  ;;  %v247_v41 = vadd.f32 %v246_v37, %v127_v18  ;;  %v289_v42 = vpop.f32.mrb[2].mxu1  ;;  %v248_v43 = vpop.f32.mrb[3].mxu0  ;;  %v552_v3 = vmax.f32 %v243_v29, 0.0  ;;  %v2108_v29 = vld [vmem:[%s2746_s3 + $0x328] sm:$0xff] }
  0xe4   :  { %v554_v48 = vmax.f32 %v286_v34, 0.0  ;;  %v290_v49 = vadd.f32 %v289_v42, %v135_v19  ;;  %v249_v50 = vadd.f32 %v248_v43, %v131_v20  ;;  %v291_v51 = vpop.f32.mrb[3].mxu1  ;;  %v553_v62 = vmax.f32 %v245_v35, 0.0 }
  0xe5   :  { %v555_v56 = vmax.f32 %v288_v40, 0.0  ;;  %v568_v57 = vmax.f32 %v247_v41, 0.0  ;;  %v292_v58 = vadd.f32 %v291_v51, %v139_v23  ;;  %v913_v20 = vpack.c.bf16 %v2036_v53, %v2031_v52 }
  0xe6   :  { %v570_v63 = vmax.f32 %v290_v49, 0.0  ;;  %v569_v0 = vmax.f32 %v249_v50, 0.0  ;;  %v889_v23 = vpack.c.bf16 %v2048_v59, %v2041_v54  ;;  %v898_v34 = vpack.c.bf16 %v2068_v2, %v2063_v1 }
  0xe7   :  { %v584_v30 = vpack.c.bf16 %v568_v57, %v552_v3  ;;  %v571_v6 = vmax.f32 %v292_v58, 0.0  ;;  %v914_v40 = vpack.c.bf16 %v2082_v8, %v2073_v4  ;;  %v890_v41 = vpack.c.bf16 %v2092_v10, %v2087_v9  ;;  %v2131_v3 = vld [vmem:[%s2746_s3 + $0x2b0] sm:$0xff]  ;;  %v704_v9 = vld [vmem:[%s2746_s3 + $0x340] sm:$0xff]  ;;  %v705_v10 = vld [vmem:[%s2746_s3 + $0x348] sm:$0xff] }
  0xe8   :  { %v586_v18 = vpack.c.bf16 %v570_v63, %v554_v48  ;;  %v585_v19 = vpack.c.bf16 %v569_v0, %v553_v62  ;;  %v328_v31 = vpop.f32.mrb[4].mxu0  ;;  %v2121_v48 = vld [vmem:[%s2747_s2 + $0x8] sm:$0xff]  ;;  %v906_v49 = vpack.c.bf16 %v2108_v29, %v2103_v27  ;;  %v2172_v63 = vld [vmem:[%s2746_s3 + $0x338] sm:$0xff]  ;;  %v690_v29 = vld [vmem:[%s2746_s3 + $0x2d0] sm:$0xff] }
  0xe9   :  { %v587_v14 = vpack.c.bf16 %v571_v6, %v555_v56  ;;  %v329_v35 = vadd.f32 %v328_v31, %v143_v46  ;;  %v330_v36 = vpop.f32.mrb[5].mxu0  ;;  %v371_v37 = vpop.f32.mrb[4].mxu1  ;;  %v2136_v56 = vld [vmem:[%s2746_s3 + $0x2b8] sm:$0xff]  ;;  %v159_v25 = vrot.slane %v2121_v48, %v126_v13  ;;  %v163_v2 = vrot.slane %v2121_v48, %v130_v16 }
  0xea   :  { %1023 = vmatprep.mubr.bf16.mxu0 %v585_v19  ;;  %v331_v42 = vadd.f32 %v330_v36, %v147_v55  ;;  %v332_v43 = vpop.f32.mrb[6].mxu0  ;;  %v372_v44 = vadd.f32 %v371_v37, %v151_v5  ;;  %v373_v45 = vpop.f32.mrb[5].mxu1  ;;  %v167_v13 = vrot.slane %v2121_v48, %v134_v15  ;;  %v899_v4 = vpack.c.bf16 %v2136_v56, %v2131_v3 }
  0xeb   :  { %1064 = vmatprep.mubr.bf16.mxu1 %v587_v14  ;;  %1024 = vmatmul.mubr.bf16.vlgmr.msra.gmra.mrb[16].mxu0 %v584_v30  ;;  %v556_v50 = vmax.f32 %v329_v35, 0.0  ;;  %v333_v51 = vadd.f32 %v332_v43, %v143_v46  ;;  %v334_v52 = vpop.f32.mrb[7].mxu0  ;;  %v374_v53 = vadd.f32 %v373_v45, %v155_v11  ;;  %v375_v54 = vpop.f32.mrb[6].mxu1  ;;  %v2141_v46 = vld [vmem:[%s2746_s3 + $0x3b0] sm:$0xff]  ;;  %v2190_v30 = vld [vmem:[%s2746_s3 + $0x2c8] sm:$0xff]  ;;  %v171_v15 = vrot.slane %v2121_v48, %v138_v17 }
  0xec   :  { %1065 = vmatmul.mubr.bf16.vlgmr.msra.gmra.mrb[16].mxu1 %v586_v18  ;;  %1380 = vmatpush3.bf16.msra.mxu0 %v888_v33  ;;  %v557_v57 = vmax.f32 %v331_v42, 0.0  ;;  %v558_v58 = vmax.f32 %v372_v44, 0.0  ;;  %v335_v59 = vadd.f32 %v334_v52, %v147_v55  ;;  %v376_v21 = vadd.f32 %v375_v54, %v151_v5  ;;  %v377_v22 = vpop.f32.mrb[7].mxu1  ;;  %v2149_v33 = vld [vmem:[%s2746_s3 + $0x3b8] sm:$0xff]  ;;  %v2185_v5 = vld [vmem:[%s2746_s3 + $0x2c0] sm:$0xff]  ;;  %v2209_v18 = vld [vmem:[%s2746_s3 + $0x3c8] sm:$0xff] }
  0xed   :  { %1402 = vmatpush3.bf16.msra.mxu1 %v904_v38  ;;  %1381 = vmatprep.subr.bf16.mxu0 %v897_v7  ;;  %v2159_v55 = vld [vmem:[%s2746_s3 + $0x238] sm:$0xff]  ;;  %v572_v61 = vmax.f32 %v333_v51, 0.0  ;;  %v559_v62 = vmax.f32 %v374_v53, 0.0  ;;  %v378_v24 = vadd.f32 %v377_v22, %v155_v11  ;;  %v2167_v38 = vld [vmem:[%s2746_s3 + $0x330] sm:$0xff]  ;;  %v915_v7 = vpack.c.bf16 %v2149_v33, %v2141_v46  ;;  %v2204_v11 = vld [vmem:[%s2746_s3 + $0x3c0] sm:$0xff] }
  0xee   :  { %1403 = vmatprep.subr.bf16.mxu1 %v913_v20  ;;  %v573_v0 = vmax.f32 %v335_v59, 0.0  ;;  %v574_v1 = vmax.f32 %v376_v21, 0.0  ;;  %v891_v8 = vpack.c.bf16 %v2159_v55, %v2154_v60  ;;  %v900_v37 = vpack.c.bf16 %v2190_v30, %v2185_v5  ;;  %v722_v22 = vld [vmem:[%s2746_s3 + $0x3d0] sm:$0xff] }
  0xef   :  { %v2192_v6 = vpack.c.bf16 %v572_v61, %v556_v50  ;;  %v575_v16 = vmax.f32 %v378_v24, 0.0  ;;  %v175_v27 = vrot.slane %v2121_v48, %v142_v26  ;;  %v179_v55 = vrot.slane %v2121_v48, %v146_v28  ;;  %v723_v61 = vld [vmem:[%s2746_s3 + $0x3d8] sm:$0xff] }
  0xf0   :  { %1382 = vmatpush3.bf16.msra.mxu0 %v889_v23  ;;  %v589_v19 = vpack.c.bf16 %v573_v0, %v557_v57  ;;  %v2211_v20 = vpack.c.bf16 %v574_v1, %v558_v58  ;;  %v414_v17 = vpop.f32.mrb[8].mxu0  ;;  %v907_v23 = vpack.c.bf16 %v2172_v63, %v2167_v38  ;;  %v673_v58 = vld [vmem:[%s2746_s3 + $0x248] sm:$0xff]  ;;  %v183_v26 = vrot.slane %v2121_v48, %v150_v39  ;;  %v675_v24 = vld [vmem:[%s2746_s3 + $0x258] sm:$0xff]  ;;  %v706_v0 = vld [vmem:[%s2746_s3 + $0x350] sm:$0xff] }
  0xf1   :  { %1404 = vmatpush3.bf16.msra.mxu1 %v905_v32  ;;  %1383 = vmatprep.subr.bf16.mxu0 %v898_v34  ;;  %v591_v31 = vpack.c.bf16 %v575_v16, %v559_v62  ;;  %v415_v14 = vadd.f32 %v414_v17, %v159_v25  ;;  %v416_v35 = vpop.f32.mrb[9].mxu0  ;;  %v457_v36 = vpop.f32.mrb[8].mxu1  ;;  %v916_v32 = vpack.c.bf16 %v2209_v18, %v2204_v11  ;;  %v2261_v62 = vld [vmem:[%s2746_s3 + $0x250] sm:$0xff]  ;;  %v707_v1 = vld [vmem:[%s2746_s3 + $0x358] sm:$0xff] }
  0xf2   :  { %1405 = vmatprep.subr.bf16.mxu1 %v914_v40  ;;  %1105 = vmatprep.mubr.bf16.mxu0 %v589_v19  ;;  %v417_v42 = vadd.f32 %v416_v35, %v163_v2  ;;  %v418_v43 = vpop.f32.mrb[10].mxu0  ;;  %v458_v44 = vadd.f32 %v457_v36, %v167_v13  ;;  %v459_v45 = vpop.f32.mrb[9].mxu1  ;;  %v672_v40 = vld [vmem:[%s2746_s3 + $0x240] sm:$0xff]  ;;  %v187_v39 = vrot.slane %v2121_v48, %v154_v47 }
  0xf3   :  { %1146 = vmatprep.mubr.bf16.mxu1 %v591_v31  ;;  %v560_v34 = vmax.f32 %v415_v14, 0.0  ;;  %v419_v50 = vadd.f32 %v418_v43, %v159_v25  ;;  %v420_v51 = vpop.f32.mrb[11].mxu0  ;;  %v460_v52 = vadd.f32 %v459_v45, %v171_v15  ;;  %v461_v53 = vpop.f32.mrb[10].mxu1  ;;  %v892_v38 = vpack.c.bf16 %v673_v58, %v672_v40  ;;  %v724_v31 = vld [vmem:[%s2746_s3 + $0x3e0] sm:$0xff]  ;;  %v725_v14 = vld [vmem:[%s2746_s3 + $0x3e8] sm:$0xff]  ;;  %v694_v58 = vld [vmem:[%s2746_s3 + $0x2f0] sm:$0xff] }
  0xf4   :  { %1384 = vmatpush3.bf16.msra.mxu0 %v890_v41  ;;  %v561_v54 = vmax.f32 %v417_v42, 0.0  ;;  %v562_v3 = vmax.f32 %v458_v44, 0.0  ;;  %v421_v56 = vadd.f32 %v420_v51, %v163_v2  ;;  %v462_v46 = vadd.f32 %v461_v53, %v167_v13  ;;  %v463_v57 = vpop.f32.mrb[11].mxu1  ;;  %v677_v53 = vld [vmem:[%s2746_s3 + $0x268] sm:$0xff]  ;;  %v708_v40 = vld [vmem:[%s2746_s3 + $0x360] sm:$0xff] }
  0xf5   :  { %1406 = vmatpush3.bf16.msra.mxu1 %v906_v49  ;;  %1385 = vmatprep.subr.bf16.mxu0 %v899_v4  ;;  %v576_v41 = vmax.f32 %v419_v50, 0.0  ;;  %v563_v59 = vmax.f32 %v460_v52, 0.0  ;;  %v464_v21 = vadd.f32 %v463_v57, %v171_v15  ;;  %v691_v49 = vld [vmem:[%s2746_s3 + $0x2d8] sm:$0xff]  ;;  %v908_v63 = vpack.c.bf16 %v705_v10, %v704_v9  ;;  %v676_v52 = vld [vmem:[%s2746_s3 + $0x260] sm:$0xff]  ;;  %v709_v57 = vld [vmem:[%s2746_s3 + $0x368] sm:$0xff] }
  0xf6   :  { %1407 = vmatprep.subr.bf16.mxu1 %v915_v7  ;;  %v577_v33 = vmax.f32 %v421_v56, 0.0  ;;  %v578_v60 = vmax.f32 %v462_v46, 0.0  ;;  %v901_v12 = vpack.c.bf16 %v691_v49, %v690_v29  ;;  %v917_v16 = vpack.c.bf16 %v723_v61, %v722_v22  ;;  %v692_v7 = vld [vmem:[%s2746_s3 + $0x2e0] sm:$0xff]  ;;  %v695_v9 = vld [vmem:[%s2746_s3 + $0x2f8] sm:$0xff] }
  0xf7   :  { %v2266_v25 = vpack.c.bf16 %v576_v41, %v560_v34  ;;  %v579_v28 = vmax.f32 %v464_v21, 0.0  ;;  %v893_v15 = vpack.c.bf16 %v675_v24, %v2261_v62  ;;  %v918_v46 = vpack.c.bf16 %v725_v14, %v724_v31  ;;  %v727_v21 = vld [vmem:[%s2746_s3 + $0x3f8] sm:$0xff]  ;;  %v710_v62 = vld [vmem:[%s2746_s3 + $0x370] sm:$0xff] }
  0xf8   :  { %1386 = vmatpush3.bf16.msra.mxu0 %v891_v8  ;;  %v2277_v2 = vpack.c.bf16 %v577_v33, %v561_v54  ;;  %v2279_v13 = vpack.c.bf16 %v578_v60, %v562_v3  ;;  %v500_v4 = vpop.f32.mrb[12].mxu0  ;;  %v693_v8 = vld [vmem:[%s2746_s3 + $0x2e8] sm:$0xff]  ;;  %v894_v49 = vpack.c.bf16 %v677_v53, %v676_v52  ;;  %v910_v60 = vpack.c.bf16 %v709_v57, %v708_v40  ;;  %v679_v61 = vld [vmem:[%s2746_s3 + $0x278] sm:$0xff]  ;;  %v730_v14 = vld [vmem:[%s2746_s3 + $0x410] sm:$0xff] }
  0xf9   :  { %1408 = vmatpush3.bf16.msra.mxu1 %v907_v23  ;;  %1387 = vmatprep.subr.bf16.mxu0 %v900_v37  ;;  %v2281_v47 = vpack.c.bf16 %v579_v28, %v563_v59  ;;  %v501_v48 = vadd.f32 %v500_v4, %v175_v27  ;;  %v502_v5 = vpop.f32.mrb[13].mxu0  ;;  %v543_v30 = vpop.f32.mrb[12].mxu1  ;;  %v909_v23 = vpack.c.bf16 %v707_v1, %v706_v0  ;;  %v726_v59 = vld [vmem:[%s2746_s3 + $0x3f0] sm:$0xff]  ;;  %v776_v0 = vld [vmem:[%s2746_s3 + $0x580] sm:$0xff]  ;;  %v777_v1 = vld [vmem:[%s2746_s3 + $0x588] sm:$0xff] }
  0xfa   :  { %1409 = vmatprep.subr.bf16.mxu1 %v916_v32  ;;  %v503_v11 = vadd.f32 %v502_v5, %v179_v55  ;;  %v504_v18 = vpop.f32.mrb[14].mxu0  ;;  %v544_v19 = vadd.f32 %v543_v30, %v183_v26  ;;  %v545_v17 = vpop.f32.mrb[13].mxu1  ;;  %v902_v51 = vpack.c.bf16 %v693_v8, %v692_v7  ;;  %v919_v28 = vpack.c.bf16 %v727_v21, %v726_v59  ;;  %v728_v5 = vld [vmem:[%s2746_s3 + $0x400] sm:$0xff]  ;;  %v729_v30 = vld [vmem:[%s2746_s3 + $0x408] sm:$0xff]  ;;  %v746_v8 = vld [vmem:[%s2746_s3 + $0x490] sm:$0xff] }
  0xfb   :  { %v564_v35 = vmax.f32 %v501_v48, 0.0  ;;  %v505_v36 = vadd.f32 %v504_v18, %v175_v27  ;;  %v506_v37 = vpop.f32.mrb[15].mxu0  ;;  %v546_v42 = vadd.f32 %v545_v17, %v187_v39  ;;  %v547_v43 = vpop.f32.mrb[14].mxu1  ;;  %v761_v7 = vld [vmem:[%s2746_s3 + $0x508] sm:$0xff]  ;;  %v778_v18 = vld [vmem:[%s2746_s3 + $0x590] sm:$0xff]  ;;  %v920_v17 = vpack.c.bf16 %v729_v30, %v728_v5  ;;  %v764_v53 = vld [vmem:[%s2746_s3 + $0x520] sm:$0xff] }
  0xfc   :  { %1388 = vmatpush3.bf16.msra.mxu0 %v892_v38  ;;  %v565_v44 = vmax.f32 %v503_v11, 0.0  ;;  %v566_v45 = vmax.f32 %v544_v19, 0.0  ;;  %v507_v32 = vadd.f32 %v506_v37, %v179_v55  ;;  %v548_v34 = vadd.f32 %v547_v43, %v183_v26  ;;  %v549_v50 = vpop.f32.mrb[15].mxu1  ;;  %v678_v26 = vld [vmem:[%s2746_s3 + $0x270] sm:$0xff]  ;;  %v744_v38 = vld [vmem:[%s2746_s3 + $0x480] sm:$0xff]  ;;  %v747_v11 = vld [vmem:[%s2746_s3 + $0x498] sm:$0xff] }
  0xfd   :  { %1410 = vmatpush3.bf16.msra.mxu1 %v908_v63  ;;  %1389 = vmatprep.subr.bf16.mxu0 %v901_v12  ;;  %v580_v54 = vmax.f32 %v505_v36, 0.0  ;;  %v567_v3 = vmax.f32 %v546_v42, 0.0  ;;  %v550_v56 = vadd.f32 %v549_v50, %v187_v39  ;;  %v903_v55 = vpack.c.bf16 %v695_v9, %v694_v58  ;;  %v711_v39 = vld [vmem:[%s2746_s3 + $0x378] sm:$0xff]  ;;  %v745_v63 = vld [vmem:[%s2746_s3 + $0x488] sm:$0xff]  ;;  %v762_v36 = vld [vmem:[%s2746_s3 + $0x510] sm:$0xff] }
  0xfe   :  { %1411 = vmatprep.subr.bf16.mxu1 %v917_v16  ;;  %v581_v10 = vmax.f32 %v507_v32, 0.0  ;;  %v582_v41 = vmax.f32 %v548_v34, 0.0  ;;  %v895_v4 = vpack.c.bf16 %v679_v61, %v678_v26  ;;  %v911_v12 = vpack.c.bf16 %v711_v39, %v710_v62  ;;  %v760_v16 = vld [vmem:[%s2746_s3 + $0x500] sm:$0xff]  ;;  %v779_v19 = vld [vmem:[%s2746_s3 + $0x598] sm:$0xff]  ;;  %v781_v32 = vld [vmem:[%s2746_s3 + $0x5a8] sm:$0xff] }
  0xff   :  { %v2320_v27 = vpack.c.bf16 %v580_v54, %v564_v35  ;;  %v583_v29 = vmax.f32 %v550_v56, 0.0  ;;  %v928_v48 = vpack.c.bf16 %v745_v63, %v744_v38  ;;  %v929_v31 = vpack.c.bf16 %v747_v11, %v746_v8  ;;  %v731_v35 = vld [vmem:[%s2746_s3 + $0x418] sm:$0xff]  ;;  %v748_v43 = vld [vmem:[%s2746_s3 + $0x4a0] sm:$0xff]  ;;  %v733_v52 = vld [vmem:[%s2746_s3 + $0x428] sm:$0xff] }
 0x100   :  { %1390 = vmatpush3.bf16.msra.mxu0 %v893_v15  ;;  %v2322_v22 = vpack.c.bf16 %v581_v10, %v565_v44  ;;  %v2324_v33 = vpack.c.bf16 %v582_v41, %v566_v45  ;;  %v944_v15 = vpack.c.bf16 %v777_v1, %v776_v0  ;;  %v945_v37 = vpack.c.bf16 %v779_v19, %v778_v18  ;;  %v763_v42 = vld [vmem:[%s2746_s3 + $0x518] sm:$0xff]  ;;  %v749_v44 = vld [vmem:[%s2746_s3 + $0x4a8] sm:$0xff]  ;;  %v780_v45 = vld [vmem:[%s2746_s3 + $0x5a0] sm:$0xff] }
 0x101   :  { %1412 = vmatpush3.bf16.msra.mxu1 %v909_v23  ;;  %1391 = vmatprep.subr.bf16.mxu0 %v902_v51  ;;  %v2335_v24 = vpack.c.bf16 %v583_v29, %v567_v3  ;;  %v936_v23 = vpack.c.bf16 %v761_v7, %v760_v16  ;;  %v921_v34 = vpack.c.bf16 %v731_v35, %v730_v14  ;;  %v765_v40 = vld [vmem:[%s2746_s3 + $0x528] sm:$0xff]  ;;  %v750_v54 = vld [vmem:[%s2746_s3 + $0x4b0] sm:$0xff]  ;;  %v751_v3 = vld [vmem:[%s2746_s3 + $0x4b8] sm:$0xff] }
 0x102   :  { %1413 = vmatprep.subr.bf16.mxu1 %v918_v46  ;;  %v937_v50 = vpack.c.bf16 %v763_v42, %v762_v36  ;;  %v930_v51 = vpack.c.bf16 %v749_v44, %v748_v43  ;;  %v782_v56 = vld [vmem:[%s2746_s3 + $0x5b0] sm:$0xff]  ;;  %v783_v46 = vld [vmem:[%s2746_s3 + $0x5b8] sm:$0xff]  ;;  %v938_v58 = vpack.c.bf16 %v765_v40, %v764_v53  ;;  %v931_v9 = vpack.c.bf16 %v751_v3, %v750_v54  ;;  %v752_v21 = vld [vmem:[%s2746_s3 + $0x4c0] sm:$0xff] }
 0x103   :  { %v735_v10 = vld [vmem:[%s2746_s3 + $0x438] sm:$0xff]  ;;  %v766_v41 = vld [vmem:[%s2746_s3 + $0x530] sm:$0xff]  ;;  %v753_v29 = vld [vmem:[%s2746_s3 + $0x4c8] sm:$0xff] }
 0x104   :  { %1392 = vmatpush3.bf16.msra.mxu0 %v894_v49  ;;  %v767_v59 = vld [vmem:[%s2746_s3 + $0x538] sm:$0xff]  ;;  %v784_v49 = vld [vmem:[%s2746_s3 + $0x5c0] sm:$0xff]  ;;  %v932_v61 = vpack.c.bf16 %v753_v29, %v752_v21  ;;  %v769_v63 = vld [vmem:[%s2746_s3 + $0x548] sm:$0xff] }
 0x105   :  { %1414 = vmatpush3.bf16.msra.mxu1 %v910_v60  ;;  %1393 = vmatprep.subr.bf16.mxu0 %v903_v55  ;;  %v785_v60 = vld [vmem:[%s2746_s3 + $0x5c8] sm:$0xff]  ;;  %v939_v26 = vpack.c.bf16 %v767_v59, %v766_v41  ;;  %v736_v62 = vld [vmem:[%s2746_s3 + $0x440] sm:$0xff]  ;;  %v754_v0 = vld [vmem:[%s2746_s3 + $0x4d0] sm:$0xff] }
 0x106   :  { %1415 = vmatprep.subr.bf16.mxu1 %v919_v28  ;;  %v737_v28 = vld [vmem:[%s2746_s3 + $0x448] sm:$0xff]  ;;  %v768_v39 = vld [vmem:[%s2746_s3 + $0x540] sm:$0xff]  ;;  %v948_v38 = vpack.c.bf16 %v785_v60, %v784_v49  ;;  %v755_v1 = vld [vmem:[%s2746_s3 + $0x4d8] sm:$0xff] }
 0x107   :  { %v940_v5 = vpack.c.bf16 %v769_v63, %v768_v39  ;;  %v933_v30 = vpack.c.bf16 %v755_v1, %v754_v0  ;;  %v738_v16 = vld [vmem:[%s2746_s3 + $0x450] sm:$0xff]  ;;  %v771_v11 = vld [vmem:[%s2746_s3 + $0x558] sm:$0xff]  ;;  %v756_v18 = vld [vmem:[%s2746_s3 + $0x4e0] sm:$0xff] }
 0x108   :  { %1394 = vmatpush3.bf16.msra.mxu0 %v895_v4  ;;  %v786_v4 = vld [vmem:[%s2746_s3 + $0x5d0] sm:$0xff]  ;;  %v757_v19 = vld [vmem:[%s2746_s3 + $0x4e8] sm:$0xff]  ;;  %v740_v36 = vld [vmem:[%s2746_s3 + $0x460] sm:$0xff] }
 0x109   :  { %1416 = vmatpush3.bf16.msra.mxu1 %v911_v12  ;;  %1423 = vmatprep.subr.bf16.mxu0 %v928_v48  ;;  %v787_v12 = vld [vmem:[%s2746_s3 + $0x5d8] sm:$0xff]  ;;  %v924_v48 = vpack.c.bf16 %v737_v28, %v736_v62  ;;  %v770_v7 = vld [vmem:[%s2746_s3 + $0x550] sm:$0xff]  ;;  %v934_v35 = vpack.c.bf16 %v757_v19, %v756_v18  ;;  %v772_v42 = vld [vmem:[%s2746_s3 + $0x560] sm:$0xff] }
 0x10a   :  { %1445 = vmatprep.subr.bf16.mxu1 %v944_v15  ;;  %v739_v15 = vld [vmem:[%s2746_s3 + $0x458] sm:$0xff]  ;;  %v949_v8 = vpack.c.bf16 %v787_v12, %v786_v4  ;;  %v941_v14 = vpack.c.bf16 %v771_v11, %v770_v7  ;;  %v773_v44 = vld [vmem:[%s2746_s3 + $0x568] sm:$0xff]  ;;  %v742_v53 = vld [vmem:[%s2746_s3 + $0x470] sm:$0xff] }
 0x10b   :  { %1106 = vmatmul.mubr.bf16.vlgmr.msra.gmra.mrb[20].mxu0 %v2192_v6  ;;  %v732_v6 = vld [vmem:[%s2746_s3 + $0x420] sm:$0xff]  ;;  %v774_v40 = vld [vmem:[%s2746_s3 + $0x570] sm:$0xff]  ;;  %v775_v3 = vld [vmem:[%s2746_s3 + $0x578] sm:$0xff] }
 0x10c   :  { %1147 = vmatmul.mubr.bf16.vlgmr.msra.gmra.mrb[20].mxu1 %v2211_v20  ;;  %1424 = vmatpush3.bf16.msra.mxu0 %v920_v17  ;;  %v946_v20 = vpack.c.bf16 %v781_v32, %v780_v45  ;;  %v922_v57 = vpack.c.bf16 %v733_v52, %v732_v6  ;;  %v788_v17 = vld [vmem:[%s2746_s3 + $0x5e0] sm:$0xff]  ;;  %v758_v45 = vld [vmem:[%s2746_s3 + $0x4f0] sm:$0xff]  ;;  %v759_v32 = vld [vmem:[%s2746_s3 + $0x4f8] sm:$0xff]  ;;  %v942_v6 = vpack.c.bf16 %v773_v44, %v772_v42 }
 0x10d   :  { %1446 = vmatpush3.bf16.msra.mxu1 %v936_v23  ;;  %1425 = vmatprep.subr.bf16.mxu0 %v929_v31  ;;  %v789_v23 = vld [vmem:[%s2746_s3 + $0x5e8] sm:$0xff]  ;;  %v925_v31 = vpack.c.bf16 %v739_v15, %v738_v16  ;;  %v935_v52 = vpack.c.bf16 %v759_v32, %v758_v45  ;;  %v792_v41 = vld [vmem:[%s2746_s3 + $0x600] sm:$0xff]  ;;  %v810_v49 = vld [vmem:[%s2746_s3 + $0x690] sm:$0xff] }
 0x10e   :  { %1447 = vmatprep.subr.bf16.mxu1 %v945_v37  ;;  %1187 = vmatprep.mubr.bf16.mxu0 %v2277_v2  ;;  %v734_v2 = vld [vmem:[%s2746_s3 + $0x430] sm:$0xff]  ;;  %v741_v37 = vld [vmem:[%s2746_s3 + $0x468] sm:$0xff]  ;;  %v950_v43 = vpack.c.bf16 %v789_v23, %v788_v17  ;;  %v824_v59 = vld [vmem:[%s2746_s3 + $0x700] sm:$0xff] }
 0x10f   :  { %1228 = vmatprep.mubr.bf16.mxu1 %v2281_v47  ;;  %v947_v47 = vpack.c.bf16 %v783_v46, %v782_v56  ;;  %v923_v55 = vpack.c.bf16 %v735_v10, %v734_v2  ;;  %v808_v56 = vld [vmem:[%s2746_s3 + $0x680] sm:$0xff]  ;;  %v809_v46 = vld [vmem:[%s2746_s3 + $0x688] sm:$0xff]  ;;  %v943_v2 = vpack.c.bf16 %v775_v3, %v774_v40  ;;  %v811_v60 = vld [vmem:[%s2746_s3 + $0x698] sm:$0xff] }
 0x110   :  { %1426 = vmatpush3.bf16.msra.mxu0 %v921_v34  ;;  %v790_v34 = vld [vmem:[%s2746_s3 + $0x5f0] sm:$0xff]  ;;  %v960_v10 = vpack.c.bf16 %v809_v46, %v808_v56  ;;  %v825_v29 = vld [vmem:[%s2746_s3 + $0x708] sm:$0xff]  ;;  %v961_v28 = vpack.c.bf16 %v811_v60, %v810_v49  ;;  %v827_v1 = vld [vmem:[%s2746_s3 + $0x718] sm:$0xff] }
 0x111   :  { %1448 = vmatpush3.bf16.msra.mxu1 %v937_v50  ;;  %1427 = vmatprep.subr.bf16.mxu0 %v930_v51  ;;  %v791_v50 = vld [vmem:[%s2746_s3 + $0x5f8] sm:$0xff]  ;;  %v926_v51 = vpack.c.bf16 %v741_v37, %v740_v36  ;;  %v968_v62 = vpack.c.bf16 %v825_v29, %v824_v59  ;;  %v794_v39 = vld [vmem:[%s2746_s3 + $0x610] sm:$0xff]  ;;  %v812_v4 = vld [vmem:[%s2746_s3 + $0x6a0] sm:$0xff] }
 0x112   :  { %1449 = vmatprep.subr.bf16.mxu1 %v946_v20  ;;  %v743_v20 = vld [vmem:[%s2746_s3 + $0x478] sm:$0xff]  ;;  %v951_v54 = vpack.c.bf16 %v791_v50, %v790_v34  ;;  %v826_v63 = vld [vmem:[%s2746_s3 + $0x710] sm:$0xff]  ;;  %v813_v12 = vld [vmem:[%s2746_s3 + $0x6a8] sm:$0xff] }
 0x113   :  { %v969_v16 = vpack.c.bf16 %v827_v1, %v826_v63  ;;  %v962_v15 = vpack.c.bf16 %v813_v12, %v812_v4  ;;  %v797_v7 = vld [vmem:[%s2746_s3 + $0x628] sm:$0xff]  ;;  %v814_v18 = vld [vmem:[%s2746_s3 + $0x6b0] sm:$0xff]  ;;  %v815_v19 = vld [vmem:[%s2746_s3 + $0x6b8] sm:$0xff] }
 0x114   :  { %1428 = vmatpush3.bf16.msra.mxu0 %v922_v57  ;;  %v840_v57 = vld [vmem:[%s2746_s3 + $0x780] sm:$0xff]  ;;  %v829_v11 = vld [vmem:[%s2746_s3 + $0x728] sm:$0xff]  ;;  %v846_v17 = vld [vmem:[%s2746_s3 + $0x7b0] sm:$0xff] }
 0x115   :  { %1450 = vmatpush3.bf16.msra.mxu1 %v938_v58  ;;  %1429 = vmatprep.subr.bf16.mxu0 %v931_v9  ;;  %v841_v58 = vld [vmem:[%s2746_s3 + $0x788] sm:$0xff]  ;;  %v927_v9 = vpack.c.bf16 %v743_v20, %v742_v53  ;;  %v847_v23 = vld [vmem:[%s2746_s3 + $0x7b8] sm:$0xff]  ;;  %v830_v37 = vld [vmem:[%s2746_s3 + $0x730] sm:$0xff] }
 0x116   :  { %1451 = vmatprep.subr.bf16.mxu1 %v947_v47  ;;  %v793_v47 = vld [vmem:[%s2746_s3 + $0x608] sm:$0xff]  ;;  %v976_v21 = vpack.c.bf16 %v841_v58, %v840_v57  ;;  %v799_v36 = vld [vmem:[%s2746_s3 + $0x638] sm:$0xff]  ;;  %v848_v45 = vld [vmem:[%s2746_s3 + $0x7c0] sm:$0xff] }
 0x117   :  { %v831_v42 = vld [vmem:[%s2746_s3 + $0x738] sm:$0xff]  ;;  %v817_v44 = vld [vmem:[%s2746_s3 + $0x6c8] sm:$0xff]  ;;  %v832_v53 = vld [vmem:[%s2746_s3 + $0x740] sm:$0xff] }
 0x118   :  { %1430 = vmatpush3.bf16.msra.mxu0 %v923_v55  ;;  %v842_v55 = vld [vmem:[%s2746_s3 + $0x790] sm:$0xff]  ;;  %v849_v32 = vld [vmem:[%s2746_s3 + $0x7c8] sm:$0xff]  ;;  %v971_v50 = vpack.c.bf16 %v831_v42, %v830_v37  ;;  %v819_v3 = vld [vmem:[%s2746_s3 + $0x6d8] sm:$0xff] }
 0x119   :  { %1452 = vmatpush3.bf16.msra.mxu1 %v939_v26  ;;  %1431 = vmatprep.subr.bf16.mxu0 %v932_v61  ;;  %v843_v26 = vld [vmem:[%s2746_s3 + $0x798] sm:$0xff]  ;;  %v952_v61 = vpack.c.bf16 %v793_v47, %v792_v41  ;;  %v980_v20 = vpack.c.bf16 %v849_v32, %v848_v45  ;;  %v833_v40 = vld [vmem:[%s2746_s3 + $0x748] sm:$0xff]  ;;  %v850_v56 = vld [vmem:[%s2746_s3 + $0x7d0] sm:$0xff] }
 0x11a   :  { %1453 = vmatprep.subr.bf16.mxu1 %v948_v38  ;;  %v795_v38 = vld [vmem:[%s2746_s3 + $0x618] sm:$0xff]  ;;  %v977_v0 = vpack.c.bf16 %v843_v26, %v842_v55  ;;  %v972_v58 = vpack.c.bf16 %v833_v40, %v832_v53  ;;  %v834_v41 = vld [vmem:[%s2746_s3 + $0x750] sm:$0xff]  ;;  %v821_v29 = vld [vmem:[%s2746_s3 + $0x6e8] sm:$0xff] }
 0x11b   :  { %v851_v46 = vld [vmem:[%s2746_s3 + $0x7d8] sm:$0xff]  ;;  %v852_v49 = vld [vmem:[%s2746_s3 + $0x7e0] sm:$0xff]  ;;  %v853_v60 = vld [vmem:[%s2746_s3 + $0x7e8] sm:$0xff] }
 0x11c   :  { %1432 = vmatpush3.bf16.msra.mxu0 %v924_v48  ;;  %v844_v48 = vld [vmem:[%s2746_s3 + $0x7a0] sm:$0xff]  ;;  %v981_v47 = vpack.c.bf16 %v851_v46, %v850_v56  ;;  %v835_v59 = vld [vmem:[%s2746_s3 + $0x758] sm:$0xff]  ;;  %v837_v63 = vld [vmem:[%s2746_s3 + $0x768] sm:$0xff] }
 0x11d   :  { %1454 = vmatpush3.bf16.msra.mxu1 %v940_v5  ;;  %1433 = vmatprep.subr.bf16.mxu0 %v933_v30  ;;  %v845_v5 = vld [vmem:[%s2746_s3 + $0x7a8] sm:$0xff]  ;;  %v953_v30 = vpack.c.bf16 %v795_v38, %v794_v39  ;;  %v973_v26 = vpack.c.bf16 %v835_v59, %v834_v41  ;;  %v836_v39 = vld [vmem:[%s2746_s3 + $0x760] sm:$0xff]  ;;  %v982_v38 = vpack.c.bf16 %v853_v60, %v852_v49  ;;  %v823_v1 = vld [vmem:[%s2746_s3 + $0x6f8] sm:$0xff] }
 0x11e   :  { %1455 = vmatprep.subr.bf16.mxu1 %v949_v8  ;;  %v828_v8 = vld [vmem:[%s2746_s3 + $0x720] sm:$0xff]  ;;  %v854_v4 = vld [vmem:[%s2746_s3 + $0x7f0] sm:$0xff]  ;;  %v855_v12 = vld [vmem:[%s2746_s3 + $0x7f8] sm:$0xff] }
 0x120   :  { %1434 = vmatpush3.bf16.msra.mxu0 %v925_v31 }
 0x121   :  { %1456 = vmatpush3.bf16.msra.mxu1 %v941_v14  ;;  %1435 = vmatprep.subr.bf16.mxu0 %v934_v35  ;;  %v970_v14 = vpack.c.bf16 %v829_v11, %v828_v8  ;;  %v963_v35 = vpack.c.bf16 %v815_v19, %v814_v18  ;;  %v839_v8 = vld [vmem:[%s2746_s3 + $0x778] sm:$0xff] }
 0x122   :  { %1457 = vmatprep.subr.bf16.mxu1 %v950_v43  ;;  %v816_v43 = vld [vmem:[%s2746_s3 + $0x6c0] sm:$0xff] }
 0x124   :  { %1436 = vmatpush3.bf16.msra.mxu0 %v926_v51  ;;  %v964_v51 = vpack.c.bf16 %v817_v44, %v816_v43 }
 0x125   :  { %1458 = vmatpush3.bf16.msra.mxu1 %v942_v6  ;;  %1437 = vmatprep.subr.bf16.mxu0 %v935_v52  ;;  %v800_v6 = vld [vmem:[%s2746_s3 + $0x640] sm:$0xff]  ;;  %v801_v52 = vld [vmem:[%s2746_s3 + $0x648] sm:$0xff] }
 0x126   :  { %1459 = vmatprep.subr.bf16.mxu1 %v951_v54  ;;  %v818_v54 = vld [vmem:[%s2746_s3 + $0x6d0] sm:$0xff]  ;;  %v956_v57 = vpack.c.bf16 %v801_v52, %v800_v6 }
 0x128   :  { %1438 = vmatpush3.bf16.msra.mxu0 %v927_v9  ;;  %v965_v9 = vpack.c.bf16 %v819_v3, %v818_v54 }
 0x129   :  { %1460 = vmatpush3.bf16.msra.mxu1 %v943_v2  ;;  %1467 = vmatprep.subr.bf16.mxu0 %v960_v10  ;;  %v802_v2 = vld [vmem:[%s2746_s3 + $0x650] sm:$0xff]  ;;  %v803_v10 = vld [vmem:[%s2746_s3 + $0x658] sm:$0xff] }
 0x12a   :  { %1489 = vmatprep.subr.bf16.mxu1 %v976_v21  ;;  %v820_v21 = vld [vmem:[%s2746_s3 + $0x6e0] sm:$0xff]  ;;  %v957_v55 = vpack.c.bf16 %v803_v10, %v802_v2 }
 0x12b   :  { %1188 = vmatmul.mubr.bf16.vlgmr.msra.gmra.mrb[24].mxu0 %v2266_v25  ;;  %v796_v25 = vld [vmem:[%s2746_s3 + $0x620] sm:$0xff] }
 0x12c   :  { %1229 = vmatmul.mubr.bf16.vlgmr.msra.gmra.mrb[24].mxu1 %v2279_v13  ;;  %1468 = vmatpush3.bf16.msra.mxu0 %v952_v61  ;;  %v978_v13 = vpack.c.bf16 %v845_v5, %v844_v48  ;;  %v954_v31 = vpack.c.bf16 %v797_v7, %v796_v25  ;;  %v966_v61 = vpack.c.bf16 %v821_v29, %v820_v21  ;;  %v838_v7 = vld [vmem:[%s2746_s3 + $0x770] sm:$0xff] }
 0x12d   :  { %1490 = vmatpush3.bf16.msra.mxu1 %v968_v62  ;;  %1469 = vmatprep.subr.bf16.mxu0 %v961_v28  ;;  %v804_v62 = vld [vmem:[%s2746_s3 + $0x660] sm:$0xff]  ;;  %v805_v28 = vld [vmem:[%s2746_s3 + $0x668] sm:$0xff]  ;;  %v974_v5 = vpack.c.bf16 %v837_v63, %v836_v39  ;;  %v983_v25 = vpack.c.bf16 %v855_v12, %v854_v4  ;;  %v975_v11 = vpack.c.bf16 %v839_v8, %v838_v7 }
 0x12e   :  { %1491 = vmatprep.subr.bf16.mxu1 %v977_v0  ;;  %1269 = vmatprep.mubr.bf16.mxu0 %v2322_v22  ;;  %v798_v22 = vld [vmem:[%s2746_s3 + $0x630] sm:$0xff]  ;;  %v958_v48 = vpack.c.bf16 %v805_v28, %v804_v62 }
 0x12f   :  { %1310 = vmatprep.mubr.bf16.mxu1 %v2335_v24  ;;  %v979_v24 = vpack.c.bf16 %v847_v23, %v846_v17  ;;  %v955_v34 = vpack.c.bf16 %v799_v36, %v798_v22  ;;  %v822_v0 = vld [vmem:[%s2746_s3 + $0x6f0] sm:$0xff]  ;;  %v1334_v17 = vld [vmem:[%s2748_s4] ss:$0 sm:$0xff] }
 0x130   :  { %1470 = vmatpush3.bf16.msra.mxu0 %v953_v30  ;;  %v967_v30 = vpack.c.bf16 %v823_v1, %v822_v0 }
 0x131   :  { %1492 = vmatpush3.bf16.msra.mxu1 %v969_v16  ;;  %1471 = vmatprep.subr.bf16.mxu0 %v962_v15  ;;  %v806_v16 = vld [vmem:[%s2746_s3 + $0x670] sm:$0xff]  ;;  %v807_v15 = vld [vmem:[%s2746_s3 + $0x678] sm:$0xff] }
 0x132   :  { %1493 = vmatprep.subr.bf16.mxu1 %v978_v13  ;;  %v959_v13 = vpack.c.bf16 %v807_v15, %v806_v16 }
 0x134   :  { %1472 = vmatpush3.bf16.msra.mxu0 %v954_v31 }
 0x135   :  { %1494 = vmatpush3.bf16.msra.mxu1 %v970_v14  ;;  %1473 = vmatprep.subr.bf16.mxu0 %v963_v35 }
 0x136   :  { %1495 = vmatprep.subr.bf16.mxu1 %v979_v24 }
 0x138   :  { %1474 = vmatpush3.bf16.msra.mxu0 %v955_v34 }
 0x139   :  { %1496 = vmatpush3.bf16.msra.mxu1 %v971_v50  ;;  %1475 = vmatprep.subr.bf16.mxu0 %v964_v51 }
 0x13a   :  { %1497 = vmatprep.subr.bf16.mxu1 %v980_v20 }
 0x13c   :  { %1476 = vmatpush3.bf16.msra.mxu0 %v956_v57 }
 0x13d   :  { %1498 = vmatpush3.bf16.msra.mxu1 %v972_v58  ;;  %1477 = vmatprep.subr.bf16.mxu0 %v965_v9 }
 0x13e   :  { %1499 = vmatprep.subr.bf16.mxu1 %v981_v47 }
 0x140   :  { %1478 = vmatpush3.bf16.msra.mxu0 %v957_v55 }
 0x141   :  { %1500 = vmatpush3.bf16.msra.mxu1 %v973_v26  ;;  %1479 = vmatprep.subr.bf16.mxu0 %v966_v61 }
 0x142   :  { %1501 = vmatprep.subr.bf16.mxu1 %v982_v38 }
 0x144   :  { %1480 = vmatpush3.bf16.msra.mxu0 %v958_v48 }
 0x145   :  { %1502 = vmatpush3.bf16.msra.mxu1 %v974_v5  ;;  %1481 = vmatprep.subr.bf16.mxu0 %v967_v30 }
 0x146   :  { %1503 = vmatprep.subr.bf16.mxu1 %v983_v25 }
 0x148   :  { %1482 = vmatpush3.bf16.msra.mxu0 %v959_v13 }
 0x149   :  { %1504 = vmatpush3.bf16.msra.mxu1 %v975_v11 }
 0x14b   :  { %1270 = vmatmul.mubr.bf16.vlgmr.msra.gmra.mrb[28].mxu0 %v2320_v27 }
 0x14c   :  { %1311 = vmatmul.mubr.bf16.vlgmr.msra.gmra.mrb[28].mxu1 %v2324_v33 }
 0x1be   :  { %v1351_v18 = vpop.f32.mrb[16].mxu0 }
 0x1bf   :  { %v1373_v19 = vpop.f32.mrb[16].mxu1  ;;  %v1352_v23 = vpop.f32.mrb[17].mxu0 }
 0x1c0   :  { %v1353_v31 = vadd.f32 %v1352_v23, %v1351_v18  ;;  %v1374_v14 = vpop.f32.mrb[17].mxu1  ;;  %v1354_v35 = vpop.f32.mrb[18].mxu0 }
 0x1c1   :  { %v1375_v22 = vadd.f32 %v1374_v14, %v1373_v19  ;;  %v1376_v36 = vpop.f32.mrb[18].mxu1  ;;  %v1355_v37 = vpop.f32.mrb[19].mxu0 }
 0x1c2   :  { %v1026_v24 = vadd.f32 %v1353_v31, %v1334_v17  ;;  %v1356_v42 = vadd.f32 %v1355_v37, %v1354_v35  ;;  %v1377_v43 = vpop.f32.mrb[19].mxu1 }
 0x1c3   :  { %v1378_v44 = vadd.f32 %v1377_v43, %v1376_v36 }
 0x1c4   :  { %v1067_v27 = vadd.f32 %v1375_v22, %v1026_v24  ;;  %v1029_v45 = vadd.f32 %v1356_v42, %v1334_v17 }
 0x1c6   :  { %v1070_v33 = vadd.f32 %v1378_v44, %v1029_v45 }
 0x1de   :  { %v1395_v32 = vpop.f32.mrb[20].mxu0 }
 0x1df   :  { %v1417_v34 = vpop.f32.mrb[20].mxu1  ;;  %v1396_v50 = vpop.f32.mrb[21].mxu0 }
 0x1e0   :  { %v1397_v51 = vadd.f32 %v1396_v50, %v1395_v32  ;;  %v1418_v6 = vpop.f32.mrb[21].mxu1  ;;  %v1398_v52 = vpop.f32.mrb[22].mxu0 }
 0x1e1   :  { %v1419_v53 = vadd.f32 %v1418_v6, %v1417_v34  ;;  %v1420_v20 = vpop.f32.mrb[22].mxu1  ;;  %v1399_v40 = vpop.f32.mrb[23].mxu0 }
 0x1e2   :  { %v1108_v54 = vadd.f32 %v1397_v51, %v1067_v27  ;;  %v1400_v3 = vadd.f32 %v1399_v40, %v1398_v52  ;;  %v1421_v56 = vpop.f32.mrb[23].mxu1 }
 0x1e3   :  { %v1422_v46 = vadd.f32 %v1421_v56, %v1420_v20 }
 0x1e4   :  { %v1149_v57 = vadd.f32 %v1419_v53, %v1108_v54  ;;  %v1111_v58 = vadd.f32 %v1400_v3, %v1070_v33 }
 0x1e6   :  { %v1152_v9 = vadd.f32 %v1422_v46, %v1111_v58 }
 0x1fe   :  { %v1439_v2 = vpop.f32.mrb[24].mxu0 }
 0x1ff   :  { %v1461_v10 = vpop.f32.mrb[24].mxu1  ;;  %v1440_v41 = vpop.f32.mrb[25].mxu0 }
 0x200   :  { %v1441_v47 = vadd.f32 %v1440_v41, %v1439_v2  ;;  %v1462_v59 = vpop.f32.mrb[25].mxu1  ;;  %v1442_v21 = vpop.f32.mrb[26].mxu0 }
 0x201   :  { %v1463_v29 = vadd.f32 %v1462_v59, %v1461_v10  ;;  %v1464_v49 = vpop.f32.mrb[26].mxu1  ;;  %v1443_v60 = vpop.f32.mrb[27].mxu0 }
 0x202   :  { %v1190_v55 = vadd.f32 %v1441_v47, %v1149_v57  ;;  %v1444_v26 = vadd.f32 %v1443_v60, %v1442_v21  ;;  %v1465_v61 = vpop.f32.mrb[27].mxu1 }
 0x203   :  { %v1466_v62 = vadd.f32 %v1465_v61, %v1464_v49 }
 0x204   :  { %v1231_v28 = vadd.f32 %v1463_v29, %v1190_v55  ;;  %v1193_v39 = vadd.f32 %v1444_v26, %v1152_v9 }
 0x206   :  { %v1234_v38 = vadd.f32 %v1466_v62, %v1193_v39 }
 0x21e   :  { %v1483_v63 = vpop.f32.mrb[28].mxu0 }
 0x21f   :  { %v1505_v0 = vpop.f32.mrb[28].mxu1  ;;  %v1484_v1 = vpop.f32.mrb[29].mxu0 }
 0x220   :  { %v1485_v4 = vadd.f32 %v1484_v1, %v1483_v63  ;;  %v1506_v12 = vpop.f32.mrb[29].mxu1  ;;  %v1486_v48 = vpop.f32.mrb[30].mxu0 }
 0x221   :  { %v1507_v5 = vadd.f32 %v1506_v12, %v1505_v0  ;;  %v1508_v30 = vpop.f32.mrb[30].mxu1  ;;  %v1487_v16 = vpop.f32.mrb[31].mxu0 }
 0x222   :  { %v1272_v15 = vadd.f32 %v1485_v4, %v1231_v28  ;;  %v1488_v25 = vadd.f32 %v1487_v16, %v1486_v48  ;;  %v1509_v7 = vpop.f32.mrb[31].mxu1 }
 0x223   :  { %v1510_v8 = vadd.f32 %v1509_v7, %v1508_v30 }
 0x224   :  { %v1313_v13 = vadd.f32 %v1507_v5, %v1272_v15  ;;  %v1275_v11 = vadd.f32 %v1488_v25, %v1234_v38 }
 0x226   :  { %1319 = vst.msk [vmem:[%s2749_s5] sm:$0xff] %vm204_vm0, %v1313_v13  ;;  %v1316_v18 = vadd.f32 %v1510_v8, %v1275_v11 }
 0x228   :  { %1321 = vst.msk [vmem:[%s2749_s5 + $0x8] sm:$0xf] %vm1320_vm1, %v1316_v18 }

</bundles_post_ra>
